<compile_context>
chip_gen: v6e
topology: v6e:2x2x1
jax: 0.10.0
libtpu: 0.0.40
codegen_flags: <defaults>
</compile_context>

<pallas_src>
import functools

import jax
import jax.numpy as jnp
from jax.experimental import pallas as pl
from jax.experimental.pallas import tpu as pltpu

EPS = 1e-5
_HIGHEST = jax.lax.Precision.HIGHEST


def _round_up(x, m):
    return (x + m - 1) // m * m


# ---------------------------------------------------------------------------
# VMEM budget / tiling (per TPU generation)
# ---------------------------------------------------------------------------
def _vmem_budget():
    """(tile working-set budget, scoped vmem limit), sized per TPU generation."""
    try:
        cap = pltpu.get_tpu_info().vmem_capacity_bytes
    except Exception:
        cap = 64 << 20                 # conservative: v7x has 64 MiB / TensorCore
    tile_budget = max(cap // 2, 16 << 20)
    vmem_limit = min((cap * 3) // 4, 96 << 20)
    return tile_budget, vmem_limit


def _choose_block_rows(n_rows, c, hidden, num_hop, h0_itemsize, weight_bytes,
                       budget):
    """Largest row tile whose kernel-2 pipeline footprint fits the budget."""
    # MXU-friendly M granularity (256 on v6e/v7x; 2 passes of the 4x128^2 MXU
    # on v5e).  Tiny demo-scale graphs fall back to sublane (8) alignment.
    align = 256 if n_rows > 512 else 8

    def footprint(br):
        in_tile = 2 * num_hop * br * c * h0_itemsize      # double-buffered h0
        out_tile = 2 * br * hidden * 4                    # double-buffered out
        live = 6 * num_hop * br * max(c, hidden) * 4      # hop-batched f32 slabs
        return in_tile + out_tile + live + weight_bytes

    br = 2048
    while br > align and footprint(br) > budget:
        br //= 2
    br = max(br, align)

    rows_a = _round_up(n_rows, align)
    br = min(br, rows_a)
    # Keep >= 2 grid steps so the 'parallel' node axis can shard across the
    # two v7x TensorCores (megacore on v5e/v6e) without dropping below align.
    if rows_a // br < 2 and rows_a >= 2 * align:
        br = _round_up(rows_a // 2, align)
    return br


# ---------------------------------------------------------------------------
# Kernel 1: hop preprocessing  h0[k] = adj^k @ x   (N2N.preprocess)
# ---------------------------------------------------------------------------
def _hop_stack_kernel(adj_ref, x_ref, h0_ref, cur_ref):
    """Grid (num_hop, row_tiles): h0[k, rows_i] = (adj^k @ x)[rows_i].

    cur_ref is a (2, N, C) f32 ping-pong scratch holding adj^k @ x for the
    current / next hop; adj row tiles stream through VMEM every hop."""
    k = pl.program_id(0)
    i = pl.program_id(1)
    tm = h0_ref.shape[0]
    row0 = pl.multiple_of(i * tm, tm)
    slot = k & 1

    @pl.when((k == 0) & (i == 0))
    def _():
        cur_ref[0] = x_ref[...]                       # seed hop 0 with x

    cur = cur_ref.at[slot]
    # h0 is emitted directly in the matmul dtype (bf16 in the fast path).
    h0_ref[...] = cur[pl.ds(row0, tm), :].astype(h0_ref.dtype)

    @pl.when(k < pl.num_programs(0) - 1)
    def _():
        # bf16 MXU operands, f32 accumulation; the cur chain stays f32.
        nxt_rows = jnp.dot(adj_ref[...], cur[...].astype(adj_ref.dtype),
                           preferred_element_type=jnp.float32)
        nxt = cur_ref.at[1 - slot]
        nxt[pl.ds(row0, tm), :] = nxt_rows


def hop_preprocess(adj, x, num_hop, out_dtype, tm, single_buffer, vmem_limit):
    """Dense N2N.preprocess. Returns h0 with hops leading: [num_hop, N, C].

    TODO(synk): the row axis stays 'arbitrary' because hop k+1 needs the full
    hop-k result from VMEM scratch; a megacore-parallel variant would need an
    HBM round-trip (or cross-core DMA) between hops."""
    n, c = x.shape
    w_kwargs = {"pipeline_mode": pl.Buffered(1)} if single_buffer else {}
    return pl.pallas_call(
        _hop_stack_kernel,
        out_shape=jax.ShapeDtypeStruct((num_hop, n, c), out_dtype),
        grid_spec=pltpu.PrefetchScalarGridSpec(
            num_scalar_prefetch=0,
            grid=(num_hop, n // tm),
            in_specs=[
                pl.BlockSpec((tm, n), lambda k, i: (i, 0)),            # adj rows
                pl.BlockSpec((n, c), lambda k, i: (0, 0), **w_kwargs),  # x (const)
            ],
            out_specs=pl.BlockSpec((None, tm, c), lambda k, i: (k, i, 0)),
            scratch_shapes=[pltpu.VMEM((2, n, c), jnp.float32)],
        ),
        compiler_params=pltpu.CompilerParams(
            dimension_semantics=("arbitrary", "arbitrary"),
            vmem_limit_bytes=int(vmem_limit)),
    )(adj, x)


# ---------------------------------------------------------------------------
# Kernel 2: fused embedding + interaction + fusion over one tile of nodes
# ---------------------------------------------------------------------------
def _layer_norm(y, gamma, beta):
    # One-pass LayerNorm: var = E[y^2] - E[y]^2 (single reduction sweep).
    mu = jnp.mean(y, axis=-1, keepdims=True)
    ms = jnp.mean(y * y, axis=-1, keepdims=True)
    var = jnp.maximum(ms - mu * mu, 0.0)
    return (y - mu) * jax.lax.rsqrt(var + EPS) * gamma + beta


def _n2n_kernel(h0_ref, wfc_ref, bias_ref, wint_ref, bint_ref,
                lng_ref, lnb_ref, o_ref):
    num_hop, rows, c = h0_ref.shape
    n_layers = wint_ref.shape[0]
    hidden = o_ref.shape[1]
    mm_dtype = wfc_ref.dtype          # bf16 (MXU) or f32; accumulation is f32
    m = num_hop * rows

    # Batch the hop axis into the matmul M dim: ONE MXU launch per layer
    # (weights are shared across hops) instead of num_hop of them.
    x2 = h0_ref[...].reshape(m, c)                          # layout-free merge
    h = jnp.dot(x2, wfc_ref[...], preferred_element_type=jnp.float32)
    # bias_ref = b_fc + hop_embedding, pre-folded per hop outside the kernel.
    h = h.reshape(num_hop, rows, hidden) + bias_ref[...][:, None, :]
    h = _layer_norm(h, lng_ref[0:1, :], lnb_ref[0:1, :]).reshape(m, hidden)

    # interaction: L x (Linear -> ReLU -> residual -> LayerNorm), hop-batched.
    for l in range(n_layers):                               # static unroll
        z = jnp.dot(h.astype(mm_dtype), wint_ref[l],
                    preferred_element_type=jnp.float32)
        z = jnp.maximum(z + bint_ref[l:l + 1, :], 0.0)      # mlp ReLU == activate
        h = _layer_norm(z + h, lng_ref[l + 1:l + 2, :], lnb_ref[l + 1:l + 2, :])

    # fusion: mean over hops + final LayerNorm
    h3 = h.reshape(num_hop, rows, hidden)
    acc = h3[0]
    for hop in range(1, num_hop):
        acc = acc + h3[hop]
    fused = acc * (1.0 / num_hop)
    out = _layer_norm(fused, lng_ref[n_layers + 1:n_layers + 2, :],
                      lnb_ref[n_layers + 1:n_layers + 2, :])
    o_ref[...] = out.astype(o_ref.dtype)


def _n2n_pallas(h0, w_fc, bias, w_int, b_int, ln_g, ln_b,
                *, block_rows, vmem_limit, single_buffer):
    num_hop, rows_pad, c = h0.shape
    hidden = w_fc.shape[1]
    grid = (rows_pad // block_rows,)

    # Grid-invariant parameters: double-buffering them is pure VMEM waste.
    w_kwargs = {"pipeline_mode": pl.Buffered(1)} if single_buffer else {}

    def const_spec(shape):
        imap = (lambda i: (0, 0)) if len(shape) == 2 else (lambda i: (0, 0, 0))
        return pl.BlockSpec(shape, imap, **w_kwargs)

    return pl.pallas_call(
        _n2n_kernel,
        out_shape=jax.ShapeDtypeStruct((rows_pad, hidden), jnp.float32),
        grid_spec=pltpu.PrefetchScalarGridSpec(
            num_scalar_prefetch=0,
            grid=grid,
            in_specs=[
                pl.BlockSpec((num_hop, block_rows, c), lambda i: (0, i, 0)),
                const_spec(w_fc.shape),
                const_spec(bias.shape),
                const_spec(w_int.shape),
                const_spec(b_int.shape),
                const_spec(ln_g.shape),
                const_spec(ln_b.shape),
            ],
            out_specs=pl.BlockSpec((block_rows, hidden), lambda i: (i, 0)),
        ),
        compiler_params=pltpu.CompilerParams(
            dimension_semantics=("parallel",),
            vmem_limit_bytes=int(vmem_limit)),
    )(h0, w_fc, bias, w_int, b_int, ln_g, ln_b)


# ---------------------------------------------------------------------------
# Jitted end-to-end forward (pad + cast + both pallas_calls under one trace)
# ---------------------------------------------------------------------------
@functools.partial(jax.jit,
                   static_argnames=("num_hop", "use_bf16", "single_buffer"))
def _n2n_forward_jit(adj, x, w_fc, b_fc, hop_emb, w_int, b_int, ln_g, ln_b,
                     *, num_hop, use_bf16, single_buffer):
    n, c = x.shape
    hidden = w_fc.shape[1]
    n_layers = w_int.shape[0]
    mm_dtype = jnp.bfloat16 if use_bf16 else jnp.float32
    mm_item = 2 if use_bf16 else 4

    budget, vmem_limit = _vmem_budget()
    n_buf = 1 if single_buffer else 2
    weight_bytes = n_buf * (
        (c * hidden + n_layers * hidden * hidden) * mm_item
        + 4 * (num_hop * hidden + n_layers * hidden
               + 2 * (n_layers + 2) * hidden))
    block_rows = _choose_block_rows(n, c, hidden, num_hop, mm_item,
                                    weight_bytes, budget)
    n_pad = _round_up(n, block_rows)
    tm = block_rows if block_rows <= 256 else 256     # divides block_rows

    adj_p, x_p = adj, x
    if n_pad != n:
        adj_p = jnp.pad(adj_p, ((0, n_pad - n), (0, n_pad - n)))
        x_p = jnp.pad(x_p, ((0, n_pad - n), (0, 0)))
    adj_p = adj_p.astype(mm_dtype)    # halves adj DMA/VMEM in bf16 mode
    x_p = x_p.astype(jnp.float32)     # hop chain accumulates in f32

    # Kernel 1: h0[k] = adj^k @ x, emitted directly in the matmul dtype.
    h0 = hop_preprocess(adj_p, x_p, num_hop, mm_dtype, tm, single_buffer,
                        vmem_limit)

    # Pre-fold fc bias + hop embedding into one per-hop bias (num_hop, hidden).
    bias = b_fc[None, :].astype(jnp.float32) + hop_emb.astype(jnp.float32)

    # TODO(synk): output could optionally be emitted in bf16 to halve the
    # output DMA stream if the downstream consumer tolerates it.
    out = _n2n_pallas(h0, w_fc.astype(mm_dtype), bias,
                      w_int.astype(mm_dtype), b_int.astype(jnp.float32),
                      ln_g.astype(jnp.float32), ln_b.astype(jnp.float32),
                      block_rows=block_rows, vmem_limit=vmem_limit,
                      single_buffer=single_buffer)
    return out[:n]


_SINGLE_BUFFER_OK = None   # cache: does this Pallas build accept pl.Buffered(1)?


def n2n_forward(adj, x, params, *, num_hop, use_bf16=True):
    """N2N forward (mlp interaction / ln norms / relu / mean fusion, eval).

    adj: [N, N] dense adjacency, x: [N, in_channels]. Returns [N, hidden]."""
    global _SINGLE_BUFFER_OK
    w_fc, b_fc, hop_emb, w_int, b_int, ln_g, ln_b = params
    args = (adj, x, w_fc, b_fc, hop_emb, w_int, b_int, ln_g, ln_b)

    if _SINGLE_BUFFER_OK is not False:
        try:
            out = _n2n_forward_jit(*args, num_hop=num_hop, use_bf16=use_bf16,
                                   single_buffer=True)
            _SINGLE_BUFFER_OK = True
            return out
        except Exception as first_err:
            # Some Pallas builds may reject pl.Buffered(1); retry with default
            # double-buffered weight specs, but surface the ORIGINAL error if
            # the fallback also fails (so genuine lowering / VMEM errors are
            # not masked by a confusing second failure).
            _SINGLE_BUFFER_OK = False
            try:
                return _n2n_forward_jit(*args, num_hop=num_hop,
                                        use_bf16=use_bf16, single_buffer=False)
            except Exception:
                raise first_err
    return _n2n_forward_jit(*args, num_hop=num_hop, use_bf16=use_bf16,
                            single_buffer=False)


# ---------------------------------------------------------------------------
# Pure-JAX reference (module semantics, f32, high-precision matmuls)
# ---------------------------------------------------------------------------
def n2n_reference(adj, x, params, *, num_hop):
    w_fc, b_fc, hop_emb, w_int, b_int, ln_g, ln_b = params
    n_layers = w_int.shape[0]

    def ln(y, g, b):
        mu = jnp.mean(y, axis=-1, keepdims=True)
        var = jnp.mean((y - mu) ** 2, axis=-1, keepdims=True)
        return (y - mu) / jnp.sqrt(var + EPS) * g + b

    # preprocess: stack hops (PyTorch layout [N, num_hop, C])
    hops, cur = [], x
    for _ in range(num_hop):
        hops.append(cur)
        cur = jnp.matmul(adj, cur, precision=_HIGHEST)
    h = jnp.stack(hops, axis=1)
    # embedding
    h = jnp.matmul(h, w_fc, precision=_HIGHEST) + b_fc + hop_emb[None, :, :]
    h = ln(h, ln_g[0], ln_b[0])
    # interaction
    for l in range(n_layers):
        z = jnp.maximum(jnp.matmul(h, w_int[l], precision=_HIGHEST) + b_int[l],
                        0.0)                       # mlp: Linear + ReLU
        z = jnp.maximum(z, 0.0)                    # activate = relu
        h = ln(z + h, ln_g[l + 1], ln_b[l + 1])
    # fusion: mean over hops + final LayerNorm
    h = h.mean(axis=1)
    return ln(h, ln_g[n_layers + 1], ln_b[n_layers + 1])


if __name__ == "__main__":
    # Small but lane-dense demo shapes (feature dims multiple of 128).
    N, C, HIDDEN, NUM_HOP, LAYERS = 64, 128, 128, 4, 2

    key = jax.random.PRNGKey(0)
    kx, kfw, kfb, khop, kiw, kib, kg, kb = jax.random.split(key, 8)

    x = jax.random.normal(kx, (N, C), dtype=jnp.float32)

    # Deterministic ring adjacency (stand-in for the densified DGL graph).
    idx = jnp.arange(N)
    adj = (jnp.zeros((N, N), jnp.float32)
           .at[idx, (idx + 1) % N].set(1.0)
           .at[idx, (idx - 1) % N].set(1.0))

    # PyTorch-default-style parameter init.
    bc = 1.0 / float(jnp.sqrt(jnp.float32(C)))
    bh = 1.0 / float(jnp.sqrt(jnp.float32(HIDDEN)))
    w_fc = jax.random.uniform(kfw, (C, HIDDEN), jnp.float32, -bc, bc)
    b_fc = jax.random.uniform(kfb, (HIDDEN,), jnp.float32, -bc, bc)
    hop_emb = jax.random.normal(khop, (NUM_HOP, HIDDEN), dtype=jnp.float32)
    w_int = jax.random.uniform(kiw, (LAYERS, HIDDEN, HIDDEN), jnp.float32, -bh, bh)
    b_int = jax.random.uniform(kib, (LAYERS, HIDDEN), jnp.float32, -bh, bh)
    # LayerNorm affine (module init is 1/0; perturb to exercise the affine path).
    ln_g = 1.0 + 0.05 * jax.random.normal(kg, (LAYERS + 2, HIDDEN), jnp.float32)
    ln_b = 0.05 * jax.random.normal(kb, (LAYERS + 2, HIDDEN), jnp.float32)

    params = (w_fc, b_fc, hop_emb, w_int, b_int, ln_g, ln_b)

    ref = n2n_reference(adj, x, params, num_hop=NUM_HOP)

    # f32 MXU path: tight check against the pure-JAX reference.
    out_f32 = jax.block_until_ready(
        n2n_forward(adj, x, params, num_hop=NUM_HOP, use_bf16=False))
    assert out_f32.shape == (N, HIDDEN)
    assert jnp.allclose(out_f32, ref, atol=2e-3, rtol=2e-3), "f32 kernel mismatch"

    # bf16 MXU operands + f32 accumulation (the performance path).
    out_bf16 = jax.block_until_ready(
        n2n_forward(adj, x, params, num_hop=NUM_HOP, use_bf16=True))
    assert out_bf16.shape == (N, HIDDEN)
    assert jnp.allclose(out_bf16, ref, atol=5e-2, rtol=5e-2), "bf16 kernel mismatch"

    print("KERNEL_OK")
</pallas_src>

<mosaic_0001>
module attributes {stable_mosaic.version = 11 : i64} {
  func.func @_n2n_kernel(%arg0: i32, %arg1: memref<4x32x128xf32, #tpu.memory_space<vmem>>, %arg2: memref<128x128xf32, #tpu.memory_space<vmem>>, %arg3: memref<4x128xf32, #tpu.memory_space<vmem>>, %arg4: memref<2x128x128xf32, #tpu.memory_space<vmem>>, %arg5: memref<2x128xf32, #tpu.memory_space<vmem>>, %arg6: memref<4x128xf32, #tpu.memory_space<vmem>>, %arg7: memref<4x128xf32, #tpu.memory_space<vmem>>, %arg8: memref<32x128xf32, #tpu.memory_space<vmem>>) attributes {dimension_semantics = [#tpu.dimension_semantics<parallel>], iteration_bounds = array<i64: 2>, scalar_prefetch = 0 : i64, scratch_operands = 0 : i64, tpu.core_type = #tpu.core_type<tc>, window_params = [{transform_indices = @transform_0, window_bounds = array<i64: 4, 32, 128>}, {pipeline_mode = #tpu.pipeline_mode<synchronous>, transform_indices = @transform_1, window_bounds = array<i64: 128, 128>}, {pipeline_mode = #tpu.pipeline_mode<synchronous>, transform_indices = @transform_2, window_bounds = array<i64: 4, 128>}, {pipeline_mode = #tpu.pipeline_mode<synchronous>, transform_indices = @transform_3, window_bounds = array<i64: 2, 128, 128>}, {pipeline_mode = #tpu.pipeline_mode<synchronous>, transform_indices = @transform_4, window_bounds = array<i64: 2, 128>}, {pipeline_mode = #tpu.pipeline_mode<synchronous>, transform_indices = @transform_5, window_bounds = array<i64: 4, 128>}, {pipeline_mode = #tpu.pipeline_mode<synchronous>, transform_indices = @transform_6, window_bounds = array<i64: 4, 128>}, {transform_indices = @transform_7, window_bounds = array<i64: 32, 128>}]} {
    %c0 = arith.constant 0 : index
    %c0_0 = arith.constant 0 : index
    %c0_1 = arith.constant 0 : index
    %0 = vector.load %arg1[%c0, %c0_0, %c0_1] : memref<4x32x128xf32, #tpu.memory_space<vmem>>, vector<4x32x128xf32>
    %1 = vector.shape_cast %0 : vector<4x32x128xf32> to vector<128x128xf32>
    %c0_2 = arith.constant 0 : index
    %c0_3 = arith.constant 0 : index
    %2 = vector.load %arg2[%c0_2, %c0_3] : memref<128x128xf32, #tpu.memory_space<vmem>>, vector<128x128xf32>
    %cst = arith.constant dense<0.000000e+00> : vector<128x128xf32>
    %3 = tpu.matmul %1, %2, %cst {dimension_numbers = #tpu.dot_dimension_numbers<[1], [0], [0], [1], [0, 0, 1, 1], [], []>} : vector<128x128xf32>, vector<128x128xf32>, vector<128x128xf32> -> vector<128x128xf32>
    %4 = vector.shape_cast %3 : vector<128x128xf32> to vector<4x32x128xf32>
    %c0_4 = arith.constant 0 : index
    %c0_5 = arith.constant 0 : index
    %5 = vector.load %arg3[%c0_4, %c0_5] : memref<4x128xf32, #tpu.memory_space<vmem>>, vector<4x128xf32>
    %6 = vector.shape_cast %5 : vector<4x128xf32> to vector<4x1x128xf32>
    %7 = vector.broadcast %6 : vector<4x1x128xf32> to vector<4x32x128xf32>
    %8 = arith.addf %4, %7 : vector<4x32x128xf32>
    %c0_6 = arith.constant 0 : index
    %c0_7 = arith.constant 0 : index
    %9 = vector.load %arg6[%c0_6, %c0_7] : memref<4x128xf32, #tpu.memory_space<vmem>>, vector<1x128xf32>
    %c0_8 = arith.constant 0 : index
    %c0_9 = arith.constant 0 : index
    %10 = vector.load %arg7[%c0_8, %c0_9] : memref<4x128xf32, #tpu.memory_space<vmem>>, vector<1x128xf32>
    %cst_10 = arith.constant dense<0.000000e+00> : vector<4x32xf32>
    %11 = vector.multi_reduction <add>, %8, %cst_10 [2] : vector<4x32x128xf32> to vector<4x32xf32>
    %12 = vector.shape_cast %11 : vector<4x32xf32> to vector<4x32x1xf32>
    %cst_11 = arith.constant 1.280000e+02 : f32
    %13 = vector.broadcast %cst_11 : f32 to vector<4x32x1xf32>
    %14 = arith.divf %12, %13 : vector<4x32x1xf32>
    %15 = arith.mulf %8, %8 : vector<4x32x128xf32>
    %cst_12 = arith.constant dense<0.000000e+00> : vector<4x32xf32>
    %16 = vector.multi_reduction <add>, %15, %cst_12 [2] : vector<4x32x128xf32> to vector<4x32xf32>
    %17 = vector.shape_cast %16 : vector<4x32xf32> to vector<4x32x1xf32>
    %cst_13 = arith.constant 1.280000e+02 : f32
    %18 = vector.broadcast %cst_13 : f32 to vector<4x32x1xf32>
    %19 = arith.divf %17, %18 : vector<4x32x1xf32>
    %20 = arith.mulf %14, %14 : vector<4x32x1xf32>
    %21 = arith.subf %19, %20 : vector<4x32x1xf32>
    %cst_14 = arith.constant 0.000000e+00 : f32
    %22 = vector.broadcast %cst_14 : f32 to vector<4x32x1xf32>
    %23 = arith.maximumf %21, %22 : vector<4x32x1xf32>
    %24 = vector.broadcast %14 : vector<4x32x1xf32> to vector<4x32x128xf32>
    %25 = arith.subf %8, %24 : vector<4x32x128xf32>
    %cst_15 = arith.constant 9.99999974E-6 : f32
    %26 = vector.broadcast %cst_15 : f32 to vector<4x32x1xf32>
    %27 = arith.addf %23, %26 : vector<4x32x1xf32>
    %28 = math.rsqrt %27 : vector<4x32x1xf32>
    %29 = vector.broadcast %28 : vector<4x32x1xf32> to vector<4x32x128xf32>
    %30 = arith.mulf %25, %29 : vector<4x32x128xf32>
    %31 = vector.shape_cast %9 : vector<1x128xf32> to vector<1x1x128xf32>
    %32 = vector.broadcast %31 : vector<1x1x128xf32> to vector<4x32x128xf32>
    %33 = arith.mulf %30, %32 : vector<4x32x128xf32>
    %34 = vector.shape_cast %10 : vector<1x128xf32> to vector<1x1x128xf32>
    %35 = vector.broadcast %34 : vector<1x1x128xf32> to vector<4x32x128xf32>
    %36 = arith.addf %33, %35 : vector<4x32x128xf32>
    %37 = vector.shape_cast %36 : vector<4x32x128xf32> to vector<128x128xf32>
    %c0_16 = arith.constant 0 : index
    %c0_17 = arith.constant 0 : index
    %c0_18 = arith.constant 0 : index
    %38 = vector.load %arg4[%c0_16, %c0_17, %c0_18] : memref<2x128x128xf32, #tpu.memory_space<vmem>>, vector<1x128x128xf32>
    %39 = vector.shape_cast %38 : vector<1x128x128xf32> to vector<128x128xf32>
    %cst_19 = arith.constant dense<0.000000e+00> : vector<128x128xf32>
    %40 = tpu.matmul %37, %39, %cst_19 {dimension_numbers = #tpu.dot_dimension_numbers<[1], [0], [0], [1], [0, 0, 1, 1], [], []>} : vector<128x128xf32>, vector<128x128xf32>, vector<128x128xf32> -> vector<128x128xf32>
    %c0_20 = arith.constant 0 : index
    %c0_21 = arith.constant 0 : index
    %41 = vector.load %arg5[%c0_20, %c0_21] : memref<2x128xf32, #tpu.memory_space<vmem>>, vector<1x128xf32>
    %42 = vector.broadcast %41 : vector<1x128xf32> to vector<128x128xf32>
    %43 = arith.addf %40, %42 : vector<128x128xf32>
    %cst_22 = arith.constant 0.000000e+00 : f32
    %44 = vector.broadcast %cst_22 : f32 to vector<128x128xf32>
    %45 = arith.maximumf %43, %44 : vector<128x128xf32>
    %46 = arith.addf %45, %37 : vector<128x128xf32>
    %c1 = arith.constant 1 : index
    %c0_23 = arith.constant 0 : index
    %47 = vector.load %arg6[%c1, %c0_23] : memref<4x128xf32, #tpu.memory_space<vmem>>, vector<1x128xf32>
    %c1_24 = arith.constant 1 : index
    %c0_25 = arith.constant 0 : index
    %48 = vector.load %arg7[%c1_24, %c0_25] : memref<4x128xf32, #tpu.memory_space<vmem>>, vector<1x128xf32>
    %cst_26 = arith.constant dense<0.000000e+00> : vector<128xf32>
    %49 = vector.multi_reduction <add>, %46, %cst_26 [1] : vector<128x128xf32> to vector<128xf32>
    %50 = vector.shape_cast %49 : vector<128xf32> to vector<128x1xf32>
    %cst_27 = arith.constant 1.280000e+02 : f32
    %51 = vector.broadcast %cst_27 : f32 to vector<128x1xf32>
    %52 = arith.divf %50, %51 : vector<128x1xf32>
    %53 = arith.mulf %46, %46 : vector<128x128xf32>
    %cst_28 = arith.constant dense<0.000000e+00> : vector<128xf32>
    %54 = vector.multi_reduction <add>, %53, %cst_28 [1] : vector<128x128xf32> to vector<128xf32>
    %55 = vector.shape_cast %54 : vector<128xf32> to vector<128x1xf32>
    %cst_29 = arith.constant 1.280000e+02 : f32
    %56 = vector.broadcast %cst_29 : f32 to vector<128x1xf32>
    %57 = arith.divf %55, %56 : vector<128x1xf32>
    %58 = arith.mulf %52, %52 : vector<128x1xf32>
    %59 = arith.subf %57, %58 : vector<128x1xf32>
    %cst_30 = arith.constant 0.000000e+00 : f32
    %60 = vector.broadcast %cst_30 : f32 to vector<128x1xf32>
    %61 = arith.maximumf %59, %60 : vector<128x1xf32>
    %62 = vector.broadcast %52 : vector<128x1xf32> to vector<128x128xf32>
    %63 = arith.subf %46, %62 : vector<128x128xf32>
    %cst_31 = arith.constant 9.99999974E-6 : f32
    %64 = vector.broadcast %cst_31 : f32 to vector<128x1xf32>
    %65 = arith.addf %61, %64 : vector<128x1xf32>
    %66 = math.rsqrt %65 : vector<128x1xf32>
    %67 = vector.broadcast %66 : vector<128x1xf32> to vector<128x128xf32>
    %68 = arith.mulf %63, %67 : vector<128x128xf32>
    %69 = vector.broadcast %47 : vector<1x128xf32> to vector<128x128xf32>
    %70 = arith.mulf %68, %69 : vector<128x128xf32>
    %71 = vector.broadcast %48 : vector<1x128xf32> to vector<128x128xf32>
    %72 = arith.addf %70, %71 : vector<128x128xf32>
    %c1_32 = arith.constant 1 : index
    %c0_33 = arith.constant 0 : index
    %c0_34 = arith.constant 0 : index
    %73 = vector.load %arg4[%c1_32, %c0_33, %c0_34] : memref<2x128x128xf32, #tpu.memory_space<vmem>>, vector<1x128x128xf32>
    %74 = vector.shape_cast %73 : vector<1x128x128xf32> to vector<128x128xf32>
    %cst_35 = arith.constant dense<0.000000e+00> : vector<128x128xf32>
    %75 = tpu.matmul %72, %74, %cst_35 {dimension_numbers = #tpu.dot_dimension_numbers<[1], [0], [0], [1], [0, 0, 1, 1], [], []>} : vector<128x128xf32>, vector<128x128xf32>, vector<128x128xf32> -> vector<128x128xf32>
    %c1_36 = arith.constant 1 : index
    %c0_37 = arith.constant 0 : index
    %76 = vector.load %arg5[%c1_36, %c0_37] : memref<2x128xf32, #tpu.memory_space<vmem>>, vector<1x128xf32>
    %77 = vector.broadcast %76 : vector<1x128xf32> to vector<128x128xf32>
    %78 = arith.addf %75, %77 : vector<128x128xf32>
    %cst_38 = arith.constant 0.000000e+00 : f32
    %79 = vector.broadcast %cst_38 : f32 to vector<128x128xf32>
    %80 = arith.maximumf %78, %79 : vector<128x128xf32>
    %81 = arith.addf %80, %72 : vector<128x128xf32>
    %c2 = arith.constant 2 : index
    %c0_39 = arith.constant 0 : index
    %82 = vector.load %arg6[%c2, %c0_39] : memref<4x128xf32, #tpu.memory_space<vmem>>, vector<1x128xf32>
    %c2_40 = arith.constant 2 : index
    %c0_41 = arith.constant 0 : index
    %83 = vector.load %arg7[%c2_40, %c0_41] : memref<4x128xf32, #tpu.memory_space<vmem>>, vector<1x128xf32>
    %cst_42 = arith.constant dense<0.000000e+00> : vector<128xf32>
    %84 = vector.multi_reduction <add>, %81, %cst_42 [1] : vector<128x128xf32> to vector<128xf32>
    %85 = vector.shape_cast %84 : vector<128xf32> to vector<128x1xf32>
    %cst_43 = arith.constant 1.280000e+02 : f32
    %86 = vector.broadcast %cst_43 : f32 to vector<128x1xf32>
    %87 = arith.divf %85, %86 : vector<128x1xf32>
    %88 = arith.mulf %81, %81 : vector<128x128xf32>
    %cst_44 = arith.constant dense<0.000000e+00> : vector<128xf32>
    %89 = vector.multi_reduction <add>, %88, %cst_44 [1] : vector<128x128xf32> to vector<128xf32>
    %90 = vector.shape_cast %89 : vector<128xf32> to vector<128x1xf32>
    %cst_45 = arith.constant 1.280000e+02 : f32
    %91 = vector.broadcast %cst_45 : f32 to vector<128x1xf32>
    %92 = arith.divf %90, %91 : vector<128x1xf32>
    %93 = arith.mulf %87, %87 : vector<128x1xf32>
    %94 = arith.subf %92, %93 : vector<128x1xf32>
    %cst_46 = arith.constant 0.000000e+00 : f32
    %95 = vector.broadcast %cst_46 : f32 to vector<128x1xf32>
    %96 = arith.maximumf %94, %95 : vector<128x1xf32>
    %97 = vector.broadcast %87 : vector<128x1xf32> to vector<128x128xf32>
    %98 = arith.subf %81, %97 : vector<128x128xf32>
    %cst_47 = arith.constant 9.99999974E-6 : f32
    %99 = vector.broadcast %cst_47 : f32 to vector<128x1xf32>
    %100 = arith.addf %96, %99 : vector<128x1xf32>
    %101 = math.rsqrt %100 : vector<128x1xf32>
    %102 = vector.broadcast %101 : vector<128x1xf32> to vector<128x128xf32>
    %103 = arith.mulf %98, %102 : vector<128x128xf32>
    %104 = vector.broadcast %82 : vector<1x128xf32> to vector<128x128xf32>
    %105 = arith.mulf %103, %104 : vector<128x128xf32>
    %106 = vector.broadcast %83 : vector<1x128xf32> to vector<128x128xf32>
    %107 = arith.addf %105, %106 : vector<128x128xf32>
    %108 = vector.shape_cast %107 : vector<128x128xf32> to vector<4x32x128xf32>
    %109 = vector.extract_strided_slice %108 {offsets = [0, 0, 0], sizes = [1, 32, 128], strides = [1, 1, 1]} : vector<4x32x128xf32> to vector<1x32x128xf32>
    %110 = vector.shape_cast %109 : vector<1x32x128xf32> to vector<32x128xf32>
    %111 = vector.extract_strided_slice %108 {offsets = [1, 0, 0], sizes = [1, 32, 128], strides = [1, 1, 1]} : vector<4x32x128xf32> to vector<1x32x128xf32>
    %112 = vector.shape_cast %111 : vector<1x32x128xf32> to vector<32x128xf32>
    %113 = arith.addf %110, %112 : vector<32x128xf32>
    %114 = vector.extract_strided_slice %108 {offsets = [2, 0, 0], sizes = [1, 32, 128], strides = [1, 1, 1]} : vector<4x32x128xf32> to vector<1x32x128xf32>
    %115 = vector.shape_cast %114 : vector<1x32x128xf32> to vector<32x128xf32>
    %116 = arith.addf %113, %115 : vector<32x128xf32>
    %117 = vector.extract_strided_slice %108 {offsets = [3, 0, 0], sizes = [1, 32, 128], strides = [1, 1, 1]} : vector<4x32x128xf32> to vector<1x32x128xf32>
    %118 = vector.shape_cast %117 : vector<1x32x128xf32> to vector<32x128xf32>
    %119 = arith.addf %116, %118 : vector<32x128xf32>
    %cst_48 = arith.constant 2.500000e-01 : f32
    %120 = vector.broadcast %cst_48 : f32 to vector<32x128xf32>
    %121 = arith.mulf %119, %120 : vector<32x128xf32>
    %c3 = arith.constant 3 : index
    %c0_49 = arith.constant 0 : index
    %122 = vector.load %arg6[%c3, %c0_49] : memref<4x128xf32, #tpu.memory_space<vmem>>, vector<1x128xf32>
    %c3_50 = arith.constant 3 : index
    %c0_51 = arith.constant 0 : index
    %123 = vector.load %arg7[%c3_50, %c0_51] : memref<4x128xf32, #tpu.memory_space<vmem>>, vector<1x128xf32>
    %cst_52 = arith.constant dense<0.000000e+00> : vector<32xf32>
    %124 = vector.multi_reduction <add>, %121, %cst_52 [1] : vector<32x128xf32> to vector<32xf32>
    %125 = vector.shape_cast %124 : vector<32xf32> to vector<32x1xf32>
    %cst_53 = arith.constant 1.280000e+02 : f32
    %126 = vector.broadcast %cst_53 : f32 to vector<32x1xf32>
    %127 = arith.divf %125, %126 : vector<32x1xf32>
    %128 = arith.mulf %121, %121 : vector<32x128xf32>
    %cst_54 = arith.constant dense<0.000000e+00> : vector<32xf32>
    %129 = vector.multi_reduction <add>, %128, %cst_54 [1] : vector<32x128xf32> to vector<32xf32>
    %130 = vector.shape_cast %129 : vector<32xf32> to vector<32x1xf32>
    %cst_55 = arith.constant 1.280000e+02 : f32
    %131 = vector.broadcast %cst_55 : f32 to vector<32x1xf32>
    %132 = arith.divf %130, %131 : vector<32x1xf32>
    %133 = arith.mulf %127, %127 : vector<32x1xf32>
    %134 = arith.subf %132, %133 : vector<32x1xf32>
    %cst_56 = arith.constant 0.000000e+00 : f32
    %135 = vector.broadcast %cst_56 : f32 to vector<32x1xf32>
    %136 = arith.maximumf %134, %135 : vector<32x1xf32>
    %137 = vector.broadcast %127 : vector<32x1xf32> to vector<32x128xf32>
    %138 = arith.subf %121, %137 : vector<32x128xf32>
    %cst_57 = arith.constant 9.99999974E-6 : f32
    %139 = vector.broadcast %cst_57 : f32 to vector<32x1xf32>
    %140 = arith.addf %136, %139 : vector<32x1xf32>
    %141 = math.rsqrt %140 : vector<32x1xf32>
    %142 = vector.broadcast %141 : vector<32x1xf32> to vector<32x128xf32>
    %143 = arith.mulf %138, %142 : vector<32x128xf32>
    %144 = vector.broadcast %122 : vector<1x128xf32> to vector<32x128xf32>
    %145 = arith.mulf %143, %144 : vector<32x128xf32>
    %146 = vector.broadcast %123 : vector<1x128xf32> to vector<32x128xf32>
    %147 = arith.addf %145, %146 : vector<32x128xf32>
    %c0_58 = arith.constant 0 : index
    %c0_59 = arith.constant 0 : index
    %148 = vector.load %arg8[%c0_58, %c0_59] : memref<32x128xf32, #tpu.memory_space<vmem>>, vector<32x128xf32>
    tpu.vector_store %arg8[%c0_58, %c0_59], %147 {strides = array<i32>} : memref<32x128xf32, #tpu.memory_space<vmem>>, vector<32x128xf32>,
    return
  }
  func.func @transform_0(%arg0: i32) -> (i32, i32, i32) {
    %c0_i32 = arith.constant 0 : i32
    %c0_i32_0 = arith.constant 0 : i32
    %c0_i32_1 = arith.constant 0 : i32
    return %c0_i32, %arg0, %c0_i32_0 : i32, i32, i32
  }
  func.func @transform_1(%arg0: i32) -> (i32, i32) {
    %c0_i32 = arith.constant 0 : i32
    %c0_i32_0 = arith.constant 0 : i32
    %c0_i32_1 = arith.constant 0 : i32
    return %c0_i32, %c0_i32_0 : i32, i32
  }
  func.func @transform_2(%arg0: i32) -> (i32, i32) {
    %c0_i32 = arith.constant 0 : i32
    %c0_i32_0 = arith.constant 0 : i32
    %c0_i32_1 = arith.constant 0 : i32
    return %c0_i32, %c0_i32_0 : i32, i32
  }
  func.func @transform_3(%arg0: i32) -> (i32, i32, i32) {
    %c0_i32 = arith.constant 0 : i32
    %c0_i32_0 = arith.constant 0 : i32
    %c0_i32_1 = arith.constant 0 : i32
    %c0_i32_2 = arith.constant 0 : i32
    return %c0_i32, %c0_i32_0, %c0_i32_1 : i32, i32, i32
  }
  func.func @transform_4(%arg0: i32) -> (i32, i32) {
    %c0_i32 = arith.constant 0 : i32
    %c0_i32_0 = arith.constant 0 : i32
    %c0_i32_1 = arith.constant 0 : i32
    return %c0_i32, %c0_i32_0 : i32, i32
  }
  func.func @transform_5(%arg0: i32) -> (i32, i32) {
    %c0_i32 = arith.constant 0 : i32
    %c0_i32_0 = arith.constant 0 : i32
    %c0_i32_1 = arith.constant 0 : i32
    return %c0_i32, %c0_i32_0 : i32, i32
  }
  func.func @transform_6(%arg0: i32) -> (i32, i32) {
    %c0_i32 = arith.constant 0 : i32
    %c0_i32_0 = arith.constant 0 : i32
    %c0_i32_1 = arith.constant 0 : i32
    return %c0_i32, %c0_i32_0 : i32, i32
  }
  func.func @transform_7(%arg0: i32) -> (i32, i32) {
    %c0_i32 = arith.constant 0 : i32
    %c0_i32_0 = arith.constant 0 : i32
    return %arg0, %c0_i32 : i32, i32
  }
}

module attributes {stable_mosaic.version = 11 : i64} {
  func.func @_hop_stack_kernel(%arg0: i32, %arg1: i32, %arg2: memref<32x64xf32, #tpu.memory_space<vmem>>, %arg3: memref<64x128xf32, #tpu.memory_space<vmem>>, %arg4: memref<1x32x128xf32, #tpu.memory_space<vmem>>, %arg5: memref<2x64x128xf32, #tpu.memory_space<vmem>>) attributes {dimension_semantics = [#tpu.dimension_semantics<arbitrary>, #tpu.dimension_semantics<arbitrary>], iteration_bounds = array<i64: 4, 2>, scalar_prefetch = 0 : i64, scratch_operands = 1 : i64, tpu.core_type = #tpu.core_type<tc>, window_params = [{transform_indices = @transform_0, window_bounds = array<i64: 32, 64>}, {pipeline_mode = #tpu.pipeline_mode<synchronous>, transform_indices = @transform_1, window_bounds = array<i64: 64, 128>}, {transform_indices = @transform_2, window_bounds = array<i64: 1, 32, 128>}]} {
    %c32_i32 = arith.constant 32 : i32
    %0 = arith.muli %arg1, %c32_i32 : i32
    %1 = tpu.assume_multiple %0, 32 : i32
    %c1_i32 = arith.constant 1 : i32
    %2 = arith.andi %arg0, %c1_i32 : i32
    %c0_i32 = arith.constant 0 : i32
    %3 = arith.cmpi eq, %arg0, %c0_i32 : i32
    %c0_i32_0 = arith.constant 0 : i32
    %4 = arith.cmpi eq, %arg1, %c0_i32_0 : i32
    %5 = arith.andi %3, %4 : i1
    %6 = arith.extui %5 : i1 to i32
    %c0_i32_1 = arith.constant 0 : i32
    %7 = arith.cmpi ne, %6, %c0_i32_1 : i32
    scf.if %7 {
      %c0_8 = arith.constant 0 : index
      %c0_9 = arith.constant 0 : index
      %18 = vector.load %arg3[%c0_8, %c0_9] : memref<64x128xf32, #tpu.memory_space<vmem>>, vector<64x128xf32>
      %c0_10 = arith.constant 0 : index
      %c0_11 = arith.constant 0 : index
      %c0_12 = arith.constant 0 : index
      %19 = vector.load %arg5[%c0_10, %c0_11, %c0_12] : memref<2x64x128xf32, #tpu.memory_space<vmem>>, vector<1x64x128xf32>
      %20 = vector.shape_cast %19 : vector<1x64x128xf32> to vector<64x128xf32>
      %21 = vector.shape_cast %18 : vector<64x128xf32> to vector<1x64x128xf32>
      tpu.vector_store %arg5[%c0_10, %c0_11, %c0_12], %21 {strides = array<i32>} : memref<2x64x128xf32, #tpu.memory_space<vmem>>, vector<1x64x128xf32>,
    } else {
    }
    %c0_i32_2 = arith.constant 0 : i32
    %c0_i32_3 = arith.constant 0 : i32
    %8 = tpu.memref_slice %arg5[%2, %c0_i32_2, %c0_i32_3] : memref<2x64x128xf32, #tpu.memory_space<vmem>> -> memref<1x64x128xf32, #tpu.memory_space<vmem>>
    %9 = tpu.memref_squeeze %8 : memref<1x64x128xf32, #tpu.memory_space<vmem>> -> memref<64x128xf32, #tpu.memory_space<vmem>>
    %10 = arith.index_cast %1 : i32 to index
    %c0 = arith.constant 0 : index
    %11 = vector.load %9[%10, %c0] : memref<64x128xf32, #tpu.memory_space<vmem>>, vector<32x128xf32>
    %c0_4 = arith.constant 0 : index
    %c0_5 = arith.constant 0 : index
    %c0_6 = arith.constant 0 : index
    %12 = vector.load %arg4[%c0_4, %c0_5, %c0_6] : memref<1x32x128xf32, #tpu.memory_space<vmem>>, vector<1x32x128xf32>
    %13 = vector.shape_cast %12 : vector<1x32x128xf32> to vector<32x128xf32>
    %14 = vector.shape_cast %11 : vector<32x128xf32> to vector<1x32x128xf32>
    tpu.vector_store %arg4[%c0_4, %c0_5, %c0_6], %14 {strides = array<i32>} : memref<1x32x128xf32, #tpu.memory_space<vmem>>, vector<1x32x128xf32>,
    %c3_i32 = arith.constant 3 : i32
    %15 = arith.cmpi slt, %arg0, %c3_i32 : i32
    %16 = arith.extui %15 : i1 to i32
    %c0_i32_7 = arith.constant 0 : i32
    %17 = arith.cmpi ne, %16, %c0_i32_7 : i32
    scf.if %17 {
      %c0_8 = arith.constant 0 : index
      %c0_9 = arith.constant 0 : index
      %18 = vector.load %arg2[%c0_8, %c0_9] : memref<32x64xf32, #tpu.memory_space<vmem>>, vector<32x64xf32>
      %19 = arith.index_cast %2 : i32 to index
      %c0_10 = arith.constant 0 : index
      %c0_11 = arith.constant 0 : index
      %20 = vector.load %arg5[%19, %c0_10, %c0_11] : memref<2x64x128xf32, #tpu.memory_space<vmem>>, vector<1x64x128xf32>
      %21 = vector.shape_cast %20 : vector<1x64x128xf32> to vector<64x128xf32>
      %cst = arith.constant dense<0.000000e+00> : vector<32x128xf32>
      %22 = tpu.matmul %18, %21, %cst {dimension_numbers = #tpu.dot_dimension_numbers<[1], [0], [0], [1], [0, 0, 1, 1], [], []>} : vector<32x64xf32>, vector<64x128xf32>, vector<32x128xf32> -> vector<32x128xf32>
      %c1_i32_12 = arith.constant 1 : i32
      %23 = arith.subi %c1_i32_12, %2 : i32
      %c0_i32_13 = arith.constant 0 : i32
      %c0_i32_14 = arith.constant 0 : i32
      %24 = tpu.memref_slice %arg5[%23, %c0_i32_13, %c0_i32_14] : memref<2x64x128xf32, #tpu.memory_space<vmem>> -> memref<1x64x128xf32, #tpu.memory_space<vmem>>
      %25 = tpu.memref_squeeze %24 : memref<1x64x128xf32, #tpu.memory_space<vmem>> -> memref<64x128xf32, #tpu.memory_space<vmem>>
      %26 = arith.index_cast %1 : i32 to index
      %c0_15 = arith.constant 0 : index
      %27 = vector.load %25[%26, %c0_15] : memref<64x128xf32, #tpu.memory_space<vmem>>, vector<32x128xf32>
      tpu.vector_store %25[%26, %c0_15], %22 {strides = array<i32>} : memref<64x128xf32, #tpu.memory_space<vmem>>, vector<32x128xf32>,
    } else {
    }
    return
  }
  func.func @transform_0(%arg0: i32, %arg1: i32) -> (i32, i32) {
    %c0_i32 = arith.constant 0 : i32
    %c0_i32_0 = arith.constant 0 : i32
    return %arg1, %c0_i32 : i32, i32
  }
  func.func @transform_1(%arg0: i32, %arg1: i32) -> (i32, i32) {
    %c0_i32 = arith.constant 0 : i32
    %c0_i32_0 = arith.constant 0 : i32
    %c0_i32_1 = arith.constant 0 : i32
    return %c0_i32, %c0_i32_0 : i32, i32
  }
  func.func @transform_2(%arg0: i32, %arg1: i32) -> (i32, i32, i32) {
    %c0_i32 = arith.constant 0 : i32
    %c0_i32_0 = arith.constant 0 : i32
    return %arg0, %arg1, %c0_i32 : i32, i32, i32
  }
}

module attributes {stable_mosaic.version = 11 : i64} {
  func.func @_hop_stack_kernel(%arg0: i32, %arg1: i32, %arg2: memref<32x64xf32, #tpu.memory_space<vmem>>, %arg3: memref<64x128xf32, #tpu.memory_space<vmem>>, %arg4: memref<1x32x128xf32, #tpu.memory_space<vmem>>, %arg5: memref<2x64x128xf32, #tpu.memory_space<vmem>>) attributes {dimension_semantics = [#tpu.dimension_semantics<arbitrary>, #tpu.dimension_semantics<arbitrary>], iteration_bounds = array<i64: 4, 2>, scalar_prefetch = 0 : i64, scratch_operands = 1 : i64, tpu.core_type = #tpu.core_type<tc>, window_params = [{transform_indices = @transform_0, window_bounds = array<i64: 32, 64>}, {pipeline_mode = #tpu.pipeline_mode<synchronous>, transform_indices = @transform_1, window_bounds = array<i64: 64, 128>}, {transform_indices = @transform_2, window_bounds = array<i64: 1, 32, 128>}]} {
    %c32_i32 = arith.constant 32 : i32
    %0 = arith.muli %arg1, %c32_i32 : i32
    %1 = tpu.assume_multiple %0, 32 : i32
    %c1_i32 = arith.constant 1 : i32
    %2 = arith.andi %arg0, %c1_i32 : i32
    %c0_i32 = arith.constant 0 : i32
    %3 = arith.cmpi eq, %arg0, %c0_i32 : i32
    %c0_i32_0 = arith.constant 0 : i32
    %4 = arith.cmpi eq, %arg1, %c0_i32_0 : i32
    %5 = arith.andi %3, %4 : i1
    %6 = arith.extui %5 : i1 to i32
    %c0_i32_1 = arith.constant 0 : i32
    %7 = arith.cmpi ne, %6, %c0_i32_1 : i32
    scf.if %7 {
      %c0_8 = arith.constant 0 : index
      %c0_9 = arith.constant 0 : index
      %18 = vector.load %arg3[%c0_8, %c0_9] : memref<64x128xf32, #tpu.memory_space<vmem>>, vector<64x128xf32>
      %c0_10 = arith.constant 0 : index
      %c0_11 = arith.constant 0 : index
      %c0_12 = arith.constant 0 : index
      %19 = vector.load %arg5[%c0_10, %c0_11, %c0_12] : memref<2x64x128xf32, #tpu.memory_space<vmem>>, vector<1x64x128xf32>
      %20 = vector.shape_cast %19 : vector<1x64x128xf32> to vector<64x128xf32>
      %21 = vector.shape_cast %18 : vector<64x128xf32> to vector<1x64x128xf32>
      tpu.vector_store %arg5[%c0_10, %c0_11, %c0_12], %21 {strides = array<i32>} : memref<2x64x128xf32, #tpu.memory_space<vmem>>, vector<1x64x128xf32>,
    } else {
    }
    %c0_i32_2 = arith.constant 0 : i32
    %c0_i32_3 = arith.constant 0 : i32
    %8 = tpu.memref_slice %arg5[%2, %c0_i32_2, %c0_i32_3] : memref<2x64x128xf32, #tpu.memory_space<vmem>> -> memref<1x64x128xf32, #tpu.memory_space<vmem>>
    %9 = tpu.memref_squeeze %8 : memref<1x64x128xf32, #tpu.memory_space<vmem>> -> memref<64x128xf32, #tpu.memory_space<vmem>>
    %10 = arith.index_cast %1 : i32 to index
    %c0 = arith.constant 0 : index
    %11 = vector.load %9[%10, %c0] : memref<64x128xf32, #tpu.memory_space<vmem>>, vector<32x128xf32>
    %c0_4 = arith.constant 0 : index
    %c0_5 = arith.constant 0 : index
    %c0_6 = arith.constant 0 : index
    %12 = vector.load %arg4[%c0_4, %c0_5, %c0_6] : memref<1x32x128xf32, #tpu.memory_space<vmem>>, vector<1x32x128xf32>
    %13 = vector.shape_cast %12 : vector<1x32x128xf32> to vector<32x128xf32>
    %14 = vector.shape_cast %11 : vector<32x128xf32> to vector<1x32x128xf32>
    tpu.vector_store %arg4[%c0_4, %c0_5, %c0_6], %14 {strides = array<i32>} : memref<1x32x128xf32, #tpu.memory_space<vmem>>, vector<1x32x128xf32>,
    %c3_i32 = arith.constant 3 : i32
    %15 = arith.cmpi slt, %arg0, %c3_i32 : i32
    %16 = arith.extui %15 : i1 to i32
    %c0_i32_7 = arith.constant 0 : i32
    %17 = arith.cmpi ne, %16, %c0_i32_7 : i32
    scf.if %17 {
      %c0_8 = arith.constant 0 : index
      %c0_9 = arith.constant 0 : index
      %18 = vector.load %arg2[%c0_8, %c0_9] : memref<32x64xf32, #tpu.memory_space<vmem>>, vector<32x64xf32>
      %19 = arith.index_cast %2 : i32 to index
      %c0_10 = arith.constant 0 : index
      %c0_11 = arith.constant 0 : index
      %20 = vector.load %arg5[%19, %c0_10, %c0_11] : memref<2x64x128xf32, #tpu.memory_space<vmem>>, vector<1x64x128xf32>
      %21 = vector.shape_cast %20 : vector<1x64x128xf32> to vector<64x128xf32>
      %cst = arith.constant dense<0.000000e+00> : vector<32x128xf32>
      %22 = tpu.matmul %18, %21, %cst {dimension_numbers = #tpu.dot_dimension_numbers<[1], [0], [0], [1], [0, 0, 1, 1], [], []>} : vector<32x64xf32>, vector<64x128xf32>, vector<32x128xf32> -> vector<32x128xf32>
      %c1_i32_12 = arith.constant 1 : i32
      %23 = arith.subi %c1_i32_12, %2 : i32
      %c0_i32_13 = arith.constant 0 : i32
      %c0_i32_14 = arith.constant 0 : i32
      %24 = tpu.memref_slice %arg5[%23, %c0_i32_13, %c0_i32_14] : memref<2x64x128xf32, #tpu.memory_space<vmem>> -> memref<1x64x128xf32, #tpu.memory_space<vmem>>
      %25 = tpu.memref_squeeze %24 : memref<1x64x128xf32, #tpu.memory_space<vmem>> -> memref<64x128xf32, #tpu.memory_space<vmem>>
      %26 = arith.index_cast %1 : i32 to index
      %c0_15 = arith.constant 0 : index
      %27 = vector.load %25[%26, %c0_15] : memref<64x128xf32, #tpu.memory_space<vmem>>, vector<32x128xf32>
      tpu.vector_store %25[%26, %c0_15], %22 {strides = array<i32>} : memref<64x128xf32, #tpu.memory_space<vmem>>, vector<32x128xf32>,
    } else {
    }
    return
  }
  func.func @transform_0(%arg0: i32, %arg1: i32) -> (i32, i32) {
    %c0_i32 = arith.constant 0 : i32
    %c0_i32_0 = arith.constant 0 : i32
    return %arg1, %c0_i32 : i32, i32
  }
  func.func @transform_1(%arg0: i32, %arg1: i32) -> (i32, i32) {
    %c0_i32 = arith.constant 0 : i32
    %c0_i32_0 = arith.constant 0 : i32
    %c0_i32_1 = arith.constant 0 : i32
    return %c0_i32, %c0_i32_0 : i32, i32
  }
  func.func @transform_2(%arg0: i32, %arg1: i32) -> (i32, i32, i32) {
    %c0_i32 = arith.constant 0 : i32
    %c0_i32_0 = arith.constant 0 : i32
    return %arg0, %arg1, %c0_i32 : i32, i32, i32
  }
}

module attributes {stable_mosaic.version = 11 : i64} {
  func.func @_n2n_kernel(%arg0: i32, %arg1: memref<4x32x128xf32, #tpu.memory_space<vmem>>, %arg2: memref<128x128xf32, #tpu.memory_space<vmem>>, %arg3: memref<4x128xf32, #tpu.memory_space<vmem>>, %arg4: memref<2x128x128xf32, #tpu.memory_space<vmem>>, %arg5: memref<2x128xf32, #tpu.memory_space<vmem>>, %arg6: memref<4x128xf32, #tpu.memory_space<vmem>>, %arg7: memref<4x128xf32, #tpu.memory_space<vmem>>, %arg8: memref<32x128xf32, #tpu.memory_space<vmem>>) attributes {dimension_semantics = [#tpu.dimension_semantics<parallel>], iteration_bounds = array<i64: 2>, scalar_prefetch = 0 : i64, scratch_operands = 0 : i64, tpu.core_type = #tpu.core_type<tc>, window_params = [{transform_indices = @transform_0, window_bounds = array<i64: 4, 32, 128>}, {pipeline_mode = #tpu.pipeline_mode<synchronous>, transform_indices = @transform_1, window_bounds = array<i64: 128, 128>}, {pipeline_mode = #tpu.pipeline_mode<synchronous>, transform_indices = @transform_2, window_bounds = array<i64: 4, 128>}, {pipeline_mode = #tpu.pipeline_mode<synchronous>, transform_indices = @transform_3, window_bounds = array<i64: 2, 128, 128>}, {pipeline_mode = #tpu.pipeline_mode<synchronous>, transform_indices = @transform_4, window_bounds = array<i64: 2, 128>}, {pipeline_mode = #tpu.pipeline_mode<synchronous>, transform_indices = @transform_5, window_bounds = array<i64: 4, 128>}, {pipeline_mode = #tpu.pipeline_mode<synchronous>, transform_indices = @transform_6, window_bounds = array<i64: 4, 128>}, {transform_indices = @transform_7, window_bounds = array<i64: 32, 128>}]} {
    %c0 = arith.constant 0 : index
    %c0_0 = arith.constant 0 : index
    %c0_1 = arith.constant 0 : index
    %0 = vector.load %arg1[%c0, %c0_0, %c0_1] : memref<4x32x128xf32, #tpu.memory_space<vmem>>, vector<4x32x128xf32>
    %1 = vector.shape_cast %0 : vector<4x32x128xf32> to vector<128x128xf32>
    %c0_2 = arith.constant 0 : index
    %c0_3 = arith.constant 0 : index
    %2 = vector.load %arg2[%c0_2, %c0_3] : memref<128x128xf32, #tpu.memory_space<vmem>>, vector<128x128xf32>
    %cst = arith.constant dense<0.000000e+00> : vector<128x128xf32>
    %3 = tpu.matmul %1, %2, %cst {dimension_numbers = #tpu.dot_dimension_numbers<[1], [0], [0], [1], [0, 0, 1, 1], [], []>} : vector<128x128xf32>, vector<128x128xf32>, vector<128x128xf32> -> vector<128x128xf32>
    %4 = vector.shape_cast %3 : vector<128x128xf32> to vector<4x32x128xf32>
    %c0_4 = arith.constant 0 : index
    %c0_5 = arith.constant 0 : index
    %5 = vector.load %arg3[%c0_4, %c0_5] : memref<4x128xf32, #tpu.memory_space<vmem>>, vector<4x128xf32>
    %6 = vector.shape_cast %5 : vector<4x128xf32> to vector<4x1x128xf32>
    %7 = vector.broadcast %6 : vector<4x1x128xf32> to vector<4x32x128xf32>
    %8 = arith.addf %4, %7 : vector<4x32x128xf32>
    %c0_6 = arith.constant 0 : index
    %c0_7 = arith.constant 0 : index
    %9 = vector.load %arg6[%c0_6, %c0_7] : memref<4x128xf32, #tpu.memory_space<vmem>>, vector<1x128xf32>
    %c0_8 = arith.constant 0 : index
    %c0_9 = arith.constant 0 : index
    %10 = vector.load %arg7[%c0_8, %c0_9] : memref<4x128xf32, #tpu.memory_space<vmem>>, vector<1x128xf32>
    %cst_10 = arith.constant dense<0.000000e+00> : vector<4x32xf32>
    %11 = vector.multi_reduction <add>, %8, %cst_10 [2] : vector<4x32x128xf32> to vector<4x32xf32>
    %12 = vector.shape_cast %11 : vector<4x32xf32> to vector<4x32x1xf32>
    %cst_11 = arith.constant 1.280000e+02 : f32
    %13 = vector.broadcast %cst_11 : f32 to vector<4x32x1xf32>
    %14 = arith.divf %12, %13 : vector<4x32x1xf32>
    %15 = arith.mulf %8, %8 : vector<4x32x128xf32>
    %cst_12 = arith.constant dense<0.000000e+00> : vector<4x32xf32>
    %16 = vector.multi_reduction <add>, %15, %cst_12 [2] : vector<4x32x128xf32> to vector<4x32xf32>
    %17 = vector.shape_cast %16 : vector<4x32xf32> to vector<4x32x1xf32>
    %cst_13 = arith.constant 1.280000e+02 : f32
    %18 = vector.broadcast %cst_13 : f32 to vector<4x32x1xf32>
    %19 = arith.divf %17, %18 : vector<4x32x1xf32>
    %20 = arith.mulf %14, %14 : vector<4x32x1xf32>
    %21 = arith.subf %19, %20 : vector<4x32x1xf32>
    %cst_14 = arith.constant 0.000000e+00 : f32
    %22 = vector.broadcast %cst_14 : f32 to vector<4x32x1xf32>
    %23 = arith.maximumf %21, %22 : vector<4x32x1xf32>
    %24 = vector.broadcast %14 : vector<4x32x1xf32> to vector<4x32x128xf32>
    %25 = arith.subf %8, %24 : vector<4x32x128xf32>
    %cst_15 = arith.constant 9.99999974E-6 : f32
    %26 = vector.broadcast %cst_15 : f32 to vector<4x32x1xf32>
    %27 = arith.addf %23, %26 : vector<4x32x1xf32>
    %28 = math.rsqrt %27 : vector<4x32x1xf32>
    %29 = vector.broadcast %28 : vector<4x32x1xf32> to vector<4x32x128xf32>
    %30 = arith.mulf %25, %29 : vector<4x32x128xf32>
    %31 = vector.shape_cast %9 : vector<1x128xf32> to vector<1x1x128xf32>
    %32 = vector.broadcast %31 : vector<1x1x128xf32> to vector<4x32x128xf32>
    %33 = arith.mulf %30, %32 : vector<4x32x128xf32>
    %34 = vector.shape_cast %10 : vector<1x128xf32> to vector<1x1x128xf32>
    %35 = vector.broadcast %34 : vector<1x1x128xf32> to vector<4x32x128xf32>
    %36 = arith.addf %33, %35 : vector<4x32x128xf32>
    %37 = vector.shape_cast %36 : vector<4x32x128xf32> to vector<128x128xf32>
    %c0_16 = arith.constant 0 : index
    %c0_17 = arith.constant 0 : index
    %c0_18 = arith.constant 0 : index
    %38 = vector.load %arg4[%c0_16, %c0_17, %c0_18] : memref<2x128x128xf32, #tpu.memory_space<vmem>>, vector<1x128x128xf32>
    %39 = vector.shape_cast %38 : vector<1x128x128xf32> to vector<128x128xf32>
    %cst_19 = arith.constant dense<0.000000e+00> : vector<128x128xf32>
    %40 = tpu.matmul %37, %39, %cst_19 {dimension_numbers = #tpu.dot_dimension_numbers<[1], [0], [0], [1], [0, 0, 1, 1], [], []>} : vector<128x128xf32>, vector<128x128xf32>, vector<128x128xf32> -> vector<128x128xf32>
    %c0_20 = arith.constant 0 : index
    %c0_21 = arith.constant 0 : index
    %41 = vector.load %arg5[%c0_20, %c0_21] : memref<2x128xf32, #tpu.memory_space<vmem>>, vector<1x128xf32>
    %42 = vector.broadcast %41 : vector<1x128xf32> to vector<128x128xf32>
    %43 = arith.addf %40, %42 : vector<128x128xf32>
    %cst_22 = arith.constant 0.000000e+00 : f32
    %44 = vector.broadcast %cst_22 : f32 to vector<128x128xf32>
    %45 = arith.maximumf %43, %44 : vector<128x128xf32>
    %46 = arith.addf %45, %37 : vector<128x128xf32>
    %c1 = arith.constant 1 : index
    %c0_23 = arith.constant 0 : index
    %47 = vector.load %arg6[%c1, %c0_23] : memref<4x128xf32, #tpu.memory_space<vmem>>, vector<1x128xf32>
    %c1_24 = arith.constant 1 : index
    %c0_25 = arith.constant 0 : index
    %48 = vector.load %arg7[%c1_24, %c0_25] : memref<4x128xf32, #tpu.memory_space<vmem>>, vector<1x128xf32>
    %cst_26 = arith.constant dense<0.000000e+00> : vector<128xf32>
    %49 = vector.multi_reduction <add>, %46, %cst_26 [1] : vector<128x128xf32> to vector<128xf32>
    %50 = vector.shape_cast %49 : vector<128xf32> to vector<128x1xf32>
    %cst_27 = arith.constant 1.280000e+02 : f32
    %51 = vector.broadcast %cst_27 : f32 to vector<128x1xf32>
    %52 = arith.divf %50, %51 : vector<128x1xf32>
    %53 = arith.mulf %46, %46 : vector<128x128xf32>
    %cst_28 = arith.constant dense<0.000000e+00> : vector<128xf32>
    %54 = vector.multi_reduction <add>, %53, %cst_28 [1] : vector<128x128xf32> to vector<128xf32>
    %55 = vector.shape_cast %54 : vector<128xf32> to vector<128x1xf32>
    %cst_29 = arith.constant 1.280000e+02 : f32
    %56 = vector.broadcast %cst_29 : f32 to vector<128x1xf32>
    %57 = arith.divf %55, %56 : vector<128x1xf32>
    %58 = arith.mulf %52, %52 : vector<128x1xf32>
    %59 = arith.subf %57, %58 : vector<128x1xf32>
    %cst_30 = arith.constant 0.000000e+00 : f32
    %60 = vector.broadcast %cst_30 : f32 to vector<128x1xf32>
    %61 = arith.maximumf %59, %60 : vector<128x1xf32>
    %62 = vector.broadcast %52 : vector<128x1xf32> to vector<128x128xf32>
    %63 = arith.subf %46, %62 : vector<128x128xf32>
    %cst_31 = arith.constant 9.99999974E-6 : f32
    %64 = vector.broadcast %cst_31 : f32 to vector<128x1xf32>
    %65 = arith.addf %61, %64 : vector<128x1xf32>
    %66 = math.rsqrt %65 : vector<128x1xf32>
    %67 = vector.broadcast %66 : vector<128x1xf32> to vector<128x128xf32>
    %68 = arith.mulf %63, %67 : vector<128x128xf32>
    %69 = vector.broadcast %47 : vector<1x128xf32> to vector<128x128xf32>
    %70 = arith.mulf %68, %69 : vector<128x128xf32>
    %71 = vector.broadcast %48 : vector<1x128xf32> to vector<128x128xf32>
    %72 = arith.addf %70, %71 : vector<128x128xf32>
    %c1_32 = arith.constant 1 : index
    %c0_33 = arith.constant 0 : index
    %c0_34 = arith.constant 0 : index
    %73 = vector.load %arg4[%c1_32, %c0_33, %c0_34] : memref<2x128x128xf32, #tpu.memory_space<vmem>>, vector<1x128x128xf32>
    %74 = vector.shape_cast %73 : vector<1x128x128xf32> to vector<128x128xf32>
    %cst_35 = arith.constant dense<0.000000e+00> : vector<128x128xf32>
    %75 = tpu.matmul %72, %74, %cst_35 {dimension_numbers = #tpu.dot_dimension_numbers<[1], [0], [0], [1], [0, 0, 1, 1], [], []>} : vector<128x128xf32>, vector<128x128xf32>, vector<128x128xf32> -> vector<128x128xf32>
    %c1_36 = arith.constant 1 : index
    %c0_37 = arith.constant 0 : index
    %76 = vector.load %arg5[%c1_36, %c0_37] : memref<2x128xf32, #tpu.memory_space<vmem>>, vector<1x128xf32>
    %77 = vector.broadcast %76 : vector<1x128xf32> to vector<128x128xf32>
    %78 = arith.addf %75, %77 : vector<128x128xf32>
    %cst_38 = arith.constant 0.000000e+00 : f32
    %79 = vector.broadcast %cst_38 : f32 to vector<128x128xf32>
    %80 = arith.maximumf %78, %79 : vector<128x128xf32>
    %81 = arith.addf %80, %72 : vector<128x128xf32>
    %c2 = arith.constant 2 : index
    %c0_39 = arith.constant 0 : index
    %82 = vector.load %arg6[%c2, %c0_39] : memref<4x128xf32, #tpu.memory_space<vmem>>, vector<1x128xf32>
    %c2_40 = arith.constant 2 : index
    %c0_41 = arith.constant 0 : index
    %83 = vector.load %arg7[%c2_40, %c0_41] : memref<4x128xf32, #tpu.memory_space<vmem>>, vector<1x128xf32>
    %cst_42 = arith.constant dense<0.000000e+00> : vector<128xf32>
    %84 = vector.multi_reduction <add>, %81, %cst_42 [1] : vector<128x128xf32> to vector<128xf32>
    %85 = vector.shape_cast %84 : vector<128xf32> to vector<128x1xf32>
    %cst_43 = arith.constant 1.280000e+02 : f32
    %86 = vector.broadcast %cst_43 : f32 to vector<128x1xf32>
    %87 = arith.divf %85, %86 : vector<128x1xf32>
    %88 = arith.mulf %81, %81 : vector<128x128xf32>
    %cst_44 = arith.constant dense<0.000000e+00> : vector<128xf32>
    %89 = vector.multi_reduction <add>, %88, %cst_44 [1] : vector<128x128xf32> to vector<128xf32>
    %90 = vector.shape_cast %89 : vector<128xf32> to vector<128x1xf32>
    %cst_45 = arith.constant 1.280000e+02 : f32
    %91 = vector.broadcast %cst_45 : f32 to vector<128x1xf32>
    %92 = arith.divf %90, %91 : vector<128x1xf32>
    %93 = arith.mulf %87, %87 : vector<128x1xf32>
    %94 = arith.subf %92, %93 : vector<128x1xf32>
    %cst_46 = arith.constant 0.000000e+00 : f32
    %95 = vector.broadcast %cst_46 : f32 to vector<128x1xf32>
    %96 = arith.maximumf %94, %95 : vector<128x1xf32>
    %97 = vector.broadcast %87 : vector<128x1xf32> to vector<128x128xf32>
    %98 = arith.subf %81, %97 : vector<128x128xf32>
    %cst_47 = arith.constant 9.99999974E-6 : f32
    %99 = vector.broadcast %cst_47 : f32 to vector<128x1xf32>
    %100 = arith.addf %96, %99 : vector<128x1xf32>
    %101 = math.rsqrt %100 : vector<128x1xf32>
    %102 = vector.broadcast %101 : vector<128x1xf32> to vector<128x128xf32>
    %103 = arith.mulf %98, %102 : vector<128x128xf32>
    %104 = vector.broadcast %82 : vector<1x128xf32> to vector<128x128xf32>
    %105 = arith.mulf %103, %104 : vector<128x128xf32>
    %106 = vector.broadcast %83 : vector<1x128xf32> to vector<128x128xf32>
    %107 = arith.addf %105, %106 : vector<128x128xf32>
    %108 = vector.shape_cast %107 : vector<128x128xf32> to vector<4x32x128xf32>
    %109 = vector.extract_strided_slice %108 {offsets = [0, 0, 0], sizes = [1, 32, 128], strides = [1, 1, 1]} : vector<4x32x128xf32> to vector<1x32x128xf32>
    %110 = vector.shape_cast %109 : vector<1x32x128xf32> to vector<32x128xf32>
    %111 = vector.extract_strided_slice %108 {offsets = [1, 0, 0], sizes = [1, 32, 128], strides = [1, 1, 1]} : vector<4x32x128xf32> to vector<1x32x128xf32>
    %112 = vector.shape_cast %111 : vector<1x32x128xf32> to vector<32x128xf32>
    %113 = arith.addf %110, %112 : vector<32x128xf32>
    %114 = vector.extract_strided_slice %108 {offsets = [2, 0, 0], sizes = [1, 32, 128], strides = [1, 1, 1]} : vector<4x32x128xf32> to vector<1x32x128xf32>
    %115 = vector.shape_cast %114 : vector<1x32x128xf32> to vector<32x128xf32>
    %116 = arith.addf %113, %115 : vector<32x128xf32>
    %117 = vector.extract_strided_slice %108 {offsets = [3, 0, 0], sizes = [1, 32, 128], strides = [1, 1, 1]} : vector<4x32x128xf32> to vector<1x32x128xf32>
    %118 = vector.shape_cast %117 : vector<1x32x128xf32> to vector<32x128xf32>
    %119 = arith.addf %116, %118 : vector<32x128xf32>
    %cst_48 = arith.constant 2.500000e-01 : f32
    %120 = vector.broadcast %cst_48 : f32 to vector<32x128xf32>
    %121 = arith.mulf %119, %120 : vector<32x128xf32>
    %c3 = arith.constant 3 : index
    %c0_49 = arith.constant 0 : index
    %122 = vector.load %arg6[%c3, %c0_49] : memref<4x128xf32, #tpu.memory_space<vmem>>, vector<1x128xf32>
    %c3_50 = arith.constant 3 : index
    %c0_51 = arith.constant 0 : index
    %123 = vector.load %arg7[%c3_50, %c0_51] : memref<4x128xf32, #tpu.memory_space<vmem>>, vector<1x128xf32>
    %cst_52 = arith.constant dense<0.000000e+00> : vector<32xf32>
    %124 = vector.multi_reduction <add>, %121, %cst_52 [1] : vector<32x128xf32> to vector<32xf32>
    %125 = vector.shape_cast %124 : vector<32xf32> to vector<32x1xf32>
    %cst_53 = arith.constant 1.280000e+02 : f32
    %126 = vector.broadcast %cst_53 : f32 to vector<32x1xf32>
    %127 = arith.divf %125, %126 : vector<32x1xf32>
    %128 = arith.mulf %121, %121 : vector<32x128xf32>
    %cst_54 = arith.constant dense<0.000000e+00> : vector<32xf32>
    %129 = vector.multi_reduction <add>, %128, %cst_54 [1] : vector<32x128xf32> to vector<32xf32>
    %130 = vector.shape_cast %129 : vector<32xf32> to vector<32x1xf32>
    %cst_55 = arith.constant 1.280000e+02 : f32
    %131 = vector.broadcast %cst_55 : f32 to vector<32x1xf32>
    %132 = arith.divf %130, %131 : vector<32x1xf32>
    %133 = arith.mulf %127, %127 : vector<32x1xf32>
    %134 = arith.subf %132, %133 : vector<32x1xf32>
    %cst_56 = arith.constant 0.000000e+00 : f32
    %135 = vector.broadcast %cst_56 : f32 to vector<32x1xf32>
    %136 = arith.maximumf %134, %135 : vector<32x1xf32>
    %137 = vector.broadcast %127 : vector<32x1xf32> to vector<32x128xf32>
    %138 = arith.subf %121, %137 : vector<32x128xf32>
    %cst_57 = arith.constant 9.99999974E-6 : f32
    %139 = vector.broadcast %cst_57 : f32 to vector<32x1xf32>
    %140 = arith.addf %136, %139 : vector<32x1xf32>
    %141 = math.rsqrt %140 : vector<32x1xf32>
    %142 = vector.broadcast %141 : vector<32x1xf32> to vector<32x128xf32>
    %143 = arith.mulf %138, %142 : vector<32x128xf32>
    %144 = vector.broadcast %122 : vector<1x128xf32> to vector<32x128xf32>
    %145 = arith.mulf %143, %144 : vector<32x128xf32>
    %146 = vector.broadcast %123 : vector<1x128xf32> to vector<32x128xf32>
    %147 = arith.addf %145, %146 : vector<32x128xf32>
    %c0_58 = arith.constant 0 : index
    %c0_59 = arith.constant 0 : index
    %148 = vector.load %arg8[%c0_58, %c0_59] : memref<32x128xf32, #tpu.memory_space<vmem>>, vector<32x128xf32>
    tpu.vector_store %arg8[%c0_58, %c0_59], %147 {strides = array<i32>} : memref<32x128xf32, #tpu.memory_space<vmem>>, vector<32x128xf32>,
    return
  }
  func.func @transform_0(%arg0: i32) -> (i32, i32, i32) {
    %c0_i32 = arith.constant 0 : i32
    %c0_i32_0 = arith.constant 0 : i32
    %c0_i32_1 = arith.constant 0 : i32
    return %c0_i32, %arg0, %c0_i32_0 : i32, i32, i32
  }
  func.func @transform_1(%arg0: i32) -> (i32, i32) {
    %c0_i32 = arith.constant 0 : i32
    %c0_i32_0 = arith.constant 0 : i32
    %c0_i32_1 = arith.constant 0 : i32
    return %c0_i32, %c0_i32_0 : i32, i32
  }
  func.func @transform_2(%arg0: i32) -> (i32, i32) {
    %c0_i32 = arith.constant 0 : i32
    %c0_i32_0 = arith.constant 0 : i32
    %c0_i32_1 = arith.constant 0 : i32
    return %c0_i32, %c0_i32_0 : i32, i32
  }
  func.func @transform_3(%arg0: i32) -> (i32, i32, i32) {
    %c0_i32 = arith.constant 0 : i32
    %c0_i32_0 = arith.constant 0 : i32
    %c0_i32_1 = arith.constant 0 : i32
    %c0_i32_2 = arith.constant 0 : i32
    return %c0_i32, %c0_i32_0, %c0_i32_1 : i32, i32, i32
  }
  func.func @transform_4(%arg0: i32) -> (i32, i32) {
    %c0_i32 = arith.constant 0 : i32
    %c0_i32_0 = arith.constant 0 : i32
    %c0_i32_1 = arith.constant 0 : i32
    return %c0_i32, %c0_i32_0 : i32, i32
  }
  func.func @transform_5(%arg0: i32) -> (i32, i32) {
    %c0_i32 = arith.constant 0 : i32
    %c0_i32_0 = arith.constant 0 : i32
    %c0_i32_1 = arith.constant 0 : i32
    return %c0_i32, %c0_i32_0 : i32, i32
  }
  func.func @transform_6(%arg0: i32) -> (i32, i32) {
    %c0_i32 = arith.constant 0 : i32
    %c0_i32_0 = arith.constant 0 : i32
    %c0_i32_1 = arith.constant 0 : i32
    return %c0_i32, %c0_i32_0 : i32, i32
  }
  func.func @transform_7(%arg0: i32) -> (i32, i32) {
    %c0_i32 = arith.constant 0 : i32
    %c0_i32_0 = arith.constant 0 : i32
    return %arg0, %c0_i32 : i32, i32
  }
}

</mosaic_0001>

<bundles_post_ra>
// kernel: _n2n_forward_jit.2
= control target key start
LH: loop header
LB: loop body
LE: loop exit
PB: predicated region body
PF: predicated region fallthrough
CT: control target
= control target key end

     0   :  { %7 = vsyncpa [#allocation4], 0  ;;  %s953_s0 = inlined_call_operand.hbm [shape: f32[64,64], index: 0, kind: input, shape index: {}]   ;;  %s954_s1 = inlined_call_operand.hbm [shape: f32[64,128], index: 1, kind: input, shape index: {}]   ;;  %s955_s2 = inlined_call_operand.vmem [shape: f32[4,64,128], index: 2, kind: output, shape index: {}]  }
   0x1   :  { %9 = vsyncpa [#allocation4 + $0x1], 0 }
   0x2   :  { %10 = vsyncpa [#allocation6], 0  ;;  %s777_s9 = smov 0   ;;  %s779_s10 = smov 0  }
   0x3   :  { %s781_s11 = smov 0   ;;  %s783_s12 = smov 0  }
   0x4   :  { %s785_s13 = smov 0   ;;  %s787_s14 = smov 0  }
   0x5   :  { %s789_s15 = smov 0   ;;  %s791_s16 = smov 0  }
   0x6 LB: > { %s473_s17 = sadd.s32 4294967295, %s756_s16   ;;  %p48_p0 = scmp.ne.s32.totalorder %s732_s10, %s728_s9  ;;  %s756_s16 = sphi %s791_s16, %s16_s16   ;;  %s752_s15 = sphi %s789_s15, %s966_s15   ;;  %s748_s14 = sphi %s787_s14, %s965_s14   ;;  %s744_s13 = sphi %s785_s13, %s964_s13   ;;  %s740_s12 = sphi %s783_s12, %s963_s12   ;;  %s736_s11 = sphi %s781_s11, %s962_s11   ;;  %s732_s10 = sphi %s779_s10, %s961_s10   ;;  %s728_s9 = sphi %s777_s9, %s960_s9  }
   0x7   : > { %p817_p1 = scmp.eq.s32.totalorder %s473_s17, 0  ;;  %p475_p2 = scmp.ge.s32.totalorder %s756_s16, 1 }
   0x8   : > { %p108_p3 = scmp.lt.s32.totalorder %s756_s16, 9  ;;  %s758_s21 = smov [#allocation5]  }
   0x9   : > { %p825_p4 = por %p817_p1, %p48_p0  ;;  %s120_s22 = sshll.u32 %s758_s21, 4  ;;  %s121_s22 = int_to_ptr.vmem [resolvable:$true] %s120_s22 }
   0xa   : > { %p829_p5 = pnand %p475_p2, %p108_p3  ;;  %s643_s23 = scalar_lea.vmem %s121_s22, 1024 }
   0xb   : > { %p644_p9 = scmp.ne.s32.totalorder %s121_s22, %s643_s23  ;;  %p651_p12 = scmp.lt.s32.totalorder %s121_s22, %s121_s22 }
   0xc   : > { %p554_p6 = pneg %p829_p5  ;;  %p652_p13 = scmp.lt.s32.totalorder %s643_s23, %s643_s23 }
   0xe   : > { %p555_p7 = pnand %p554_p6, %p817_p1  ;;  %p653_p0 = por %p652_p13, %p651_p12 }
  0x10   : > { %p634_p8 = pneg %p555_p7 }
  0x12   : > { %p646_p10 = pnand %p644_p9, %p634_p8 }
  0x14   : > { %p647_p11 = pneg %p646_p10 }
  0x16   : > { %p654_p2 = pnand %p653_p0, %p647_p11 }
  0x18   : > { %657 = shalt.err (!%p654_p2)
}
  0x19   : > { %s759_s24 = smov 128   ;;  %s760_s25 = smov 8  }
  0x1a   : > { %557 = dma.hbm_to_vmem [thread:$0]  (!%p555_p7), %s954_s1, 1024, %s121_s22, [#allocation6], %s759_s24, %s759_s24, %s760_s25  }
  0x1b   : > { %s25_s28 = sadd.s32 1, %s748_s14  ;;  %s28_s29 = sadd.s32 1, %s752_s15 }
  0x1c   : > { %p26_p3 = scmp.ge.s32.totalorder %s25_s28, 2  ;;  %s35_s30 = sadd.s32 1, %s736_s11 }
  0x1d   : > { %p42_p6 = scmp.ne.s32.totalorder %s736_s11, %s732_s10  ;;  %p43_p8 = scmp.eq.s32.totalorder %s756_s16, 0 }
  0x1e   : > { %s968_s28 = smov (%p26_p3, %s25_s28), 0  ;;  %s970_s29 = smov (!%p26_p3, %s28_s29), %s752_s15 }
  0x1f   : > { %s32_s3 = ssub.s32 %s748_s14, %s968_s28  ;;  %p30_p9 = scmp.ge.s32.totalorder %s970_s29, 4 }
  0x20   : > { %p33_p10 = scmp.eq.s32.totalorder %s32_s3, 0  ;;  %p44_p11 = por %p43_p8, %p42_p6 }
  0x21   : > { %p563_p12 = scmp.lt.s32.totalorder %s756_s16, 8  ;;  %s972_s29 = smov (%p30_p9, %s970_s29), 0 }
  0x22   : > { %s858_s4 = scalar_select %p33_p10, %s736_s11, %s35_s30  }
  0x23   : > { %s134_s5 = sand.u32 1, %s736_s11   ;;  %s497_s6 = sshll.u32 %s748_s14, 9 }
  0x24   : > { %s478_s7 = sshll.u32 %s134_s5, 5  ;;  %s144_s17 = scalar_lea.hbm %s953_s0, %s497_s6 }
  0x25   : > { %s138_s21 = scalar_lea.vmem [#allocation3], %s478_s7  ;;  %p865_p7 = pnand %p563_p12, %p44_p11 }
  0x26   : > { %s145_s22 = sshll.u32 %s138_s21, 4  ;;  %s135_s26 = scalar_lea.sflag [#allocation4], %s134_s5  ;;  %s146_s22 = int_to_ptr.vmem [resolvable:$true] %s145_s22 }
  0x27   : > { %p660_p13 = pneg %p865_p7  ;;  %s671_s27 = scalar_lea.vmem %s146_s22, 512 }
  0x28   : > { %p672_p0 = scmp.ne.s32.totalorder %s146_s22, %s671_s27  ;;  %s761_s30 = smov [#allocation3]  }
  0x29   : > { %s676_s3 = sshll.u32 %s761_s30, 4  ;;  %s677_s3 = int_to_ptr.vmem [resolvable:$false] %s676_s3 }
  0x2a   : > { %p674_p2 = pnand %p672_p0, %p660_p13  ;;  %s678_s8 = scalar_lea.vmem %s677_s3, 1024 }
  0x2b   : > { %p679_p6 = scmp.lt.s32.totalorder %s146_s22, %s677_s3  ;;  %p680_p8 = scmp.lt.s32.totalorder %s678_s8, %s671_s27 }
  0x2c   : > { %p675_p3 = pneg %p674_p2 }
  0x2d   : > { %p681_p9 = por %p680_p8, %p679_p6 }
  0x2f   : > { %p682_p10 = pnand %p681_p9, %p675_p3 }
  0x31   : > { %685 = shalt.err (!%p682_p10)
}
  0x32   : > { %561 = dma.hbm_to_vmem [thread:$0]  (!%p865_p7), %s144_s17, 512, %s146_s22, %s135_s26, %s759_s24, %s759_s24, %s760_s25  }
  0x33   : > { %157 = sbr.rel (%p829_p5) target bundleno = 301 (0x12d), region = 28  ;;  %s159_s5 = sand.u32 (!%p829_p5), 1, %s732_s10  }
  0x34   : > { %s482_s6 = sshll.u32 (!%p829_p5), %s159_s5, 5  ;;  %s160_s7 = scalar_lea.sflag (!%p829_p5), [#allocation4], %s159_s5 }
  0x35   : > { %s879_s9 = scalar_lea.vmem (!%p829_p5), [#allocation3], %s482_s6 }
  0x38   : > { %719 = dma.done.wait (%p825_p4), %s160_s7, 512  }
  0x39   : > { %721 = vsyncadd (%p825_p4), %s160_s7, 4294966784 }
  0x3a   : > { %723 = dma.done.wait (%p817_p1), [#allocation6], 1024  }
  0x3b   : > { %725 = vsyncadd (%p817_p1), [#allocation6], 4294966272  ;;  %s484_s20 = sshll.u32 %s740_s12, 2  ;;  %p194_p5 = scmp.lt.s32.totalorder %s744_s13, 3 }
  0x3c   : > { %p196_p11 = scmp.lt.s32.totalorder %s484_s20, 7  ;;  %s487_s24 = sshll.u32 %s740_s12, 5 }
  0x3d   : > { %s195_s25 = scalar_select %p194_p5, %s744_s13, 3 }
  0x3e   : > { %s974_s20 = smov (!%p196_p11, %s484_s20), 7  ;;  %s204_s17 = sand.u32 1, %s744_s13 }
  0x3f   : > { %s485_s19 = sshll.u32 %s195_s25, 3  ;;  %p205_p4 = scmp.eq.s32.totalorder %s744_s13, 0 }
  0x40   : > { %s199_s21 = sadd.s32 %s485_s19, %s974_s20  ;;  %p206_p12 = scmp.eq.s32.totalorder %s740_s12, 0 }
  0x41   : > { %s486_s22 = sshll.u32 %s199_s21, 3 }
  0x42   : > { %s899_s26 = scalar_lea.vmem %s955_s2, %s486_s22  ;;  %p207_p1 = pnand %p206_p12, %p205_p4 }
  0x44   : > { %210 = sbr.rel (%p207_p1) target bundleno = 78 (0x4e), region = 40 }
  0x49   : > { %v211_v0 = vld [vmem:[#allocation5] sm:$0xff]  ;;  %v212_v1 = vld [vmem:[#allocation5 + $0x8] sm:$0xff]  ;;  %v213_v2 = vld [vmem:[#allocation5 + $0x10] sm:$0xff] }
  0x4a   : > { %219 = vst [vmem:[#allocation2] sm:$0xff] %v211_v0  ;;  %220 = vst [vmem:[#allocation2 + $0x8] sm:$0xff] %v212_v1  ;;  %v214_v3 = vld [vmem:[#allocation5 + $0x18] sm:$0xff]  ;;  %v215_v4 = vld [vmem:[#allocation5 + $0x20] sm:$0xff] }
  0x4b   : > { %221 = vst [vmem:[#allocation2 + $0x10] sm:$0xff] %v213_v2  ;;  %v216_v5 = vld [vmem:[#allocation5 + $0x28] sm:$0xff]  ;;  %222 = vst [vmem:[#allocation2 + $0x18] sm:$0xff] %v214_v3  ;;  %v217_v6 = vld [vmem:[#allocation5 + $0x30] sm:$0xff] }
  0x4c   : > { %223 = vst [vmem:[#allocation2 + $0x20] sm:$0xff] %v215_v4  ;;  %224 = vst [vmem:[#allocation2 + $0x28] sm:$0xff] %v216_v5  ;;  %v218_v7 = vld [vmem:[#allocation5 + $0x38] sm:$0xff] }
  0x4d   : > { %225 = vst [vmem:[#allocation2 + $0x30] sm:$0xff] %v217_v6  ;;  %226 = vst [vmem:[#allocation2 + $0x38] sm:$0xff] %v218_v7 }
  0x4e PF: > { %s488_s27 = sshll.u32 %s204_s17, 6  ;;  %p489_p7 = scmp.ge.s32.totalorder %s744_s13, 3 }
  0x4f   : > { %s903_s30 = scalar_lea.vmem [#allocation2], %s488_s27  ;;  %s352_s8 = ssub.s32 (!%p489_p7), 1, %s204_s17 }
  0x50   : > { %s229_s3 = scalar_lea.vmem %s903_s30, %s487_s24 [#allocation2]  ;;  %s494_s5 = sshll.u32 (!%p489_p7), %s352_s8, 6 }
  0x51   : > { %s354_s6 = scalar_lea.vmem (!%p489_p7), [#allocation2], %s494_s5 }
  0x52   : > { %241 = sbr.rel (%p489_p7) target bundleno = 301 (0x12d), region = 44  ;;  %s355_s7 = scalar_lea.vmem (!%p489_p7), %s354_s6, %s487_s24 [#allocation2] }
  0x54   : > { %v230_v8 = vld [vmem:[%s229_s3] sm:$0xff]  ;;  %v231_v9 = vld [vmem:[%s229_s3 + $0x8] sm:$0xff]  ;;  %v232_v10 = vld [vmem:[%s229_s3 + $0x10] sm:$0xff] }
  0x55   : > { %234 = vst [vmem:[%s899_s26] sm:$0xff] %v230_v8  ;;  %235 = vst [vmem:[%s899_s26 + $0x8] sm:$0xff] %v231_v9  ;;  %v233_v11 = vld [vmem:[%s229_s3 + $0x18] sm:$0xff] }
  0x56   : > { %236 = vst [vmem:[%s899_s26 + $0x10] sm:$0xff] %v232_v10  ;;  %237 = vst [vmem:[%s899_s26 + $0x18] sm:$0xff] %v233_v11 }
  0x57   : > { %v253_v12 = vld [vmem:[%s903_s30 + $0x38] sm:$0xff]  ;;  %v252_v13 = vld [vmem:[%s903_s30 + $0x30] sm:$0xff]  ;;  %v251_v14 = vld [vmem:[%s903_s30 + $0x28] sm:$0xff]  ;;  %vm254_vm0 = vcmask 523264  }
  0x58   : > { %510 = vmatprep.subr.mxu0 %v253_v12  ;;  %532 = vmatprep.subr.mxu1 %v253_v12  ;;  %v250_v15 = vld [vmem:[%s903_s30 + $0x20] sm:$0xff]  ;;  %v249_v16 = vld [vmem:[%s903_s30 + $0x18] sm:$0xff]  ;;  %v248_v17 = vld [vmem:[%s903_s30 + $0x10] sm:$0xff] }
  0x59   : > { %511 = vmatpush3.msra.mxu0 %v253_v12  ;;  %540 = vmatpush3.msra.mxu1 %v253_v12  ;;  %v247_v18 = vld [vmem:[%s903_s30 + $0x8] sm:$0xff]  ;;  %v246_v19 = vld [vmem:[%s903_s30] sm:$0xff]  ;;  %v244_v21 = vld [vmem:[%s879_s9 + $0x10] sm:$0xff] }
  0x5a   : > { %512 = vmatprep.subr.mxu0 %v252_v13  ;;  %533 = vmatprep.subr.mxu1 %v252_v13  ;;  %v242_v20 = vld [vmem:[%s879_s9] sm:$0xff]  ;;  %v243_v22 = vld [vmem:[%s879_s9 + $0x8] sm:$0xff]  ;;  %v245_v23 = vld [vmem:[%s879_s9 + $0x18] sm:$0xff] }
  0x5b   : > { %513 = vmatpush3.msra.mxu0 %v252_v13  ;;  %541 = vmatpush3.msra.mxu1 %v252_v13 }
  0x5c   : > { %514 = vmatprep.subr.mxu0 %v251_v14  ;;  %534 = vmatprep.subr.mxu1 %v251_v14 }
  0x5d   : > { %515 = vmatpush3.msra.mxu0 %v251_v14  ;;  %542 = vmatpush3.msra.mxu1 %v251_v14 }
  0x5e   : > { %516 = vmatprep.subr.mxu0 %v250_v15  ;;  %535 = vmatprep.subr.mxu1 %v250_v15 }
  0x5f   : > { %517 = vmatpush3.msra.mxu0 %v250_v15  ;;  %543 = vmatpush3.msra.mxu1 %v250_v15 }
  0x60   : > { %518 = vmatprep.subr.mxu0 %v249_v16  ;;  %536 = vmatprep.subr.mxu1 %v249_v16 }
  0x61   : > { %519 = vmatpush3.msra.mxu0 %v249_v16  ;;  %544 = vmatpush3.msra.mxu1 %v249_v16 }
  0x62   : > { %520 = vmatprep.subr.mxu0 %v248_v17  ;;  %537 = vmatprep.subr.mxu1 %v248_v17 }
  0x63   : > { %521 = vmatpush3.msra.mxu0 %v248_v17  ;;  %545 = vmatpush3.msra.mxu1 %v248_v17 }
  0x64   : > { %522 = vmatprep.subr.mxu0 %v247_v18  ;;  %538 = vmatprep.subr.mxu1 %v247_v18 }
  0x65   : > { %523 = vmatpush3.msra.mxu0 %v247_v18  ;;  %546 = vmatpush3.msra.mxu1 %v247_v18 }
  0x66   : > { %524 = vmatprep.subr.mxu0 %v246_v19  ;;  %539 = vmatprep.subr.mxu1 %v246_v19 }
  0x67   : > { %525 = vmatpush3.msra.mxu0 %v246_v19  ;;  %547 = vmatpush3.msra.mxu1 %v246_v19 }
  0x68   : > { %526 = vmatprep.mubr.msk.f32.mxu0 %vm254_vm0, %v242_v20  ;;  %529 = vmatprep.mubr.msk.f32.mxu1 %vm254_vm0, %v244_v21 }
  0x69   : > { %527 = vmatmul.mubr.msk.f32.vlgmr.msra.gmra.mxu0 %vm254_vm0, %v243_v22  ;;  %530 = vmatmul.mubr.msk.f32.vlgmr.msra.gmra.mxu1 %vm254_vm0, %v245_v23 }
 0x129   : > { %v528_v24 = vpop.f32.mrf.mxu0  ;;  %v531_v25 = vpop.f32.mrf.mxu1 }
 0x12a   : > { %357 = vst [vmem:[%s355_s7 + $0x8] sm:$0xff] %v528_v24  ;;  %359 = vst [vmem:[%s355_s7 + $0x18] sm:$0xff] %v531_v25 }
 0x12b   : > { %v333_v26 = vpop.f32.mrf.mxu0  ;;  %v343_v27 = vpop.f32.mrf.mxu1 }
 0x12c   : > { %356 = vst [vmem:[%s355_s7] sm:$0xff] %v333_v26  ;;  %358 = vst [vmem:[%s355_s7 + $0x10] sm:$0xff] %v343_v27 }
 0x12d PF: > { %s16_s16 = sadd.s32 1, %s756_s16   ;;  %s960_s9 = smov %s732_s10 }
 0x12e   : > { %p13_p13 = scmp.ge.s32.totalorder %s16_s16, 10   ;;  %s961_s10 = smov %s736_s11 }
 0x12f   : > { %s962_s11 = smov %s858_s4  ;;  %s963_s12 = smov %s748_s14 }
 0x130   : > { %s964_s13 = smov %s752_s15  ;;  %s965_s14 = smov %s968_s28 }
 0x131   : > { %s966_s15 = smov %s972_s29  ;;  %15 = sbr.rel (!%p13_p13) target bundleno = 6 (0x6), region = 84 }
 0x136   :  { %390 = vsyncpa [#allocation4], 1 }
 0x137   :  { %392 = vsyncpa [#allocation4 + $0x1], 1 }
 0x138   :  { %393 = vsyncpa [#allocation6], 1 }

// kernel: _n2n_forward_jit.3
= control target key start
LH: loop header
LB: loop body
LE: loop exit
PB: predicated region body
PF: predicated region fallthrough
CT: control target
= control target key end

     0   :  { %12 = vsyncpa [#allocation4], 0  ;;  %s3696_s0 = inlined_call_operand.vmem [shape: f32[4,64,128], index: 0, kind: input, shape index: {}]   ;;  %s3697_s1 = inlined_call_operand.vmem [shape: f32[128,128], index: 1, kind: input, shape index: {}]   ;;  %s3698_s2 = inlined_call_operand.vmem [shape: f32[4,128], index: 2, kind: input, shape index: {}]   ;;  %s3699_s3 = inlined_call_operand.vmem [shape: f32[2,128,128], index: 3, kind: input, shape index: {}]   ;;  %s3700_s4 = inlined_call_operand.vmem [shape: f32[2,128], index: 4, kind: input, shape index: {}]   ;;  %s3701_s5 = inlined_call_operand.vmem [shape: f32[4,128], index: 5, kind: input, shape index: {}]   ;;  %s3702_s6 = inlined_call_operand.vmem [shape: f32[4,128], index: 6, kind: input, shape index: {}]   ;;  %s3703_s7 = inlined_call_operand.hbm [shape: f32[64,128], index: 7, kind: output, shape index: {}]  }
   0x1   :  { %14 = vsyncpa [#allocation4 + $0x1], 0  ;;  %s2577_s24 = smov 0   ;;  %s2579_s25 = smov 0  }
   0x2   :  { %s2581_s26 = smov 0   ;;  %s2583_s27 = smov 0  }
   0x3 LB: > { %s1985_s28 = sadd.s32 4294967295, %s2531_s27   ;;  %s1986_s29 = sadd.s32 4294967294, %s2531_s27   ;;  %s2531_s27 = sphi %s2583_s27, %s3709_s27   ;;  %s2527_s26 = sphi %s2581_s26, %s3708_s26   ;;  %s2523_s25 = sphi %s2579_s25, %s3707_s25   ;;  %s2519_s24 = sphi %s2577_s24, %s3706_s24  }
   0x4   : > { %s2600_s30 = sadd.s32 1, %s2531_s27   ;;  %s27_s8 = sadd.s32 1, %s2527_s26 }
   0x5   : > { %s24_s9 = ssub.s32 %s2531_s27, %s2600_s30  ;;  %p34_p0 = scmp.ne.s32.totalorder %s2527_s26, %s2523_s25 }
   0x6   : > { %p25_p1 = scmp.eq.s32.totalorder %s24_s9, 0  ;;  %p35_p2 = scmp.eq.s32.totalorder %s2531_s27, 0 }
   0x7   : > { %p190_p3 = scmp.eq.s32.totalorder %s1985_s28, 1  ;;  %p195_p4 = scmp.ne.s32.totalorder %s2523_s25, %s2519_s24 }
   0x8   : > { %s2613_s10 = scalar_select %p25_p1, %s2527_s26, %s27_s8  }
   0x9   : > { %p36_p5 = por %p35_p2, %p34_p0  ;;  %p2615_p6 = por %p190_p3, %p34_p0 }
   0xa   : > { %p196_p7 = scmp.eq.s32.totalorder %s1986_s29, 1  ;;  %p1988_p9 = scmp.ge.s32.totalorder %s2531_s27, 2 }
   0xc   : > { %p2619_p8 = por %p196_p7, %p195_p4  ;;  %230 = sbr.rel (%p1988_p9) target bundleno = 29 (0x1d), region = 40 }
  0x11   : > { %233 = sbr.rel (!%p36_p5) target bundleno = 29 (0x1d), region = 44  ;;  %s235_s13 = sand.u32 (%p36_p5), 1, %s2527_s26  }
  0x12   : > { %s2027_s14 = sshll.u32 (%p36_p5), %s2531_s27, 5  ;;  %s1989_s15 = sshll.u32 (%p36_p5), %s235_s13, 7 }
  0x13   : > { %s2631_s18 = scalar_lea.vmem (%p36_p5), %s3696_s0, %s2027_s14  ;;  %s237_s19 = scalar_lea.vmem (%p36_p5), [#allocation2], %s1989_s15 }
  0x14   : > { %v299_v0 = vld [vmem:[%s2631_s18] sm:$0xff] (%p36_p5)  ;;  %v301_v1 = vld [vmem:[%s2631_s18 + $0x8] sm:$0xff] (%p36_p5)  ;;  %v303_v2 = vld [vmem:[%s2631_s18 + $0x10] sm:$0xff] (%p36_p5) }
  0x15   : > { %300 = vst [vmem:[%s237_s19] sm:$0xff] (%p36_p5), %v299_v0  ;;  %302 = vst [vmem:[%s237_s19 + $0x8] sm:$0xff] (%p36_p5), %v301_v1  ;;  %v305_v3 = vld [vmem:[%s2631_s18 + $0x18] sm:$0xff] (%p36_p5)  ;;  %v307_v4 = vld [vmem:[%s2631_s18 + $0x40] sm:$0xff] (%p36_p5) }
  0x16   : > { %304 = vst [vmem:[%s237_s19 + $0x10] sm:$0xff] %v303_v2  ;;  %v309_v5 = vld [vmem:[%s2631_s18 + $0x48] sm:$0xff]  ;;  %306 = vst [vmem:[%s237_s19 + $0x18] sm:$0xff] %v305_v3  ;;  %v311_v6 = vld [vmem:[%s2631_s18 + $0x50] sm:$0xff] }
  0x17   : > { %308 = vst [vmem:[%s237_s19 + $0x20] sm:$0xff] %v307_v4  ;;  %310 = vst [vmem:[%s237_s19 + $0x28] sm:$0xff] %v309_v5  ;;  %v313_v7 = vld [vmem:[%s2631_s18 + $0x58] sm:$0xff]  ;;  %v315_v8 = vld [vmem:[%s2631_s18 + $0x80] sm:$0xff] }
  0x18   : > { %312 = vst [vmem:[%s237_s19 + $0x30] sm:$0xff] %v311_v6  ;;  %314 = vst [vmem:[%s237_s19 + $0x38] sm:$0xff] %v313_v7  ;;  %v317_v9 = vld [vmem:[%s2631_s18 + $0x88] sm:$0xff]  ;;  %v319_v10 = vld [vmem:[%s2631_s18 + $0x90] sm:$0xff] }
  0x19   : > { %316 = vst [vmem:[%s237_s19 + $0x40] sm:$0xff] %v315_v8  ;;  %v321_v11 = vld [vmem:[%s2631_s18 + $0x98] sm:$0xff]  ;;  %318 = vst [vmem:[%s237_s19 + $0x48] sm:$0xff] %v317_v9  ;;  %v323_v12 = vld [vmem:[%s2631_s18 + $0xc0] sm:$0xff] }
  0x1a   : > { %320 = vst [vmem:[%s237_s19 + $0x50] sm:$0xff] %v319_v10  ;;  %322 = vst [vmem:[%s237_s19 + $0x58] sm:$0xff] %v321_v11  ;;  %v325_v13 = vld [vmem:[%s2631_s18 + $0xc8] sm:$0xff]  ;;  %v327_v14 = vld [vmem:[%s2631_s18 + $0xd0] sm:$0xff] }
  0x1b   : > { %324 = vst [vmem:[%s237_s19 + $0x60] sm:$0xff] %v323_v12  ;;  %326 = vst [vmem:[%s237_s19 + $0x68] sm:$0xff] %v325_v13  ;;  %v329_v15 = vld [vmem:[%s2631_s18 + $0xd8] sm:$0xff] }
  0x1c   : > { %328 = vst [vmem:[%s237_s19 + $0x70] sm:$0xff] %v327_v14  ;;  %330 = vst [vmem:[%s237_s19 + $0x78] sm:$0xff] %v329_v15 }
  0x1d PF: > { %p1992_p10 = scmp.ge.s32.totalorder %s2531_s27, 1  ;;  %p335_p11 = scmp.lt.s32.totalorder %s2531_s27, 3 }
  0x1f   : > { %p336_p12 = pnand %p1992_p10, %p335_p11 }
  0x20   : > { %s2658_s29 = sand.u32 (!%p336_p12), 1, %s2523_s25   ;;  %s2028_s13 = sshll.u32 (!%p336_p12), %s1985_s28, 9 }
  0x21   : > { %339 = sbr.rel (%p336_p12) target bundleno = 1450 (0x5aa), region = 82  ;;  %s1993_s8 = sshll.u32 (!%p336_p12), %s2658_s29, 7 }
  0x22   : > { %s2667_s16 = scalar_lea.vmem (!%p336_p12), [#allocation2], %s1993_s8  ;;  %s1994_s22 = sshll.u32 (!%p336_p12), %s2658_s29, 5 }
  0x23   : > { %s372_s9 = scalar_lea.vmem (!%p336_p12), [#allocation3], %s1994_s22  ;;  %s3651_s18 = scalar_lea.hbm (!%p336_p12), %s3703_s7, %s2028_s13 }
  0x24   : > { %s1918_s14 = sshll.u32 (!%p336_p12), %s372_s9, 4  ;;  %s2534_s28 = smov (!%p336_p12), [#allocation3]   ;;  %s3653_s14 = int_to_ptr.vmem [resolvable:$true] %s1918_s14 }
  0x25   : > { %s2471_s19 = scalar_lea.vmem (!%p336_p12), %s3653_s14, 512  ;;  %s2475_s20 = sshll.u32 (!%p336_p12), %s2534_s28, 4  ;;  %s2476_s20 = int_to_ptr.vmem [resolvable:$false] %s2475_s20 }
  0x26   : > { %v406_v16 = vld [vmem:[%s3697_s1 + $0x78] sm:$0xff]  ;;  %v405_v17 = vld [vmem:[%s3697_s1 + $0x70] sm:$0xff]  ;;  %v404_v18 = vld [vmem:[%s3697_s1 + $0x68] sm:$0xff]  ;;  %v2533_v48 = vmov 1966171168   ;;  %v565_v50 = vlaneseq  ;;  %p2472_p13 = scmp.ne.s32.totalorder %s3653_s14, %s2471_s19  ;;  %s2477_s21 = scalar_lea.vmem %s2476_s20, 1024 }
  0x27   : > { %2125 = vmatprep.subr.mxu0 %v406_v16  ;;  %v403_v19 = vld [vmem:[%s3697_s1 + $0x60] sm:$0xff]  ;;  %v402_v21 = vld [vmem:[%s3697_s1 + $0x58] sm:$0xff]  ;;  %v401_v22 = vld [vmem:[%s3697_s1 + $0x50] sm:$0xff]  ;;  %v563_v49 = vunpack.c.l.s4 %v2533_v48  ;;  %p2478_p2 = scmp.lt.s32.totalorder %s3653_s14, %s2476_s20  ;;  %p2479_p3 = scmp.lt.s32.totalorder %s2477_s21, %s2471_s19 }
  0x28   : > { %2126 = vmatpush3.msra.mxu0 %v406_v16  ;;  %v375_v20 = vld [vmem:[%s2667_s16] sm:$0xff]  ;;  %v400_v23 = vld [vmem:[%s3697_s1 + $0x48] sm:$0xff]  ;;  %v398_v25 = vld [vmem:[%s3697_s1 + $0x38] sm:$0xff]  ;;  %v566_v52 = vshrl.u32 %v565_v50, 7  ;;  %p2473_p0 = pnand %p2472_p13, %p2615_p6 }
  0x29   : > { %2127 = vmatprep.subr.mxu0 %v405_v17  ;;  %2157 = vmatprep.mubr.f32.mxu0 %v375_v20  ;;  %v399_v24 = vld [vmem:[%s3697_s1 + $0x40] sm:$0xff]  ;;  %v397_v26 = vld [vmem:[%s3697_s1 + $0x30] sm:$0xff]  ;;  %v396_v27 = vld [vmem:[%s3697_s1 + $0x28] sm:$0xff]  ;;  %v564_v51 = vunpack.c.0.s8 %v563_v49  ;;  %p2480_p4 = por %p2479_p3, %p2478_p2 }
  0x2a   : > { %2128 = vmatpush3.msra.mxu0 %v405_v17  ;;  %v395_v28 = vld [vmem:[%s3697_s1 + $0x20] sm:$0xff]  ;;  %v394_v29 = vld [vmem:[%s3697_s1 + $0x18] sm:$0xff]  ;;  %v393_v30 = vld [vmem:[%s3697_s1 + $0x10] sm:$0xff]  ;;  %v2724_v56 = vsub.s32 0, %v566_v52  ;;  %p2474_p1 = pneg %p2473_p0 }
  0x2b   : > { %2129 = vmatprep.subr.mxu0 %v404_v18  ;;  %v392_v31 = vld [vmem:[%s3697_s1 + $0x8] sm:$0xff]  ;;  %v391_v32 = vld [vmem:[%s3697_s1] sm:$0xff]  ;;  %v377_v34 = vld [vmem:[%s2667_s16 + $0x10] sm:$0xff]  ;;  %v567_v53 = vsub.s32 %v564_v51, %v566_v52 }
  0x2c   : > { %2130 = vmatpush3.msra.mxu0 %v404_v18  ;;  %v376_v33 = vld [vmem:[%s2667_s16 + $0x8] sm:$0xff]  ;;  %v378_v35 = vld [vmem:[%s2667_s16 + $0x18] sm:$0xff]  ;;  %v379_v36 = vld [vmem:[%s2667_s16 + $0x20] sm:$0xff]  ;;  %p2481_p5 = pnand %p2480_p4, %p2474_p1 }
  0x2d   : > { %2131 = vmatprep.subr.mxu0 %v403_v19  ;;  %v380_v37 = vld [vmem:[%s2667_s16 + $0x28] sm:$0xff]  ;;  %v381_v38 = vld [vmem:[%s2667_s16 + $0x30] sm:$0xff]  ;;  %v382_v39 = vld [vmem:[%s2667_s16 + $0x38] sm:$0xff] }
  0x2e   : > { %2132 = vmatpush3.msra.mxu0 %v403_v19  ;;  %v383_v40 = vld [vmem:[%s2667_s16 + $0x40] sm:$0xff]  ;;  %v384_v41 = vld [vmem:[%s2667_s16 + $0x48] sm:$0xff]  ;;  %v385_v42 = vld [vmem:[%s2667_s16 + $0x50] sm:$0xff] }
  0x2f   : > { %2133 = vmatprep.subr.mxu0 %v402_v21  ;;  %v386_v43 = vld [vmem:[%s2667_s16 + $0x58] sm:$0xff]  ;;  %v387_v44 = vld [vmem:[%s2667_s16 + $0x60] sm:$0xff]  ;;  %v388_v45 = vld [vmem:[%s2667_s16 + $0x68] sm:$0xff] }
  0x30   : > { %2134 = vmatpush3.msra.mxu0 %v402_v21  ;;  %v389_v46 = vld [vmem:[%s2667_s16 + $0x70] sm:$0xff]  ;;  %v390_v47 = vld [vmem:[%s2667_s16 + $0x78] sm:$0xff]  ;;  %v1995_v54 = vld.sshfl [vmem:[%s3698_s2] sm:$0x33 pattern:$0x75316420] }
  0x31   : > { %2135 = vmatprep.subr.mxu0 %v401_v22  ;;  %v568_v55 = vrot.slane %v1995_v54, %v567_v53  ;;  %v561_v63 = vcombine.high %v1995_v54, %v1995_v54  ;;  %v896_v12 = vld [vmem:[%s3699_s3 + $0x78] sm:$0xff]  ;;  %v895_v15 = vld [vmem:[%s3699_s3 + $0x70] sm:$0xff]  ;;  %v894_v17 = vld [vmem:[%s3699_s3 + $0x68] sm:$0xff]  ;;  %s1905_s16 = scalar_lea.sflag [#allocation4], %s2658_s29 }
  0x32   : > { %2136 = vmatpush3.msra.mxu0 %v401_v22  ;;  %2181 = vmatprep.subr.mxu1 %v896_v12  ;;  %v893_v19 = vld [vmem:[%s3699_s3 + $0x60] sm:$0xff]  ;;  %v883_v48 = vld [vmem:[%s3699_s3 + $0x10] sm:$0xff]  ;;  %v882_v52 = vld [vmem:[%s3699_s3 + $0x8] sm:$0xff] }
  0x33   : > { %2137 = vmatprep.subr.mxu0 %v400_v23  ;;  %v581_v57 = vrot.slane %v568_v55, %v2724_v56  ;;  %v2739_v4 = vrot.slane %v561_v63, %v567_v53  ;;  %2182 = vmatpush3.msra.mxu1 %v896_v12  ;;  %v576_v22 = vcombine.high %v568_v55, %v568_v55  ;;  %v881_v54 = vld [vmem:[%s3699_s3] sm:$0xff] }
  0x34   : > { %2138 = vmatpush3.msra.mxu0 %v400_v23  ;;  %2183 = vmatprep.subr.mxu1 %v895_v15 }
  0x35   : > { %2139 = vmatprep.subr.mxu0 %v399_v24  ;;  %v585_v7 = vrot.slane %v2739_v4, %v2724_v56  ;;  %2184 = vmatpush3.msra.mxu1 %v895_v15 }
  0x36   : > { %2140 = vmatpush3.msra.mxu0 %v399_v24  ;;  %2185 = vmatprep.subr.mxu1 %v894_v17  ;;  %v892_v24 = vld [vmem:[%s3699_s3 + $0x58] sm:$0xff] }
  0x37   : > { %2141 = vmatprep.subr.mxu0 %v398_v25  ;;  %2186 = vmatpush3.msra.mxu1 %v894_v17 }
  0x38   : > { %2142 = vmatpush3.msra.mxu0 %v398_v25  ;;  %2187 = vmatprep.subr.mxu1 %v893_v19 }
  0x39   : > { %2143 = vmatprep.subr.mxu0 %v397_v26  ;;  %2188 = vmatpush3.msra.mxu1 %v893_v19 }
  0x3a   : > { %2144 = vmatpush3.msra.mxu0 %v397_v26  ;;  %2189 = vmatprep.subr.mxu1 %v892_v24  ;;  %v891_v26 = vld [vmem:[%s3699_s3 + $0x50] sm:$0xff] }
  0x3b   : > { %2145 = vmatprep.subr.mxu0 %v396_v27  ;;  %2190 = vmatpush3.msra.mxu1 %v892_v24 }
  0x3c   : > { %2146 = vmatpush3.msra.mxu0 %v396_v27  ;;  %v589_v27 = vrot.slane %v576_v22, %v2724_v56  ;;  %2191 = vmatprep.subr.mxu1 %v891_v26 }
  0x3d   : > { %2147 = vmatprep.subr.mxu0 %v395_v28  ;;  %2192 = vmatpush3.msra.mxu1 %v891_v26 }
  0x3e   : > { %2148 = vmatpush3.msra.mxu0 %v395_v28 }
  0x3f   : > { %2149 = vmatprep.subr.mxu0 %v394_v29 }
  0x40   : > { %2150 = vmatpush3.msra.mxu0 %v394_v29 }
  0x41   : > { %2151 = vmatprep.subr.mxu0 %v393_v30 }
  0x42   : > { %2152 = vmatpush3.msra.mxu0 %v393_v30  ;;  %v890_v30 = vld [vmem:[%s3699_s3 + $0x48] sm:$0xff] }
  0x43   : > { %2153 = vmatprep.subr.mxu0 %v392_v31  ;;  %2193 = vmatprep.subr.mxu1 %v890_v30 }
  0x44   : > { %2154 = vmatpush3.msra.mxu0 %v392_v31  ;;  %2194 = vmatpush3.msra.mxu1 %v890_v30  ;;  %v889_v31 = vld [vmem:[%s3699_s3 + $0x40] sm:$0xff] }
  0x45   : > { %2155 = vmatprep.subr.mxu0 %v391_v32  ;;  %2195 = vmatprep.subr.mxu1 %v889_v31 }
  0x46   : > { %2156 = vmatpush3.msra.mxu0 %v391_v32  ;;  %2196 = vmatpush3.msra.mxu1 %v889_v31 }
  0x47   : > { %2158 = vmatmul.mubr.f32.vlgmr.msra.gmra.mxu0 %v376_v33 }
  0x48   : > { %2160 = vmatprep.mubr.f32.mxu0 %v377_v34 }
  0x4b   : > { %2161 = vmatmul.mubr.f32.gmra.mxu0 %v378_v35  ;;  %v888_v35 = vld [vmem:[%s3699_s3 + $0x38] sm:$0xff] }
  0x4c   : > { %2163 = vmatprep.mubr.f32.mxu0 %v379_v36  ;;  %2197 = vmatprep.subr.mxu1 %v888_v35 }
  0x4d   : > { %2198 = vmatpush3.msra.mxu1 %v888_v35 }
  0x4f   : > { %2164 = vmatmul.mubr.f32.gmra.mxu0 %v380_v37  ;;  %v887_v37 = vld [vmem:[%s3699_s3 + $0x30] sm:$0xff] }
  0x50   : > { %2166 = vmatprep.mubr.f32.mxu0 %v381_v38  ;;  %2199 = vmatprep.subr.mxu1 %v887_v37 }
  0x51   : > { %2200 = vmatpush3.msra.mxu1 %v887_v37 }
  0x53   : > { %2167 = vmatmul.mubr.f32.gmra.mxu0 %v382_v39 }
  0x54   : > { %2169 = vmatprep.mubr.f32.mxu0 %v383_v40  ;;  %v886_v40 = vld [vmem:[%s3699_s3 + $0x28] sm:$0xff] }
  0x55   : > { %2201 = vmatprep.subr.mxu1 %v886_v40 }
  0x56   : > { %2202 = vmatpush3.msra.mxu1 %v886_v40 }
  0x57   : > { %2170 = vmatmul.mubr.f32.gmra.mxu0 %v384_v41  ;;  %v885_v41 = vld [vmem:[%s3699_s3 + $0x20] sm:$0xff] }
  0x58   : > { %2172 = vmatprep.mubr.f32.mxu0 %v385_v42  ;;  %2203 = vmatprep.subr.mxu1 %v885_v41 }
  0x59   : > { %2204 = vmatpush3.msra.mxu1 %v885_v41 }
  0x5b   : > { %2173 = vmatmul.mubr.f32.gmra.mxu0 %v386_v43 }
  0x5c   : > { %2175 = vmatprep.mubr.f32.mxu0 %v387_v44  ;;  %v577_v44 = vcombine.high %v2739_v4, %v2739_v4 }
  0x5e   : > { %v593_v49 = vrot.slane %v577_v44, %v2724_v56 }
  0x5f   : > { %2176 = vmatmul.mubr.f32.gmra.mxu0 %v388_v45 }
  0x60   : > { %2178 = vmatprep.mubr.f32.mxu0 %v389_v46  ;;  %v884_v46 = vld [vmem:[%s3699_s3 + $0x18] sm:$0xff] }
  0x61   : > { %2205 = vmatprep.subr.mxu1 %v884_v46 }
  0x62   : > { %2206 = vmatpush3.msra.mxu1 %v884_v46 }
  0x63   : > { %2179 = vmatmul.mubr.f32.gmra.mxu0 %v390_v47  ;;  %2207 = vmatprep.subr.mxu1 %v883_v48 }
  0x64   : > { %2208 = vmatpush3.msra.mxu1 %v883_v48 }
  0x65   : > { %2209 = vmatprep.subr.mxu1 %v882_v52 }
  0x66   : > { %2210 = vmatpush3.msra.mxu1 %v882_v52 }
  0x67   : > { %2211 = vmatprep.subr.mxu1 %v881_v54 }
  0x68   : > { %2212 = vmatpush3.msra.mxu1 %v881_v54 }
 0x107   : > { %v2159_v58 = vpop.f32.mrf.mxu0 }
 0x108   : > { %v2727_v59 = vadd.f32 %v2159_v58, %v581_v57 }
 0x109   : > { %v473_v60 = vpop.f32.mrf.mxu0 }
 0x10a   : > { %v2729_v61 = vadd.f32 %v581_v57, %v473_v60  ;;  %618 = vadd.xlane.f32.xlu0 %v2727_v59  ;;  %v666_v62 = vmul.f32 %v2727_v59, %v2727_v59 }
 0x10b   : > { %v2162_v0 = vpop.f32.mrf.mxu0 }
 0x10c   : > { %683 = vadd.xlane.f32.xlu1 %v666_v62  ;;  %v665_v3 = vmul.f32 %v2729_v61, %v2729_v61  ;;  %v2741_v6 = vadd.f32 %v2162_v0, %v581_v57 }
 0x10d   : > { %v483_v1 = vpop.f32.mrf.mxu0 }
 0x10e   : > { %616 = vadd.xlane.f32.xlu0 %v2729_v61  ;;  %v2735_v2 = vadd.f32 %v581_v57, %v483_v1  ;;  %v668_v11 = vmul.f32 %v2741_v6, %v2741_v6 }
 0x10f   : > { %v2165_v5 = vpop.f32.mrf.mxu0 }
 0x110   : > { %681 = vadd.xlane.f32.xlu1 %v665_v3  ;;  %v667_v8 = vmul.f32 %v2735_v2, %v2735_v2  ;;  %v2756_v14 = vadd.f32 %v2165_v5, %v585_v7 }
 0x111   : > { %v493_v9 = vpop.f32.mrf.mxu0 }
 0x112   : > { %620 = vadd.xlane.f32.xlu0 %v2735_v2  ;;  %v2749_v10 = vadd.f32 %v585_v7, %v493_v9  ;;  %v670_v21 = vmul.f32 %v2756_v14, %v2756_v14 }
 0x113   : > { %v2168_v13 = vpop.f32.mrf.mxu0 }
 0x114   : > { %622 = vadd.xlane.f32.xlu1 %v2741_v6  ;;  %v669_v16 = vmul.f32 %v2749_v10, %v2749_v10  ;;  %v2778_v25 = vadd.f32 %v2168_v13, %v585_v7 }
 0x115   : > { %v503_v18 = vpop.f32.mrf.mxu0 }
 0x116   : > { %685 = vadd.xlane.f32.xlu0 %v667_v8  ;;  %v2771_v20 = vadd.f32 %v585_v7, %v503_v18  ;;  %v672_v33 = vmul.f32 %v2778_v25, %v2778_v25 }
 0x117   : > { %v2171_v23 = vpop.f32.mrf.mxu0 }
 0x118   : > { %687 = vadd.xlane.f32.xlu1 %v668_v11  ;;  %v671_v28 = vmul.f32 %v2771_v20, %v2771_v20  ;;  %v2801_v36 = vadd.f32 %v2171_v23, %v589_v27 }
 0x119   : > { %v513_v29 = vpop.f32.mrf.mxu0 }
 0x11a   : > { %624 = vadd.xlane.f32.xlu0 %v2749_v10  ;;  %v2794_v32 = vadd.f32 %v589_v27, %v513_v29  ;;  %v674_v43 = vmul.f32 %v2801_v36, %v2801_v36 }
 0x11b   : > { %v2174_v34 = vpop.f32.mrf.mxu0 }
 0x11c   : > { %626 = vadd.xlane.f32.xlu1 %v2756_v14  ;;  %v673_v38 = vmul.f32 %v2794_v32, %v2794_v32  ;;  %v2825_v47 = vadd.f32 %v2174_v34, %v589_v27 }
 0x11d   : > { %v523_v39 = vpop.f32.mrf.mxu0 }
 0x11e   : > { %689 = vadd.xlane.f32.xlu0 %v669_v16  ;;  %v2816_v42 = vadd.f32 %v589_v27, %v523_v39  ;;  %v676_v53 = vmul.f32 %v2825_v47, %v2825_v47 }
 0x11f   : > { %v2177_v45 = vpop.f32.mrf.mxu0 }
 0x120   : > { %691 = vadd.xlane.f32.xlu1 %v670_v21  ;;  %v675_v50 = vmul.f32 %v2816_v42, %v2816_v42  ;;  %v2845_v57 = vadd.f32 %v2177_v45, %v593_v49 }
 0x121   : > { %v533_v51 = vpop.f32.mrf.mxu0 }
 0x122   : > { %628 = vadd.xlane.f32.xlu0 %v2771_v20  ;;  %v2843_v55 = vadd.f32 %v593_v49, %v533_v51  ;;  %v678_v62 = vmul.f32 %v2845_v57, %v2845_v57 }
 0x123   : > { %v2180_v56 = vpop.f32.mrf.mxu0 }
 0x124   : > { %630 = vadd.xlane.f32.xlu1 %v2778_v25  ;;  %v677_v58 = vmul.f32 %v2843_v55, %v2843_v55  ;;  %v2855_v0 = vadd.f32 %v2180_v56, %v593_v49 }
 0x125   : > { %v543_v60 = vpop.f32.mrf.mxu0 }
 0x126   : > { %693 = vadd.xlane.f32.xlu0 %v671_v28  ;;  %v2853_v63 = vadd.f32 %v593_v49, %v543_v60  ;;  %v680_v3 = vmul.f32 %v2855_v0, %v2855_v0 }
 0x128   : > { %695 = vadd.xlane.f32.xlu1 %v672_v33  ;;  %v679_v1 = vmul.f32 %v2853_v63, %v2853_v63 }
 0x12a   : > { %632 = vadd.xlane.f32.xlu0 %v2794_v32 }
 0x12c   : > { %634 = vadd.xlane.f32.xlu1 %v2801_v36 }
 0x12e   : > { %697 = vadd.xlane.f32.xlu0 %v673_v38 }
 0x130   : > { %699 = vadd.xlane.f32.xlu1 %v674_v43 }
 0x132   : > { %636 = vadd.xlane.f32.xlu0 %v2816_v42 }
 0x134   : > { %638 = vadd.xlane.f32.xlu1 %v2825_v47 }
 0x136   : > { %701 = vadd.xlane.f32.xlu0 %v675_v50 }
 0x138   : > { %703 = vadd.xlane.f32.xlu1 %v676_v53 }
 0x13a   : > { %640 = vadd.xlane.f32.xlu0 %v2843_v55 }
 0x13c   : > { %642 = vadd.xlane.f32.xlu1 %v2845_v57 }
 0x13e   : > { %705 = vadd.xlane.f32.xlu0 %v677_v58 }
 0x140   : > { %707 = vadd.xlane.f32.xlu1 %v678_v62 }
 0x142   : > { %644 = vadd.xlane.f32.xlu0 %v2853_v63 }
 0x144   : > { %646 = vadd.xlane.f32.xlu1 %v2855_v0 }
 0x146   : > { %709 = vadd.xlane.f32.xlu0 %v679_v1 }
 0x148   : > { %711 = vadd.xlane.f32.xlu1 %v680_v3 }
 0x193   : > { %v619_v4 = vpop.xlane.xlu0 %618 }
 0x194   : > { %v650_v5 = vmul.f32 0.0078125, %v619_v4 }
 0x195   : > { %v684_v7 = vpop.xlane.xlu1 %683 }
 0x196   : > { %v730_v8 = vmul.f32 %v650_v5, %v650_v5  ;;  %v714_v9 = vmul.f32 0.0078125, %v684_v7  ;;  %v778_v60 = vsub.f32 %v2727_v59, %v650_v5 }
 0x197   : > { %v617_v11 = vpop.xlane.xlu0 %616 }
 0x198   : > { %v746_v12 = vsub.f32 %v714_v9, %v730_v8  ;;  %v649_v13 = vmul.f32 0.0078125, %v617_v11 }
 0x199   : > { %v682_v15 = vpop.xlane.xlu1 %681 }
 0x19a   : > { %v762_v16 = vmax.f32 %v746_v12, 0.0  ;;  %v729_v17 = vmul.f32 %v649_v13, %v649_v13  ;;  %v713_v18 = vmul.f32 0.0078125, %v682_v15  ;;  %v777_v9 = vsub.f32 %v2729_v61, %v649_v13 }
 0x19b   : > { %v621_v19 = vpop.xlane.xlu0 %620 }
 0x19c   : > { %v794_v21 = vadd.f32 1e-05, %v762_v16  ;;  %v745_v22 = vsub.f32 %v713_v18, %v729_v17  ;;  %v2863_v23 = vmul.f32 0.0078125, %v621_v19  ;;  %v2888_v16 = vld [vmem:[%s3701_s5] ss:$0 sm:$0xff] }
 0x19d   : > { %v623_v24 = vpop.xlane.xlu1 %622 }
 0x19e   : > { %2367 = vrsqrt.f32 %v794_v21  ;;  %v761_v26 = vmax.f32 %v745_v22, 0.0  ;;  %v731_v27 = vmul.f32 %v2863_v23, %v2863_v23  ;;  %v2867_v28 = vmul.f32 0.0078125, %v623_v24 }
 0x19f   : > { %v686_v29 = vpop.xlane.xlu0 %685 }
 0x1a0   : > { %v793_v30 = vadd.f32 1e-05, %v761_v26  ;;  %v715_v31 = vmul.f32 0.0078125, %v686_v29  ;;  %v732_v34 = vmul.f32 %v2867_v28, %v2867_v28 }
 0x1a1   : > { %v688_v33 = vpop.xlane.xlu1 %687 }
 0x1a2   : > { %2369 = vrsqrt.f32 %v793_v30  ;;  %v747_v35 = vsub.f32 %v715_v31, %v731_v27  ;;  %v716_v37 = vmul.f32 0.0078125, %v688_v33  ;;  %v2898_v27 = vld [vmem:[%s3702_s6] ss:$0 sm:$0xff] }
 0x1a3   : > { %v625_v38 = vpop.xlane.xlu0 %624 }
 0x1a4   : > { %v763_v39 = vmax.f32 %v747_v35, 0.0  ;;  %v748_v40 = vsub.f32 %v716_v37, %v732_v34  ;;  %v2871_v41 = vmul.f32 0.0078125, %v625_v38  ;;  %v779_v38 = vsub.f32 %v2735_v2, %v2863_v23 }
 0x1a5   : > { %v627_v43 = vpop.xlane.xlu1 %626 }
 0x1a6   : > { %v795_v44 = vadd.f32 1e-05, %v763_v39  ;;  %v764_v45 = vmax.f32 %v748_v40, 0.0  ;;  %v733_v46 = vmul.f32 %v2871_v41, %v2871_v41  ;;  %v2875_v48 = vmul.f32 0.0078125, %v627_v43 }
 0x1a7   : > { %v690_v49 = vpop.xlane.xlu0 %689  ;;  %v780_v43 = vsub.f32 %v2741_v6, %v2867_v28 }
 0x1a8   : > { %2371 = vrsqrt.f32 %v795_v44  ;;  %v796_v50 = vadd.f32 1e-05, %v764_v45  ;;  %v717_v51 = vmul.f32 0.0078125, %v690_v49  ;;  %v734_v53 = vmul.f32 %v2875_v48, %v2875_v48 }
 0x1a9   : > { %v692_v52 = vpop.xlane.xlu1 %691 }
 0x1aa   : > { %2373 = vrsqrt.f32 %v796_v50  ;;  %v749_v54 = vsub.f32 %v717_v51, %v733_v46  ;;  %v718_v56 = vmul.f32 0.0078125, %v692_v52 }
 0x1ab   : > { %v2368_v58 = vpop.eup %2367  ;;  %v629_v62 = vpop.xlane.xlu0 %628 }
 0x1ac   : > { %v765_v1 = vmax.f32 %v749_v54, 0.0  ;;  %v750_v3 = vsub.f32 %v718_v56, %v734_v53  ;;  %v2880_v4 = vmul.f32 0.0078125, %v629_v62  ;;  %v826_v8 = vmul.f32 %v2368_v58, %v778_v60 }
 0x1ad   : > { %v631_v7 = vpop.xlane.xlu1 %630 }
 0x1ae   : > { %v797_v11 = vadd.f32 1e-05, %v765_v1  ;;  %v766_v12 = vmax.f32 %v750_v3, 0.0  ;;  %v735_v15 = vmul.f32 %v2880_v4, %v2880_v4  ;;  %v2890_v5 = vmul.f32 0.0078125, %v631_v7 }
 0x1af   : > { %v2370_v59 = vpop.eup %2369  ;;  %v694_v17 = vpop.xlane.xlu0 %693  ;;  %v846_v22 = vmul.f32 %v2888_v16, %v826_v8 }
 0x1b0   : > { %2375 = vrsqrt.f32 %v797_v11  ;;  %v798_v18 = vadd.f32 1e-05, %v766_v12  ;;  %v719_v19 = vmul.f32 0.0078125, %v694_v17  ;;  %v825_v21 = vmul.f32 %v2370_v59, %v777_v9 }
 0x1b1   : > { %v736_v61 = vmul.f32 %v2890_v5, %v2890_v5  ;;  %v696_v13 = vpop.xlane.xlu1 %695  ;;  %v2909_v40 = vadd.f32 %v2898_v27, %v846_v22  ;;  %v781_v12 = vsub.f32 %v2749_v10, %v2871_v41  ;;  %v782_v59 = vsub.f32 %v2756_v14, %v2875_v48 }
 0x1b2   : > { %2377 = vrsqrt.f32 %v798_v18  ;;  %v751_v24 = vsub.f32 %v719_v19, %v735_v15  ;;  %v720_v26 = vmul.f32 0.0078125, %v696_v13  ;;  %v845_v29 = vmul.f32 %v2888_v16, %v825_v21 }
 0x1b3   : > { %v633_v30 = vpop.xlane.xlu0 %632 }
 0x1b4   : > { %v767_v31 = vmax.f32 %v751_v24, 0.0  ;;  %v752_v33 = vsub.f32 %v720_v26, %v736_v61  ;;  %v2901_v34 = vmul.f32 0.0078125, %v633_v30  ;;  %v2904_v35 = vadd.f32 %v2898_v27, %v845_v29 }
 0x1b5   : > { %v2372_v37 = vpop.eup %2371  ;;  %v635_v39 = vpop.xlane.xlu1 %634 }
 0x1b6   : > { %v799_v44 = vadd.f32 1e-05, %v767_v31  ;;  %v768_v45 = vmax.f32 %v752_v33, 0.0  ;;  %v737_v46 = vmul.f32 %v2901_v34, %v2901_v34  ;;  %2213 = vmatprep.mubr.f32.mxu1 %v2904_v35  ;;  %v2916_v50 = vmul.f32 0.0078125, %v635_v39 }
 0x1b7   : > { %v2374_v49 = vpop.eup %2373  ;;  %2214 = vmatmul.mubr.f32.vlgmr.msra.gmra.mxu1 %v2909_v40  ;;  %v698_v2 = vpop.xlane.xlu0 %697  ;;  %v827_v23 = vmul.f32 %v2372_v37, %v779_v38 }
 0x1b8   : > { %2379 = vrsqrt.f32 %v799_v44  ;;  %v800_v51 = vadd.f32 1e-05, %v768_v45  ;;  %v721_v52 = vmul.f32 0.0078125, %v698_v2  ;;  %v828_v53 = vmul.f32 %v2374_v49, %v780_v43 }
 0x1b9   : > { %v738_v6 = vmul.f32 %v2916_v50, %v2916_v50  ;;  %v700_v28 = vpop.xlane.xlu1 %699  ;;  %v847_v54 = vmul.f32 %v2888_v16, %v827_v23  ;;  %v784_v2 = vsub.f32 %v2778_v25, %v2890_v5 }
 0x1ba   : > { %2381 = vrsqrt.f32 %v800_v51  ;;  %v753_v56 = vsub.f32 %v721_v52, %v737_v46  ;;  %v722_v58 = vmul.f32 0.0078125, %v700_v28  ;;  %v848_v60 = vmul.f32 %v2888_v16, %v828_v53 }
 0x1bb   : > { %v637_v62 = vpop.xlane.xlu0 %636  ;;  %v2924_v1 = vadd.f32 %v2898_v27, %v847_v54  ;;  %v783_v46 = vsub.f32 %v2771_v20, %v2880_v4 }
 0x1bc   : > { %v769_v3 = vmax.f32 %v753_v56, 0.0  ;;  %v754_v7 = vsub.f32 %v722_v58, %v738_v6  ;;  %v2926_v8 = vmul.f32 0.0078125, %v637_v62  ;;  %v2929_v9 = vadd.f32 %v2898_v27, %v848_v60 }
 0x1bd   : > { %v2376_v11 = vpop.eup %2375  ;;  %2216 = vmatprep.mubr.f32.mxu1 %v2924_v1  ;;  %v639_v15 = vpop.xlane.xlu1 %638 }
 0x1be   : > { %v801_v17 = vadd.f32 1e-05, %v769_v3  ;;  %v770_v18 = vmax.f32 %v754_v7, 0.0  ;;  %v739_v19 = vmul.f32 %v2926_v8, %v2926_v8  ;;  %2217 = vmatmul.mubr.f32.gmra.mxu1 %v2929_v9  ;;  %v2939_v61 = vmul.f32 0.0078125, %v639_v15 }
 0x1bf   : > { %v2378_v21 = vpop.eup %2377  ;;  %v702_v13 = vpop.xlane.xlu0 %701  ;;  %v829_v22 = vmul.f32 %v2376_v11, %v781_v12 }
 0x1c0   : > { %2383 = vrsqrt.f32 %v801_v17  ;;  %v802_v10 = vadd.f32 1e-05, %v770_v18  ;;  %v723_v41 = vmul.f32 0.0078125, %v702_v13  ;;  %v830_v24 = vmul.f32 %v2378_v21, %v782_v59 }
 0x1c1   : > { %v740_v26 = vmul.f32 %v2939_v61, %v2939_v61  ;;  %v704_v14 = vpop.xlane.xlu1 %703  ;;  %v849_v48 = vmul.f32 %v2888_v16, %v829_v22  ;;  %v786_v13 = vsub.f32 %v2801_v36, %v2916_v50 }
 0x1c2   : > { %2385 = vrsqrt.f32 %v802_v10  ;;  %v755_v29 = vsub.f32 %v723_v41, %v739_v19  ;;  %v724_v30 = vmul.f32 0.0078125, %v704_v14  ;;  %v850_v31 = vmul.f32 %v2888_v16, %v830_v24 }
 0x1c3   : > { %v641_v33 = vpop.xlane.xlu0 %640  ;;  %v2946_v37 = vadd.f32 %v2898_v27, %v849_v48  ;;  %v785_v19 = vsub.f32 %v2794_v32, %v2901_v34 }
 0x1c4   : > { %v771_v38 = vmax.f32 %v755_v29, 0.0  ;;  %v756_v39 = vsub.f32 %v724_v30, %v740_v26  ;;  %v2948_v43 = vmul.f32 0.0078125, %v641_v33  ;;  %v2951_v44 = vadd.f32 %v2898_v27, %v850_v31 }
 0x1c5   : > { %v2380_v45 = vpop.eup %2379  ;;  %2219 = vmatprep.mubr.f32.mxu1 %v2946_v37  ;;  %v643_v49 = vpop.xlane.xlu1 %642 }
 0x1c6   : > { %v803_v23 = vadd.f32 1e-05, %v771_v38  ;;  %v772_v51 = vmax.f32 %v756_v39, 0.0  ;;  %v741_v52 = vmul.f32 %v2948_v43, %v2948_v43  ;;  %2220 = vmatmul.mubr.f32.gmra.mxu1 %v2951_v44  ;;  %v2961_v6 = vmul.f32 0.0078125, %v643_v49 }
 0x1c7   : > { %v2382_v53 = vpop.eup %2381  ;;  %v706_v28 = vpop.xlane.xlu0 %705  ;;  %v831_v54 = vmul.f32 %v2380_v45, %v783_v46  ;;  %v787_v45 = vsub.f32 %v2816_v42, %v2926_v8 }
 0x1c8   : > { %2387 = vrsqrt.f32 %v803_v23  ;;  %v804_v20 = vadd.f32 1e-05, %v772_v51  ;;  %v725_v4 = vmul.f32 0.0078125, %v706_v28  ;;  %v832_v56 = vmul.f32 %v2382_v53, %v784_v2 }
 0x1c9   : > { %v742_v58 = vmul.f32 %v2961_v6, %v2961_v6  ;;  %v708_v25 = vpop.xlane.xlu1 %707  ;;  %v851_v5 = vmul.f32 %v2888_v16, %v831_v54  ;;  %v788_v51 = vsub.f32 %v2825_v47, %v2939_v61  ;;  %v789_v47 = vsub.f32 %v2843_v55, %v2948_v43 }
 0x1ca   : > { %2389 = vrsqrt.f32 %v804_v20  ;;  %v757_v60 = vsub.f32 %v725_v4, %v741_v52  ;;  %v726_v62 = vmul.f32 0.0078125, %v708_v25  ;;  %v852_v3 = vmul.f32 %v2888_v16, %v832_v56 }
 0x1cb   : > { %v645_v7 = vpop.xlane.xlu0 %644  ;;  %v2968_v11 = vadd.f32 %v2898_v27, %v851_v5  ;;  %v790_v25 = vsub.f32 %v2845_v57, %v2961_v6 }
 0x1cc   : > { %v773_v12 = vmax.f32 %v757_v60, 0.0  ;;  %v758_v15 = vsub.f32 %v726_v62, %v742_v58  ;;  %v2970_v59 = vmul.f32 0.0078125, %v645_v7  ;;  %v2973_v17 = vadd.f32 %v2898_v27, %v852_v3 }
 0x1cd   : > { %v2384_v18 = vpop.eup %2383  ;;  %2222 = vmatprep.mubr.f32.mxu1 %v2968_v11  ;;  %v647_v21 = vpop.xlane.xlu1 %646 }
 0x1ce   : > { %v805_v22 = vadd.f32 1e-05, %v773_v12  ;;  %v774_v10 = vmax.f32 %v758_v15, 0.0  ;;  %v743_v41 = vmul.f32 %v2970_v59, %v2970_v59  ;;  %2223 = vmatmul.mubr.f32.gmra.mxu1 %v2973_v17  ;;  %v664_v26 = vmul.f32 0.0078125, %v647_v21 }
 0x1cf   : > { %v2386_v24 = vpop.eup %2385  ;;  %v710_v14 = vpop.xlane.xlu0 %709  ;;  %v833_v48 = vmul.f32 %v2384_v18, %v785_v19  ;;  %v791_v43 = vsub.f32 %v2853_v63, %v2970_v59 }
 0x1d0   : > { %2391 = vrsqrt.f32 %v805_v22  ;;  %v806_v29 = vadd.f32 1e-05, %v774_v10  ;;  %v727_v32 = vmul.f32 0.0078125, %v710_v14  ;;  %v834_v34 = vmul.f32 %v2386_v24, %v786_v13 }
 0x1d1   : > { %v744_v30 = vmul.f32 %v664_v26, %v664_v26  ;;  %v712_v31 = vpop.xlane.xlu1 %711  ;;  %v853_v33 = vmul.f32 %v2888_v16, %v833_v48  ;;  %v792_v6 = vsub.f32 %v2855_v0, %v664_v26  ;;  %v3037_v0 = vld [vmem:[%s3700_s4] ss:$0 sm:$0xff] }
 0x1d2   : > { %2393 = vrsqrt.f32 %v806_v29  ;;  %v759_v36 = vsub.f32 %v727_v32, %v743_v41  ;;  %v728_v50 = vmul.f32 0.0078125, %v712_v31  ;;  %v854_v38 = vmul.f32 %v2888_v16, %v834_v34 }
 0x1d3   : > { %v2986_v39 = vadd.f32 %v2898_v27, %v853_v33 }
 0x1d4   : > { %v775_v46 = vmax.f32 %v759_v36, 0.0  ;;  %v760_v49 = vsub.f32 %v728_v50, %v744_v30  ;;  %v2991_v2 = vadd.f32 %v2898_v27, %v854_v38  ;;  %v2016_v38 = vld [vmem:[%s3699_s3 + $0xf8] sm:$0xff] }
 0x1d5   : > { %v2388_v23 = vpop.eup %2387  ;;  %2225 = vmatprep.mubr.f32.mxu1 %v2986_v39  ;;  %2237 = vmatprep.subr.mxu0 %v2016_v38 }
 0x1d6   : > { %v807_v52 = vadd.f32 1e-05, %v775_v46  ;;  %v776_v53 = vmax.f32 %v760_v49, 0.0  ;;  %2226 = vmatmul.mubr.f32.gmra.mxu1 %v2991_v2  ;;  %v835_v28 = vmul.f32 %v2388_v23, %v787_v45  ;;  %2238 = vmatpush3.msra.mxu0 %v2016_v38  ;;  %v2014_v49 = vld [vmem:[%s3699_s3 + $0xe8] sm:$0xff] }
 0x1d7   : > { %v2390_v54 = vpop.eup %2389  ;;  %2293 = vmatprep.subr.mxu1 %v2016_v38 }
 0x1d8   : > { %2395 = vrsqrt.f32 %v807_v52  ;;  %v808_v20 = vadd.f32 1e-05, %v776_v53  ;;  %v855_v42 = vmul.f32 %v2888_v16, %v835_v28  ;;  %v836_v8 = vmul.f32 %v2390_v54, %v788_v51  ;;  %2309 = vmatpush3.msra.mxu1 %v2016_v38  ;;  %v2013_v51 = vld [vmem:[%s3699_s3 + $0xe0] sm:$0xff]  ;;  %v2012_v54 = vld [vmem:[%s3699_s3 + $0xd8] sm:$0xff] }
 0x1da   : > { %2397 = vrsqrt.f32 %v808_v20  ;;  %v2999_v4 = vadd.f32 %v2898_v27, %v855_v42  ;;  %v856_v56 = vmul.f32 %v2888_v16, %v836_v8  ;;  %v2011_v42 = vld [vmem:[%s3699_s3 + $0xd0] sm:$0xff] }
 0x1dc   : > { %2228 = vmatprep.mubr.f32.mxu1 %v2999_v4  ;;  %v3006_v61 = vadd.f32 %v2898_v27, %v856_v56 }
 0x1dd   : > { %v2392_v58 = vpop.eup %2391 }
 0x1de   : > { %2229 = vmatmul.mubr.f32.gmra.mxu1 %v3006_v61  ;;  %v837_v5 = vmul.f32 %v2392_v58, %v789_v47 }
 0x1df   : > { %v2394_v60 = vpop.eup %2393 }
 0x1e0   : > { %v857_v62 = vmul.f32 %v2888_v16, %v837_v5  ;;  %v838_v3 = vmul.f32 %v2394_v60, %v790_v25  ;;  %v2010_v25 = vld [vmem:[%s3699_s3 + $0xc8] sm:$0xff] }
 0x1e2   : > { %v3013_v7 = vadd.f32 %v2898_v27, %v857_v62  ;;  %v858_v55 = vmul.f32 %v2888_v16, %v838_v3 }
 0x1e4   : > { %2231 = vmatprep.mubr.f32.mxu1 %v3013_v7  ;;  %v3020_v12 = vadd.f32 %v2898_v27, %v858_v55 }
 0x1e5   : > { %v2396_v57 = vpop.eup %2395 }
 0x1e6   : > { %2232 = vmatmul.mubr.f32.gmra.mxu1 %v3020_v12  ;;  %v839_v15 = vmul.f32 %v2396_v57, %v791_v43  ;;  %v2008_v57 = vld [vmem:[%s3699_s3 + $0xb8] sm:$0xff] }
 0x1e7   : > { %v2398_v18 = vpop.eup %2397 }
 0x1e8   : > { %v859_v19 = vmul.f32 %v2888_v16, %v839_v15  ;;  %v840_v21 = vmul.f32 %v2398_v18, %v792_v6  ;;  %v2006_v18 = vld [vmem:[%s3699_s3 + $0xa8] sm:$0xff] }
 0x1ea   : > { %v3026_v13 = vadd.f32 %v2898_v27, %v859_v19  ;;  %v860_v63 = vmul.f32 %v2888_v16, %v840_v21  ;;  %v2005_v21 = vld [vmem:[%s3699_s3 + $0xa0] sm:$0xff] }
 0x1ec   : > { %2234 = vmatprep.mubr.f32.mxu1 %v3026_v13  ;;  %v3031_v59 = vadd.f32 %v2898_v27, %v860_v63 }
 0x1ee   : > { %2235 = vmatmul.mubr.f32.gmra.mxu1 %v3031_v59 }
 0x277   : > { %v2215_v22 = vpop.f32.mrf.mxu1 }
 0x278   : > { %v974_v10 = vadd.f32 %v2215_v22, %v3037_v0 }
 0x279   : > { %v968_v41 = vpop.f32.mrf.mxu1 }
 0x27a   : > { %v1048_v24 = vmax.f32 %v974_v10, 0.0  ;;  %v969_v26 = vadd.f32 %v3037_v0, %v968_v41 }
 0x27c   : > { %v3042_v16 = vadd.f32 %v1048_v24, %v2909_v40  ;;  %v1047_v14 = vmax.f32 %v969_v26, 0.0  ;;  %v2004_v24 = vld [vmem:[%s3699_s3 + $0x98] sm:$0xff] }
 0x27e   : > { %v3045_v27 = vadd.f32 %v1047_v14, %v2904_v35  ;;  %v2218_v48 = vpop.f32.mrf.mxu1  ;;  %1083 = vadd.xlane.f32.xlu1 %v3042_v16  ;;  %v1130_v34 = vmul.f32 %v3042_v16, %v3042_v16  ;;  %v2003_v14 = vld [vmem:[%s3699_s3 + $0x90] sm:$0xff] }
 0x27f   : > { %v984_v29 = vadd.f32 %v2218_v48, %v3037_v0 }
 0x280   : > { %v978_v32 = vpop.f32.mrf.mxu1  ;;  %1081 = vadd.xlane.f32.xlu0 %v3045_v27  ;;  %v1129_v40 = vmul.f32 %v3045_v27, %v3045_v27 }
 0x281   : > { %v1050_v30 = vmax.f32 %v984_v29, 0.0  ;;  %v979_v31 = vadd.f32 %v3037_v0, %v978_v32 }
 0x282   : > { %1147 = vadd.xlane.f32.xlu1 %v1130_v34 }
 0x283   : > { %v3056_v35 = vadd.f32 %v1050_v30, %v2929_v9  ;;  %v1049_v33 = vmax.f32 %v979_v31, 0.0  ;;  %v2015_v9 = vld [vmem:[%s3699_s3 + $0xf0] sm:$0xff]  ;;  %v2002_v31 = vld [vmem:[%s3699_s3 + $0x88] sm:$0xff] }
 0x284   : > { %1145 = vadd.xlane.f32.xlu0 %v1129_v40  ;;  %2239 = vmatprep.subr.mxu0 %v2015_v9 }
 0x285   : > { %v3060_v36 = vadd.f32 %v1049_v33, %v2924_v1  ;;  %v1132_v1 = vmul.f32 %v3056_v35, %v3056_v35  ;;  %2240 = vmatpush3.msra.mxu0 %v2015_v9  ;;  %2294 = vmatprep.subr.mxu1 %v2015_v9 }
 0x286   : > { %v2221_v50 = vpop.f32.mrf.mxu1  ;;  %2241 = vmatprep.subr.mxu0 %v2014_v49  ;;  %2310 = vmatpush3.msra.mxu1 %v2015_v9 }
 0x287   : > { %v994_v45 = vadd.f32 %v2221_v50, %v3037_v0  ;;  %2242 = vmatpush3.msra.mxu0 %v2014_v49  ;;  %v1131_v28 = vmul.f32 %v3060_v36, %v3060_v36  ;;  %2295 = vmatprep.subr.mxu1 %v2014_v49 }
 0x288   : > { %1087 = vadd.xlane.f32.xlu0 %v3056_v35  ;;  %v988_v46 = vpop.f32.mrf.mxu1  ;;  %2243 = vmatprep.subr.mxu0 %v2013_v51 }
 0x289   : > { %v1052_v52 = vmax.f32 %v994_v45, 0.0  ;;  %v989_v53 = vadd.f32 %v3037_v0, %v988_v46  ;;  %2244 = vmatpush3.msra.mxu0 %v2013_v51  ;;  %2311 = vmatpush3.msra.mxu1 %v2014_v49 }
 0x28a   : > { %2245 = vmatprep.subr.mxu0 %v2012_v54  ;;  %2296 = vmatprep.subr.mxu1 %v2013_v51 }
 0x28b   : > { %2246 = vmatpush3.msra.mxu0 %v2012_v54  ;;  %v3088_v8 = vadd.f32 %v1052_v52, %v2951_v44  ;;  %v1051_v56 = vmax.f32 %v989_v53, 0.0  ;;  %2312 = vmatpush3.msra.mxu1 %v2013_v51  ;;  %v2009_v44 = vld [vmem:[%s3699_s3 + $0xc0] sm:$0xff] }
 0x28c   : > { %1085 = vadd.xlane.f32.xlu0 %v3060_v36  ;;  %2247 = vmatprep.subr.mxu0 %v2011_v42 }
 0x28d   : > { %2248 = vmatpush3.msra.mxu0 %v2011_v42  ;;  %2297 = vmatprep.subr.mxu1 %v2012_v54  ;;  %v3100_v3 = vadd.f32 %v1051_v56, %v2946_v37  ;;  %v2007_v37 = vld [vmem:[%s3699_s3 + $0xb0] sm:$0xff]  ;;  %v1134_v6 = vmul.f32 %v3088_v8, %v3088_v8 }
 0x28e   : > { %v2224_v23 = vpop.f32.mrf.mxu1  ;;  %2249 = vmatprep.subr.mxu0 %v2010_v25  ;;  %2313 = vmatpush3.msra.mxu1 %v2012_v54 }
 0x28f   : > { %2250 = vmatpush3.msra.mxu0 %v2010_v25  ;;  %2298 = vmatprep.subr.mxu1 %v2011_v42  ;;  %v1133_v22 = vmul.f32 %v3100_v3, %v3100_v3 }
 0x290   : > { %1151 = vadd.xlane.f32.xlu0 %v1132_v1  ;;  %v998_v20 = vpop.f32.mrf.mxu1  ;;  %2251 = vmatprep.subr.mxu0 %v2009_v44 }
 0x291   : > { %2252 = vmatpush3.msra.mxu0 %v2009_v44  ;;  %2314 = vmatpush3.msra.mxu1 %v2011_v42 }
 0x292   : > { %2253 = vmatprep.subr.mxu0 %v2008_v57  ;;  %2299 = vmatprep.subr.mxu1 %v2010_v25 }
 0x293   : > { %2254 = vmatpush3.msra.mxu0 %v2008_v57  ;;  %2315 = vmatpush3.msra.mxu1 %v2010_v25 }
 0x294   : > { %1149 = vadd.xlane.f32.xlu0 %v1131_v28  ;;  %2255 = vmatprep.subr.mxu0 %v2007_v37 }
 0x295   : > { %2256 = vmatpush3.msra.mxu0 %v2007_v37  ;;  %2300 = vmatprep.subr.mxu1 %v2009_v44 }
 0x296   : > { %v2227_v47 = vpop.f32.mrf.mxu1  ;;  %2257 = vmatprep.subr.mxu0 %v2006_v18  ;;  %2316 = vmatpush3.msra.mxu1 %v2009_v44 }
 0x297   : > { %v1014_v58 = vadd.f32 %v2227_v47, %v3037_v0  ;;  %2258 = vmatpush3.msra.mxu0 %v2006_v18  ;;  %2301 = vmatprep.subr.mxu1 %v2008_v57 }
 0x298   : > { %v1008_v5 = vpop.f32.mrf.mxu1  ;;  %1091 = vadd.xlane.f32.xlu0 %v3088_v8  ;;  %2259 = vmatprep.subr.mxu0 %v2005_v21 }
 0x299   : > { %v1056_v60 = vmax.f32 %v1014_v58, 0.0  ;;  %v1009_v62 = vadd.f32 %v3037_v0, %v1008_v5  ;;  %2260 = vmatpush3.msra.mxu0 %v2005_v21  ;;  %2317 = vmatpush3.msra.mxu1 %v2008_v57 }
 0x29a   : > { %2261 = vmatprep.subr.mxu0 %v2004_v24  ;;  %2302 = vmatprep.subr.mxu1 %v2007_v37 }
 0x29b   : > { %v3103_v55 = vadd.f32 %v1056_v60, %v2991_v2  ;;  %v1055_v43 = vmax.f32 %v1009_v62, 0.0  ;;  %v1004_v2 = vadd.f32 %v2224_v23, %v3037_v0  ;;  %2262 = vmatpush3.msra.mxu0 %v2004_v24  ;;  %2318 = vmatpush3.msra.mxu1 %v2007_v37 }
 0x29c   : > { %1089 = vadd.xlane.f32.xlu0 %v3100_v3  ;;  %2263 = vmatprep.subr.mxu0 %v2003_v14 }
 0x29d   : > { %1099 = vadd.xlane.f32.xlu1 %v3103_v55  ;;  %v3117_v15 = vadd.f32 %v1055_v43, %v2986_v39  ;;  %v1054_v63 = vmax.f32 %v1004_v2, 0.0  ;;  %v999_v39 = vadd.f32 %v3037_v0, %v998_v20  ;;  %v1138_v41 = vmul.f32 %v3103_v55, %v3103_v55  ;;  %2264 = vmatpush3.msra.mxu0 %v2003_v14 }
 0x29e   : > { %v2230_v19 = vpop.f32.mrf.mxu1  ;;  %2265 = vmatprep.subr.mxu0 %v2002_v31  ;;  %2303 = vmatprep.subr.mxu1 %v2006_v18 }
 0x29f   : > { %v1024_v10 = vadd.f32 %v2230_v19, %v3037_v0  ;;  %v3139_v48 = vadd.f32 %v1054_v63, %v2973_v17  ;;  %v1053_v29 = vmax.f32 %v999_v39, 0.0  ;;  %v1137_v30 = vmul.f32 %v3117_v15, %v3117_v15  ;;  %2266 = vmatpush3.msra.mxu0 %v2002_v31  ;;  %v2001_v17 = vld [vmem:[%s3699_s3 + $0x80] sm:$0xff]  ;;  %2319 = vmatpush3.msra.mxu1 %v2006_v18 }
 0x2a0   : > { %1155 = vadd.xlane.f32.xlu0 %v1134_v6  ;;  %v1018_v26 = vpop.f32.mrf.mxu1  ;;  %2267 = vmatprep.subr.mxu0 %v2001_v17 }
 0x2a1   : > { %1097 = vadd.xlane.f32.xlu1 %v3117_v15  ;;  %v1058_v32 = vmax.f32 %v1024_v10, 0.0  ;;  %v1019_v34 = vadd.f32 %v3037_v0, %v1018_v26  ;;  %v3152_v33 = vadd.f32 %v1053_v29, %v2968_v11  ;;  %2268 = vmatpush3.msra.mxu0 %v2001_v17  ;;  %v1136_v11 = vmul.f32 %v3139_v48, %v3139_v48 }
 0x2a2   : > { %2304 = vmatprep.subr.mxu1 %v2005_v21 }
 0x2a3   : > { %v3155_v50 = vadd.f32 %v1058_v32, %v3006_v61  ;;  %v1057_v38 = vmax.f32 %v1019_v34, 0.0  ;;  %2320 = vmatpush3.msra.mxu1 %v2005_v21  ;;  %v1135_v49 = vmul.f32 %v3152_v33, %v3152_v33 }
 0x2a4   : > { %1153 = vadd.xlane.f32.xlu0 %v1133_v22  ;;  %2305 = vmatprep.subr.mxu1 %v2004_v24 }
 0x2a5   : > { %1163 = vadd.xlane.f32.xlu1 %v1138_v41  ;;  %v3162_v46 = vadd.f32 %v1057_v38, %v2999_v4  ;;  %2321 = vmatpush3.msra.mxu1 %v2004_v24  ;;  %v1140_v4 = vmul.f32 %v3155_v50, %v3155_v50 }
 0x2a6   : > { %v2233_v40 = vpop.f32.mrf.mxu1  ;;  %2306 = vmatprep.subr.mxu1 %v2003_v14 }
 0x2a7   : > { %v1034_v23 = vadd.f32 %v2233_v40, %v3037_v0  ;;  %2322 = vmatpush3.msra.mxu1 %v2003_v14  ;;  %v1139_v54 = vmul.f32 %v3162_v46, %v3162_v46 }
 0x2a8   : > { %1095 = vadd.xlane.f32.xlu0 %v3139_v48  ;;  %v1028_v9 = vpop.f32.mrf.mxu1  ;;  %2307 = vmatprep.subr.mxu1 %v2002_v31 }
 0x2a9   : > { %1161 = vadd.xlane.f32.xlu1 %v1137_v30  ;;  %2323 = vmatpush3.msra.mxu1 %v2002_v31  ;;  %v1060_v53 = vmax.f32 %v1034_v23, 0.0  ;;  %v1029_v28 = vadd.f32 %v3037_v0, %v1028_v9  ;;  %v3208_v23 = vld [vmem:[%s3701_s5 + $0x1] ss:$0 sm:$0xff] }
 0x2aa   : > { %2308 = vmatprep.subr.mxu1 %v2001_v17 }
 0x2ab   : > { %2324 = vmatpush3.msra.mxu1 %v2001_v17  ;;  %v3181_v42 = vadd.f32 %v1060_v53, %v3020_v12 }
 0x2ac   : > { %1093 = vadd.xlane.f32.xlu0 %v3152_v33 }
 0x2ad   : > { %1103 = vadd.xlane.f32.xlu1 %v3155_v50  ;;  %v1142_v58 = vmul.f32 %v3181_v42, %v3181_v42 }
 0x2ae   : > { %v2236_v45 = vpop.f32.mrf.mxu1 }
 0x2af   : > { %v1044_v47 = vadd.f32 %v2236_v45, %v3037_v0 }
 0x2b0   : > { %1159 = vadd.xlane.f32.xlu0 %v1136_v11  ;;  %v1038_v61 = vpop.f32.mrf.mxu1 }
 0x2b1   : > { %v1039_v1 = vadd.f32 %v3037_v0, %v1038_v61  ;;  %1101 = vadd.xlane.f32.xlu1 %v3162_v46  ;;  %v1062_v25 = vmax.f32 %v1044_v47, 0.0 }
 0x2b3   : > { %v1061_v51 = vmax.f32 %v1039_v1, 0.0  ;;  %v3194_v5 = vadd.f32 %v1062_v25, %v3031_v59 }
 0x2b4   : > { %1157 = vadd.xlane.f32.xlu0 %v1135_v49 }
 0x2b5   : > { %v3172_v52 = vadd.f32 %v1061_v51, %v3026_v13  ;;  %1167 = vadd.xlane.f32.xlu1 %v1140_v4  ;;  %v1059_v13 = vmax.f32 %v1029_v28, 0.0 }
 0x2b7   : > { %v1143_v20 = vmul.f32 %v3172_v52, %v3172_v52  ;;  %v3185_v56 = vadd.f32 %v1059_v13, %v3013_v7  ;;  %v1144_v7 = vmul.f32 %v3194_v5, %v3194_v5 }
 0x2b8   : > { %1109 = vadd.xlane.f32.xlu0 %v3172_v52 }
 0x2b9   : > { %1165 = vadd.xlane.f32.xlu1 %v1139_v54  ;;  %v1141_v12 = vmul.f32 %v3185_v56, %v3185_v56 }
 0x2bc   : > { %1173 = vadd.xlane.f32.xlu0 %v1143_v20 }
 0x2bd   : > { %1107 = vadd.xlane.f32.xlu1 %v3181_v42 }
 0x2c1   : > { %1105 = vadd.xlane.f32.xlu1 %v3185_v56 }
 0x2c5   : > { %1171 = vadd.xlane.f32.xlu1 %v1142_v58 }
 0x2c9   : > { %1169 = vadd.xlane.f32.xlu1 %v1141_v12 }
 0x2cd   : > { %1111 = vadd.xlane.f32.xlu1 %v3194_v5 }
 0x2d1   : > { %1175 = vadd.xlane.f32.xlu1 %v1144_v7 }
 0x307   : > { %v1084_v44 = vpop.xlane.xlu1 %1083 }
 0x308   : > { %v1114_v0 = vmul.f32 0.0078125, %v1084_v44 }
 0x309   : > { %v1082_v60 = vpop.xlane.xlu0 %1081 }
 0x30a   : > { %v1113_v62 = vmul.f32 0.0078125, %v1082_v60  ;;  %v1194_v57 = vmul.f32 %v1114_v0, %v1114_v0  ;;  %v1242_v38 = vsub.f32 %v3042_v16, %v1114_v0 }
 0x30b   : > { %v1148_v43 = vpop.xlane.xlu1 %1147 }
 0x30c   : > { %v1178_v37 = vmul.f32 0.0078125, %v1148_v43  ;;  %v1193_v6 = vmul.f32 %v1113_v62, %v1113_v62  ;;  %v1241_v1 = vsub.f32 %v3045_v27, %v1113_v62  ;;  %v3216_v27 = vld [vmem:[%s3702_s6 + $0x1] ss:$0 sm:$0xff] }
 0x30d   : > { %v1146_v2 = vpop.xlane.xlu0 %1145 }
 0x30e   : > { %v1210_v18 = vsub.f32 %v1178_v37, %v1194_v57  ;;  %v1177_v19 = vmul.f32 0.0078125, %v1146_v2 }
 0x310   : > { %v1226_v21 = vmax.f32 %v1210_v18, 0.0  ;;  %v1209_v59 = vsub.f32 %v1177_v19, %v1193_v6 }
 0x311   : > { %v1088_v63 = vpop.xlane.xlu0 %1087 }
 0x312   : > { %v1258_v39 = vadd.f32 1e-05, %v1226_v21  ;;  %v1225_v22 = vmax.f32 %v1209_v59, 0.0  ;;  %v1116_v24 = vmul.f32 0.0078125, %v1088_v63 }
 0x314   : > { %2399 = vrsqrt.f32 %v1258_v39  ;;  %v1257_v10 = vadd.f32 1e-05, %v1225_v22  ;;  %v1196_v14 = vmul.f32 %v1116_v24, %v1116_v24  ;;  %v1244_v21 = vsub.f32 %v3056_v35, %v1116_v24 }
 0x315   : > { %v1086_v41 = vpop.xlane.xlu0 %1085 }
 0x316   : > { %2401 = vrsqrt.f32 %v1257_v10  ;;  %v3199_v29 = vmul.f32 0.0078125, %v1086_v41 }
 0x318   : > { %v1195_v31 = vmul.f32 %v3199_v29, %v3199_v29 }
 0x319   : > { %v1152_v26 = vpop.xlane.xlu0 %1151 }
 0x31a   : > { %v1180_v32 = vmul.f32 0.0078125, %v1152_v26 }
 0x31c   : > { %v1212_v34 = vsub.f32 %v1180_v32, %v1196_v14  ;;  %v1243_v32 = vsub.f32 %v3060_v36, %v3199_v29 }
 0x31d   : > { %v1150_v30 = vpop.xlane.xlu0 %1149 }
 0x31e   : > { %v1228_v40 = vmax.f32 %v1212_v34, 0.0  ;;  %v1179_v17 = vmul.f32 0.0078125, %v1150_v30 }
 0x320   : > { %v1260_v9 = vadd.f32 1e-05, %v1228_v40  ;;  %v1211_v45 = vsub.f32 %v1179_v17, %v1195_v31 }
 0x321   : > { %v2400_v11 = vpop.eup %2399  ;;  %v1092_v61 = vpop.xlane.xlu0 %1091 }
 0x322   : > { %2403 = vrsqrt.f32 %v1260_v9  ;;  %v1227_v49 = vmax.f32 %v1211_v45, 0.0  ;;  %v1290_v51 = vmul.f32 %v2400_v11, %v1242_v38  ;;  %v3211_v20 = vmul.f32 0.0078125, %v1092_v61 }
 0x323   : > { %v2402_v4 = vpop.eup %2401 }
 0x324   : > { %v1259_v53 = vadd.f32 1e-05, %v1227_v49  ;;  %v1289_v28 = vmul.f32 %v2402_v4, %v1241_v1  ;;  %v1310_v16 = vmul.f32 %v3208_v23, %v1290_v51  ;;  %v1198_v7 = vmul.f32 %v3211_v20, %v3211_v20 }
 0x325   : > { %v1090_v54 = vpop.xlane.xlu0 %1089 }
 0x326   : > { %2405 = vrsqrt.f32 %v1259_v53  ;;  %v1100_v13 = vpop.xlane.xlu1 %1099  ;;  %v1309_v47 = vmul.f32 %v3208_v23, %v1289_v28  ;;  %v3223_v12 = vadd.f32 %v3216_v27, %v1310_v16  ;;  %v3227_v44 = vmul.f32 0.0078125, %v1090_v54 }
 0x327   : > { %v3230_v62 = vmul.f32 0.0078125, %v1100_v13 }
 0x328   : > { %v3220_v58 = vadd.f32 %v3216_v27, %v1309_v47  ;;  %v1197_v37 = vmul.f32 %v3227_v44, %v3227_v44 }
 0x329   : > { %v1156_v25 = vpop.xlane.xlu0 %1155  ;;  %v1202_v59 = vmul.f32 %v3230_v62, %v3230_v62 }
 0x32a   : > { %v1182_v0 = vmul.f32 0.0078125, %v1156_v25  ;;  %v1098_v60 = vpop.xlane.xlu1 %1097  ;;  %2269 = vmatprep.mubr.f32.mxu0 %v3220_v58 }
 0x32b   : > { %2270 = vmatmul.mubr.f32.vlgmr.msra.gmra.mxu0 %v3223_v12  ;;  %v3238_v63 = vmul.f32 0.0078125, %v1098_v60 }
 0x32c   : > { %v1214_v43 = vsub.f32 %v1182_v0, %v1198_v7 }
 0x32d   : > { %v1154_v57 = vpop.xlane.xlu0 %1153  ;;  %v1201_v35 = vmul.f32 %v3238_v63, %v3238_v63 }
 0x32e   : > { %v1230_v2 = vmax.f32 %v1214_v43, 0.0  ;;  %v1181_v6 = vmul.f32 0.0078125, %v1154_v57  ;;  %v1164_v18 = vpop.xlane.xlu1 %1163 }
 0x32f   : > { %v2404_v19 = vpop.eup %2403  ;;  %v1186_v39 = vmul.f32 0.0078125, %v1164_v18 }
 0x330   : > { %v1262_v22 = vadd.f32 1e-05, %v1230_v2  ;;  %v1213_v10 = vsub.f32 %v1181_v6, %v1197_v37  ;;  %v1292_v14 = vmul.f32 %v2404_v19, %v1244_v21  ;;  %v1246_v6 = vsub.f32 %v3088_v8, %v3211_v20 }
 0x331   : > { %v1218_v41 = vsub.f32 %v1186_v39, %v1202_v59  ;;  %v1096_v26 = vpop.xlane.xlu0 %1095 }
 0x332   : > { %2407 = vrsqrt.f32 %v1262_v22  ;;  %v1229_v34 = vmax.f32 %v1213_v10, 0.0  ;;  %v1162_v30 = vpop.xlane.xlu1 %1161  ;;  %v1312_v61 = vmul.f32 %v3208_v23, %v1292_v14  ;;  %v3245_v1 = vmul.f32 0.0078125, %v1096_v26 }
 0x333   : > { %v2406_v31 = vpop.eup %2405  ;;  %v1234_v24 = vmax.f32 %v1218_v41, 0.0  ;;  %v1185_v40 = vmul.f32 0.0078125, %v1162_v30  ;;  %v1245_v26 = vsub.f32 %v3100_v3, %v3227_v44 }
 0x334   : > { %v1261_v17 = vadd.f32 1e-05, %v1229_v34  ;;  %v1291_v38 = vmul.f32 %v2406_v31, %v1243_v32  ;;  %v3252_v28 = vadd.f32 %v3216_v27, %v1312_v61  ;;  %v1200_v54 = vmul.f32 %v3245_v1, %v3245_v1 }
 0x335   : > { %v1266_v9 = vadd.f32 1e-05, %v1234_v24  ;;  %v1217_v45 = vsub.f32 %v1185_v40, %v1201_v35  ;;  %v1094_v11 = vpop.xlane.xlu0 %1093  ;;  %v1250_v35 = vsub.f32 %v3103_v55, %v3230_v62 }
 0x336   : > { %2409 = vrsqrt.f32 %v1261_v17  ;;  %v1104_v36 = vpop.xlane.xlu1 %1103  ;;  %v1311_v29 = vmul.f32 %v3208_v23, %v1291_v38  ;;  %v3256_v16 = vmul.f32 0.0078125, %v1094_v11 }
 0x337   : > { %2411 = vrsqrt.f32 %v1266_v9  ;;  %v1233_v49 = vmax.f32 %v1217_v45, 0.0  ;;  %v3259_v25 = vmul.f32 0.0078125, %v1104_v36 }
 0x338   : > { %v3249_v51 = vadd.f32 %v3216_v27, %v1311_v29  ;;  %v1199_v60 = vmul.f32 %v3256_v16, %v3256_v16  ;;  %v1249_v29 = vsub.f32 %v3117_v15, %v3238_v63 }
 0x339   : > { %v1265_v4 = vadd.f32 1e-05, %v1233_v49  ;;  %v1160_v53 = vpop.xlane.xlu0 %1159  ;;  %v1204_v18 = vmul.f32 %v3259_v25, %v3259_v25 }
 0x33a   : > { %v1184_v13 = vmul.f32 0.0078125, %v1160_v53  ;;  %v1102_v47 = vpop.xlane.xlu1 %1101  ;;  %2272 = vmatprep.mubr.f32.mxu0 %v3249_v51 }
 0x33b   : > { %2413 = vrsqrt.f32 %v1265_v4  ;;  %2273 = vmatmul.mubr.f32.gmra.mxu0 %v3252_v28  ;;  %v3268_v19 = vmul.f32 0.0078125, %v1102_v47 }
 0x33c   : > { %v1216_v7 = vsub.f32 %v1184_v13, %v1200_v54 }
 0x33d   : > { %v1158_v0 = vpop.xlane.xlu0 %1157  ;;  %v1203_v8 = vmul.f32 %v3268_v19, %v3268_v19 }
 0x33e   : > { %v1232_v43 = vmax.f32 %v1216_v7, 0.0  ;;  %v1183_v57 = vmul.f32 0.0078125, %v1158_v0  ;;  %v1168_v37 = vpop.xlane.xlu1 %1167 }
 0x33f   : > { %v2408_v2 = vpop.eup %2407  ;;  %v1188_v21 = vmul.f32 0.0078125, %v1168_v37 }
 0x340   : > { %v1264_v59 = vadd.f32 1e-05, %v1232_v43  ;;  %v1215_v39 = vsub.f32 %v1183_v57, %v1199_v60  ;;  %v1294_v41 = vmul.f32 %v2408_v2, %v1246_v6  ;;  %v1248_v6 = vsub.f32 %v3139_v48, %v3245_v1 }
 0x341   : > { %v1220_v22 = vsub.f32 %v1188_v21, %v1204_v18  ;;  %v1110_v10 = vpop.xlane.xlu0 %1109 }
 0x342   : > { %2415 = vrsqrt.f32 %v1264_v59  ;;  %v1231_v14 = vmax.f32 %v1215_v39, 0.0  ;;  %v1166_v32 = vpop.xlane.xlu1 %1165  ;;  %v3276_v40 = vmul.f32 0.0078125, %v1110_v10  ;;  %v1314_v44 = vmul.f32 %v3208_v23, %v1294_v41 }
 0x343   : > { %v2410_v34 = vpop.eup %2409  ;;  %v1236_v20 = vmax.f32 %v1220_v22, 0.0  ;;  %v1187_v30 = vmul.f32 0.0078125, %v1166_v32  ;;  %v1247_v10 = vsub.f32 %v3152_v33, %v3256_v16  ;;  %v1251_v16 = vsub.f32 %v3162_v46, %v3268_v19 }
 0x344   : > { %v2412_v31 = vpop.eup %2411  ;;  %v1263_v24 = vadd.f32 1e-05, %v1231_v14  ;;  %v1293_v17 = vmul.f32 %v2410_v34, %v1245_v26  ;;  %v1207_v49 = vmul.f32 %v3276_v40, %v3276_v40  ;;  %v3288_v54 = vadd.f32 %v3216_v27, %v1314_v44 }
 0x345   : > { %v1268_v38 = vadd.f32 1e-05, %v1236_v20  ;;  %v1219_v9 = vsub.f32 %v1187_v30, %v1203_v8  ;;  %v1174_v3 = vpop.xlane.xlu0 %1173  ;;  %v1298_v36 = vmul.f32 %v2412_v31, %v1250_v35  ;;  %v1252_v8 = vsub.f32 %v3155_v50, %v3259_v25 }
 0x346   : > { %2417 = vrsqrt.f32 %v1263_v24  ;;  %v1191_v45 = vmul.f32 0.0078125, %v1174_v3  ;;  %v1108_v11 = vpop.xlane.xlu1 %1107  ;;  %v1313_v61 = vmul.f32 %v3208_v23, %v1293_v17 }
 0x347   : > { %2419 = vrsqrt.f32 %v1268_v38  ;;  %v1235_v55 = vmax.f32 %v1219_v9, 0.0  ;;  %v1318_v15 = vmul.f32 %v3208_v23, %v1298_v36  ;;  %v3292_v63 = vmul.f32 0.0078125, %v1108_v11 }
 0x348   : > { %v2414_v62 = vpop.eup %2413  ;;  %v3285_v4 = vadd.f32 %v3216_v27, %v1313_v61  ;;  %v1223_v47 = vsub.f32 %v1191_v45, %v1207_v49 }
 0x349   : > { %v1267_v53 = vadd.f32 1e-05, %v1235_v55  ;;  %v1297_v13 = vmul.f32 %v2414_v62, %v1249_v29  ;;  %v3300_v37 = vadd.f32 %v3216_v27, %v1318_v15  ;;  %v1206_v18 = vmul.f32 %v3292_v63, %v3292_v63 }
 0x34a   : > { %v1106_v7 = vpop.xlane.xlu1 %1105  ;;  %2275 = vmatprep.mubr.f32.mxu0 %v3285_v4  ;;  %v1239_v43 = vmax.f32 %v1223_v47, 0.0  ;;  %v1255_v15 = vsub.f32 %v3172_v52, %v3276_v40 }
 0x34b   : > { %2421 = vrsqrt.f32 %v1267_v53  ;;  %2276 = vmatmul.mubr.f32.gmra.mxu0 %v3288_v54  ;;  %v1317_v0 = vmul.f32 %v3208_v23, %v1297_v13  ;;  %v1125_v21 = vmul.f32 0.0078125, %v1106_v7  ;;  %v1254_v7 = vsub.f32 %v3181_v42, %v3292_v63 }
 0x34c   : > { %v1271_v41 = vadd.f32 1e-05, %v1239_v43 }
 0x34d   : > { %v3297_v60 = vadd.f32 %v3216_v27, %v1317_v0  ;;  %v1205_v32 = vmul.f32 %v1125_v21, %v1125_v21  ;;  %v1253_v43 = vsub.f32 %v3185_v56, %v1125_v21 }
 0x34e   : > { %v1172_v57 = vpop.xlane.xlu1 %1171  ;;  %2423 = vrsqrt.f32 %v1271_v41 }
 0x34f   : > { %v2416_v2 = vpop.eup %2415  ;;  %v1190_v59 = vmul.f32 0.0078125, %v1172_v57  ;;  %2281 = vmatprep.mubr.f32.mxu1 %v3297_v60 }
 0x350   : > { %2282 = vmatmul.mubr.f32.vlgmr.msra.gmra.mxu1 %v3300_v37  ;;  %v1296_v22 = vmul.f32 %v2416_v2, %v1248_v6 }
 0x351   : > { %v1222_v39 = vsub.f32 %v1190_v59, %v1206_v18 }
 0x352   : > { %v1170_v26 = vpop.xlane.xlu1 %1169  ;;  %v1316_v35 = vmul.f32 %v3208_v23, %v1296_v22 }
 0x353   : > { %v2418_v14 = vpop.eup %2417  ;;  %v1238_v34 = vmax.f32 %v1222_v39, 0.0  ;;  %v1189_v48 = vmul.f32 0.0078125, %v1170_v26 }
 0x354   : > { %v2420_v1 = vpop.eup %2419  ;;  %v1295_v20 = vmul.f32 %v2418_v14, %v1247_v10  ;;  %v3320_v25 = vadd.f32 %v3216_v27, %v1316_v35 }
 0x355   : > { %v1270_v30 = vadd.f32 1e-05, %v1238_v34  ;;  %v1221_v31 = vsub.f32 %v1189_v48, %v1205_v32  ;;  %v1300_v33 = vmul.f32 %v2420_v1, %v1252_v8 }
 0x356   : > { %v1112_v24 = vpop.xlane.xlu1 %1111  ;;  %v1315_v17 = vmul.f32 %v3208_v23, %v1295_v20 }
 0x357   : > { %2425 = vrsqrt.f32 %v1270_v30  ;;  %v1237_v38 = vmax.f32 %v1221_v31, 0.0  ;;  %v1128_v9 = vmul.f32 0.0078125, %v1112_v24  ;;  %v1320_v61 = vmul.f32 %v3208_v23, %v1300_v33 }
 0x358   : > { %v2422_v3 = vpop.eup %2421  ;;  %v3317_v44 = vadd.f32 %v3216_v27, %v1315_v17 }
 0x359   : > { %v1269_v50 = vadd.f32 1e-05, %v1237_v38  ;;  %v1299_v45 = vmul.f32 %v2422_v3, %v1251_v16  ;;  %v1208_v36 = vmul.f32 %v1128_v9, %v1128_v9  ;;  %v3330_v62 = vadd.f32 %v3216_v27, %v1320_v61 }
 0x35a   : > { %v1176_v11 = vpop.xlane.xlu1 %1175  ;;  %2278 = vmatprep.mubr.f32.mxu0 %v3317_v44  ;;  %v1256_v52 = vsub.f32 %v3194_v5, %v1128_v9  ;;  %v3363_v5 = vld [vmem:[%s3700_s4 + $0x1] ss:$0 sm:$0xff] }
 0x35b   : > { %2427 = vrsqrt.f32 %v1269_v50  ;;  %v1192_v46 = vmul.f32 0.0078125, %v1176_v11  ;;  %2279 = vmatmul.mubr.f32.gmra.mxu0 %v3320_v25  ;;  %v1319_v19 = vmul.f32 %v3208_v23, %v1299_v45  ;;  %v2424_v13 = vpop.eup %2423 }
 0x35c   : > { %v1303_v57 = vmul.f32 %v2424_v13, %v1255_v15 }
 0x35d   : > { %v1224_v29 = vsub.f32 %v1192_v46, %v1208_v36  ;;  %v3327_v55 = vadd.f32 %v3216_v27, %v1319_v19 }
 0x35e   : > { %v1323_v39 = vmul.f32 %v3208_v23, %v1303_v57 }
 0x35f   : > { %v1240_v49 = vmax.f32 %v1224_v29, 0.0  ;;  %2284 = vmatprep.mubr.f32.mxu1 %v3327_v55 }
 0x360   : > { %2285 = vmatmul.mubr.f32.gmra.mxu1 %v3330_v62  ;;  %v3351_v56 = vadd.f32 %v3216_v27, %v1323_v39 }
 0x361   : > { %v1272_v53 = vadd.f32 1e-05, %v1240_v49 }
 0x363   : > { %2429 = vrsqrt.f32 %v1272_v53 }
 0x364   : > { %v2426_v47 = vpop.eup %2425 }
 0x365   : > { %v1302_v0 = vmul.f32 %v2426_v47, %v1254_v7 }
 0x367   : > { %v1322_v18 = vmul.f32 %v3208_v23, %v1302_v0 }
 0x368   : > { %v2428_v2 = vpop.eup %2427 }
 0x369   : > { %v1301_v6 = vmul.f32 %v2428_v2, %v1253_v43  ;;  %v3346_v42 = vadd.f32 %v3216_v27, %v1322_v18 }
 0x36b   : > { %v1321_v59 = vmul.f32 %v3208_v23, %v1301_v6 }
 0x36d   : > { %v3343_v22 = vadd.f32 %v3216_v27, %v1321_v59 }
 0x36f   : > { %2287 = vmatprep.mubr.f32.mxu1 %v3343_v22 }
 0x370   : > { %v2430_v40 = vpop.eup %2429  ;;  %2288 = vmatmul.mubr.f32.gmra.mxu1 %v3346_v42 }
 0x371   : > { %2290 = vmatprep.mubr.f32.mxu1 %v3351_v56  ;;  %v1304_v63 = vmul.f32 %v2430_v40, %v1256_v52 }
 0x373   : > { %v1324_v21 = vmul.f32 %v3208_v23, %v1304_v63 }
 0x375   : > { %v3357_v10 = vadd.f32 %v3216_v27, %v1324_v21 }
 0x377   : > { %2291 = vmatmul.mubr.f32.gmra.mxu1 %v3357_v10 }
 0x3eb   : > { %v2271_v41 = vpop.f32.mrf.mxu0 }
 0x3ec   : > { %v1439_v26 = vadd.f32 %v2271_v41, %v3363_v5 }
 0x3ed   : > { %v1433_v14 = vpop.f32.mrf.mxu0 }
 0x3ee   : > { %v1513_v32 = vmax.f32 %v1439_v26, 0.0  ;;  %v1434_v34 = vadd.f32 %v3363_v5, %v1433_v14 }
 0x3f0   : > { %v3368_v48 = vadd.f32 %v1513_v32, %v3223_v12  ;;  %v1512_v23 = vmax.f32 %v1434_v34, 0.0 }
 0x3f2   : > { %v3371_v27 = vadd.f32 %v1512_v23, %v3220_v58  ;;  %1548 = vadd.xlane.f32.xlu1 %v3368_v48  ;;  %v1595_v1 = vmul.f32 %v3368_v48, %v3368_v48 }
 0x3f4   : > { %1546 = vadd.xlane.f32.xlu0 %v3371_v27  ;;  %v1594_v8 = vmul.f32 %v3371_v27, %v3371_v27 }
 0x3f6   : > { %1612 = vadd.xlane.f32.xlu1 %v1595_v1 }
 0x3f8   : > { %1610 = vadd.xlane.f32.xlu0 %v1594_v8 }
 0x3fb   : > { %v2274_v20 = vpop.f32.mrf.mxu0 }
 0x3fc   : > { %v1449_v12 = vadd.f32 %v2274_v20, %v3363_v5 }
 0x3fd   : > { %v1443_v30 = vpop.f32.mrf.mxu0 }
 0x3fe   : > { %v1515_v31 = vmax.f32 %v1449_v12, 0.0  ;;  %v1444_v58 = vadd.f32 %v3363_v5, %v1443_v30 }
 0x400   : > { %v3382_v35 = vadd.f32 %v1515_v31, %v3252_v28  ;;  %v1514_v24 = vmax.f32 %v1444_v58, 0.0 }
 0x402   : > { %v3385_v17 = vadd.f32 %v1514_v24, %v3249_v51  ;;  %1552 = vadd.xlane.f32.xlu1 %v3382_v35  ;;  %v1597_v33 = vmul.f32 %v3382_v35, %v3382_v35 }
 0x404   : > { %1550 = vadd.xlane.f32.xlu0 %v3385_v17  ;;  %v1596_v16 = vmul.f32 %v3385_v17, %v3385_v17 }
 0x406   : > { %1616 = vadd.xlane.f32.xlu1 %v1597_v33 }
 0x408   : > { %1614 = vadd.xlane.f32.xlu0 %v1596_v16 }
 0x40b   : > { %v2277_v38 = vpop.f32.mrf.mxu0 }
 0x40c   : > { %v1459_v28 = vadd.f32 %v2277_v38, %v3363_v5 }
 0x40d   : > { %v1453_v9 = vpop.f32.mrf.mxu0 }
 0x40e   : > { %v1517_v3 = vmax.f32 %v1459_v28, 0.0  ;;  %v1454_v51 = vadd.f32 %v3363_v5, %v1453_v9 }
 0x410   : > { %v3396_v50 = vadd.f32 %v1517_v3, %v3288_v54  ;;  %v1516_v45 = vmax.f32 %v1454_v51, 0.0  ;;  %v2283_v46 = vpop.f32.mrf.mxu1 }
 0x411   : > { %v1479_v13 = vadd.f32 %v2283_v46, %v3363_v5 }
 0x412   : > { %v3399_v11 = vadd.f32 %v1516_v45, %v3285_v4  ;;  %1556 = vadd.xlane.f32.xlu1 %v3396_v50  ;;  %v1599_v61 = vmul.f32 %v3396_v50, %v3396_v50  ;;  %v1473_v53 = vpop.f32.mrf.mxu1 }
 0x413   : > { %v1474_v15 = vadd.f32 %v3363_v5, %v1473_v53  ;;  %v1521_v57 = vmax.f32 %v1479_v13, 0.0 }
 0x414   : > { %1554 = vadd.xlane.f32.xlu0 %v3399_v11  ;;  %v1598_v36 = vmul.f32 %v3399_v11, %v3399_v11 }
 0x415   : > { %v1520_v6 = vmax.f32 %v1474_v15, 0.0  ;;  %v3424_v59 = vadd.f32 %v1521_v57, %v3300_v37 }
 0x416   : > { %1620 = vadd.xlane.f32.xlu1 %v1599_v61 }
 0x417   : > { %v3428_v39 = vadd.f32 %v1520_v6, %v3297_v60  ;;  %v1603_v63 = vmul.f32 %v3424_v59, %v3424_v59 }
 0x418   : > { %1618 = vadd.xlane.f32.xlu0 %v1598_v36 }
 0x419   : > { %v1602_v37 = vmul.f32 %v3428_v39, %v3428_v39 }
 0x41b   : > { %v2280_v19 = vpop.f32.mrf.mxu0 }
 0x41c   : > { %v1469_v54 = vadd.f32 %v2280_v19, %v3363_v5 }
 0x41d   : > { %v1463_v29 = vpop.f32.mrf.mxu0 }
 0x41e   : > { %v1519_v49 = vmax.f32 %v1469_v54, 0.0  ;;  %v1464_v4 = vadd.f32 %v3363_v5, %v1463_v29 }
 0x420   : > { %v3411_v47 = vadd.f32 %v1519_v49, %v3320_v25  ;;  %v1518_v7 = vmax.f32 %v1464_v4, 0.0  ;;  %v2286_v43 = vpop.f32.mrf.mxu1 }
 0x422   : > { %v3415_v0 = vadd.f32 %v1518_v7, %v3317_v44  ;;  %1560 = vadd.xlane.f32.xlu1 %v3411_v47  ;;  %v1601_v2 = vmul.f32 %v3411_v47, %v3411_v47  ;;  %v1483_v18 = vpop.f32.mrf.mxu1  ;;  %v1489_v44 = vadd.f32 %v2286_v43, %v3363_v5 }
 0x423   : > { %v1484_v52 = vadd.f32 %v3363_v5, %v1483_v18 }
 0x424   : > { %1558 = vadd.xlane.f32.xlu0 %v3415_v0  ;;  %v1600_v25 = vmul.f32 %v3415_v0, %v3415_v0  ;;  %v1523_v40 = vmax.f32 %v1489_v44, 0.0 }
 0x425   : > { %v1522_v21 = vmax.f32 %v1484_v52, 0.0 }
 0x426   : > { %1624 = vadd.xlane.f32.xlu1 %v1601_v2  ;;  %v3438_v41 = vadd.f32 %v1523_v40, %v3330_v62 }
 0x427   : > { %v3442_v14 = vadd.f32 %v1522_v21, %v3327_v55 }
 0x428   : > { %1622 = vadd.xlane.f32.xlu0 %v1600_v25  ;;  %v1605_v1 = vmul.f32 %v3438_v41, %v3438_v41 }
 0x429   : > { %v1604_v8 = vmul.f32 %v3442_v14, %v3442_v14 }
 0x42a   : > { %1564 = vadd.xlane.f32.xlu1 %v3424_v59 }
 0x42c   : > { %1562 = vadd.xlane.f32.xlu0 %v3428_v39 }
 0x42e   : > { %1628 = vadd.xlane.f32.xlu1 %v1603_v63 }
 0x430   : > { %v2289_v60 = vpop.f32.mrf.mxu1  ;;  %1626 = vadd.xlane.f32.xlu0 %v1602_v37 }
 0x431   : > { %v1499_v26 = vadd.f32 %v2289_v60, %v3363_v5 }
 0x432   : > { %v1493_v32 = vpop.f32.mrf.mxu1  ;;  %1568 = vadd.xlane.f32.xlu1 %v3438_v41 }
 0x433   : > { %v1494_v34 = vadd.f32 %v3363_v5, %v1493_v32  ;;  %v1525_v23 = vmax.f32 %v1499_v26, 0.0 }
 0x434   : > { %1566 = vadd.xlane.f32.xlu0 %v3442_v14 }
 0x435   : > { %v1524_v62 = vmax.f32 %v1494_v34, 0.0  ;;  %v3452_v55 = vadd.f32 %v1525_v23, %v3346_v42 }
 0x436   : > { %1632 = vadd.xlane.f32.xlu1 %v1605_v1 }
 0x437   : > { %v2292_v20 = vpop.f32.mrf.mxu1  ;;  %v3456_v31 = vadd.f32 %v1524_v62, %v3343_v22  ;;  %v1607_v33 = vmul.f32 %v3452_v55, %v3452_v55 }
 0x438   : > { %v1509_v12 = vadd.f32 %v2292_v20, %v3363_v5  ;;  %1630 = vadd.xlane.f32.xlu0 %v1604_v8 }
 0x439   : > { %v1503_v30 = vpop.f32.mrf.mxu1  ;;  %v1606_v42 = vmul.f32 %v3456_v31, %v3456_v31 }
 0x43a   : > { %v1504_v58 = vadd.f32 %v3363_v5, %v1503_v30  ;;  %1572 = vadd.xlane.f32.xlu1 %v3452_v55  ;;  %v1527_v24 = vmax.f32 %v1509_v12, 0.0 }
 0x43c   : > { %1570 = vadd.xlane.f32.xlu0 %v3456_v31  ;;  %v1526_v16 = vmax.f32 %v1504_v58, 0.0  ;;  %v3466_v38 = vadd.f32 %v1527_v24, %v3357_v10 }
 0x43e   : > { %1636 = vadd.xlane.f32.xlu1 %v1607_v33  ;;  %v3469_v22 = vadd.f32 %v1526_v16, %v3351_v56  ;;  %v1609_v5 = vmul.f32 %v3466_v38, %v3466_v38 }
 0x440   : > { %1634 = vadd.xlane.f32.xlu0 %v1606_v42  ;;  %v1608_v28 = vmul.f32 %v3469_v22, %v3469_v22 }
 0x442   : > { %1576 = vadd.xlane.f32.xlu1 %v3466_v38 }
 0x444   : > { %1574 = vadd.xlane.f32.xlu0 %v3469_v22 }
 0x446   : > { %1640 = vadd.xlane.f32.xlu1 %v1609_v5 }
 0x448   : > { %1638 = vadd.xlane.f32.xlu0 %v1608_v28 }
 0x47b   : > { %v1549_v9 = vpop.xlane.xlu1 %1548 }
 0x47c   : > { %v3477_v53 = vmul.f32 0.0078125, %v1549_v9 }
 0x47d   : > { %v1547_v3 = vpop.xlane.xlu0 %1546 }
 0x47e   : > { %v1659_v57 = vmul.f32 %v3477_v53, %v3477_v53  ;;  %v3483_v2 = vmul.f32 0.0078125, %v1547_v3 }
 0x47f   : > { %v1613_v10 = vpop.xlane.xlu1 %1612 }
 0x480   : > { %v1643_v7 = vmul.f32 0.0078125, %v1613_v10  ;;  %v1658_v60 = vmul.f32 %v3483_v2, %v3483_v2 }
 0x481   : > { %v1611_v51 = vpop.xlane.xlu0 %1610 }
 0x482   : > { %v1675_v44 = vsub.f32 %v1643_v7, %v1659_v57  ;;  %v1642_v40 = vmul.f32 0.0078125, %v1611_v51 }
 0x484   : > { %v1691_v62 = vmax.f32 %v1675_v44, 0.0  ;;  %v1674_v12 = vsub.f32 %v1642_v40, %v1658_v60 }
 0x48b   : > { %v1553_v45 = vpop.xlane.xlu1 %1552 }
 0x48c   : > { %v3493_v26 = vmul.f32 0.0078125, %v1553_v45 }
 0x48d   : > { %v1551_v61 = vpop.xlane.xlu0 %1550 }
 0x48e   : > { %v3503_v16 = vmul.f32 0.0078125, %v1551_v61  ;;  %v1661_v9 = vmul.f32 %v3493_v26, %v3493_v26 }
 0x48f   : > { %v1617_v56 = vpop.xlane.xlu1 %1616 }
 0x490   : > { %v1645_v30 = vmul.f32 0.0078125, %v1617_v56  ;;  %v1723_v56 = vadd.f32 1e-05, %v1691_v62 }
 0x491   : > { %v1615_v36 = vpop.xlane.xlu0 %1614 }
 0x492   : > { %v1677_v61 = vsub.f32 %v1645_v30, %v1661_v9  ;;  %2431 = vrsqrt.f32 %v1723_v56 }
 0x49b   : > { %v1557_v46 = vpop.xlane.xlu1 %1556 }
 0x49c   : > { %v3479_v15 = vmul.f32 0.0078125, %v1557_v46  ;;  %v1644_v46 = vmul.f32 0.0078125, %v1615_v36 }
 0x49d   : > { %v1555_v19 = vpop.xlane.xlu0 %1554 }
 0x49e   : > { %v3485_v6 = vmul.f32 0.0078125, %v1555_v19  ;;  %v1663_v63 = vmul.f32 %v3479_v15, %v3479_v15 }
 0x49f   : > { %v1621_v54 = vpop.xlane.xlu1 %1620 }
 0x4a0   : > { %v1647_v25 = vmul.f32 0.0078125, %v1621_v54  ;;  %v1662_v32 = vmul.f32 %v3485_v6, %v3485_v6 }
 0x4a1   : > { %v1619_v29 = vpop.xlane.xlu0 %1618 }
 0x4a2   : > { %v1646_v21 = vmul.f32 0.0078125, %v1619_v29  ;;  %v1679_v34 = vsub.f32 %v1647_v25, %v1663_v63  ;;  %v1690_v25 = vmax.f32 %v1674_v12, 0.0 }
 0x4a4   : > { %v1678_v58 = vsub.f32 %v1646_v21, %v1662_v32  ;;  %v1695_v3 = vmax.f32 %v1679_v34, 0.0  ;;  %v1693_v32 = vmax.f32 %v1677_v61, 0.0 }
 0x4a6   : > { %v1694_v29 = vmax.f32 %v1678_v58, 0.0  ;;  %v1727_v44 = vadd.f32 1e-05, %v1695_v3  ;;  %v1722_v58 = vadd.f32 1e-05, %v1690_v25 }
 0x4a8   : > { %v1726_v34 = vadd.f32 1e-05, %v1694_v29  ;;  %2433 = vrsqrt.f32 %v1727_v44 }
 0x4aa   : > { %2435 = vrsqrt.f32 %v1726_v34 }
 0x4ab   : > { %v1561_v49 = vpop.xlane.xlu1 %1560 }
 0x4ac   : > { %v3501_v24 = vmul.f32 0.0078125, %v1561_v49 }
 0x4ad   : > { %v1559_v4 = vpop.xlane.xlu0 %1558 }
 0x4ae   : > { %v3509_v10 = vmul.f32 0.0078125, %v1559_v4  ;;  %v1665_v49 = vmul.f32 %v3501_v24, %v3501_v24 }
 0x4af   : > { %v1625_v13 = vpop.xlane.xlu1 %1624 }
 0x4b0   : > { %v1649_v51 = vmul.f32 0.0078125, %v1625_v13  ;;  %v1664_v13 = vmul.f32 %v3509_v10, %v3509_v10 }
 0x4b1   : > { %v1623_v43 = vpop.xlane.xlu0 %1622 }
 0x4b2   : > { %v1648_v7 = vmul.f32 0.0078125, %v1623_v43  ;;  %v1681_v36 = vsub.f32 %v1649_v51, %v1665_v49  ;;  %v1725_v51 = vadd.f32 1e-05, %v1693_v32 }
 0x4b3   : > { %v1565_v18 = vpop.xlane.xlu1 %1564 }
 0x4b4   : > { %v3487_v52 = vmul.f32 0.0078125, %v1565_v18  ;;  %v1660_v18 = vmul.f32 %v3503_v16, %v3503_v16 }
 0x4b5   : > { %v1563_v37 = vpop.xlane.xlu0 %1562 }
 0x4b6   : > { %v3497_v23 = vmul.f32 0.0078125, %v1563_v37  ;;  %v1667_v8 = vmul.f32 %v3487_v52, %v3487_v52  ;;  %v1676_v21 = vsub.f32 %v1644_v46, %v1660_v18 }
 0x4b7   : > { %v1629_v1 = vpop.xlane.xlu1 %1628 }
 0x4b8   : > { %v1651_v20 = vmul.f32 0.0078125, %v1629_v1  ;;  %v1666_v42 = vmul.f32 %v3497_v23, %v3497_v23  ;;  %v1680_v1 = vsub.f32 %v1648_v7, %v1664_v13 }
 0x4b9   : > { %v1627_v33 = vpop.xlane.xlu0 %1626 }
 0x4ba   : > { %v1683_v5 = vsub.f32 %v1651_v20, %v1667_v8  ;;  %v1650_v28 = vmul.f32 0.0078125, %v1627_v33  ;;  %v1697_v33 = vmax.f32 %v1681_v36, 0.0 }
 0x4bb   : > { %v1569_v45 = vpop.xlane.xlu1 %1568 }
 0x4bc   : > { %v1682_v19 = vsub.f32 %v1650_v28, %v1666_v42  ;;  %v3511_v54 = vmul.f32 0.0078125, %v1569_v45  ;;  %v1699_v4 = vmax.f32 %v1683_v5, 0.0  ;;  %v1692_v5 = vmax.f32 %v1676_v21, 0.0 }
 0x4bd   : > { %v1567_v57 = vpop.xlane.xlu0 %1566  ;;  %v1696_v45 = vmax.f32 %v1680_v1, 0.0  ;;  %v2432_v1 = vpop.eup %2431 }
 0x4be   : > { %v3519_v40 = vmul.f32 0.0078125, %v1567_v57  ;;  %v1698_v37 = vmax.f32 %v1682_v19, 0.0  ;;  %v1669_v60 = vmul.f32 %v3511_v54, %v3511_v54  ;;  %v1731_v8 = vadd.f32 1e-05, %v1699_v4 }
 0x4bf   : > { %v1633_v63 = vpop.xlane.xlu1 %1632  ;;  %v1729_v19 = vadd.f32 1e-05, %v1697_v33  ;;  %v1724_v7 = vadd.f32 1e-05, %v1692_v5  ;;  %v1728_v18 = vadd.f32 1e-05, %v1696_v45  ;;  %v1707_v5 = vsub.f32 %v3368_v48, %v3477_v53 }
 0x4c0   : > { %v1653_v43 = vmul.f32 0.0078125, %v1633_v63  ;;  %v1668_v20 = vmul.f32 %v3519_v40, %v3519_v40  ;;  %v1730_v28 = vadd.f32 1e-05, %v1698_v37  ;;  %2437 = vrsqrt.f32 %v1731_v8 }
 0x4c1   : > { %v1631_v62 = vpop.xlane.xlu0 %1630  ;;  %2439 = vrsqrt.f32 %v1722_v58  ;;  %v1715_v48 = vsub.f32 %v3424_v59, %v3487_v52 }
 0x4c2   : > { %v1685_v12 = vsub.f32 %v1653_v43, %v1669_v60  ;;  %v1652_v30 = vmul.f32 0.0078125, %v1631_v62  ;;  %2441 = vrsqrt.f32 %v1730_v28  ;;  %v1711_v28 = vsub.f32 %v3396_v50, %v3479_v15 }
 0x4c3   : > { %v1573_v42 = vpop.xlane.xlu1 %1572  ;;  %2443 = vrsqrt.f32 %v1725_v51  ;;  %v1755_v50 = vmul.f32 %v2432_v1, %v1707_v5  ;;  %v1708_v1 = vsub.f32 %v3385_v17, %v3503_v16 }
 0x4c4   : > { %v1684_v9 = vsub.f32 %v1652_v30, %v1668_v20  ;;  %v3525_v3 = vmul.f32 0.0078125, %v1573_v42  ;;  %v1701_v46 = vmax.f32 %v1685_v12, 0.0  ;;  %2445 = vrsqrt.f32 %v1729_v19  ;;  %v2434_v30 = vpop.eup %2433 }
 0x4c5   : > { %v1571_v56 = vpop.xlane.xlu0 %1570  ;;  %2447 = vrsqrt.f32 %v1724_v7  ;;  %v2436_v51 = vpop.eup %2435 }
 0x4c6   : > { %v1700_v61 = vmax.f32 %v1684_v9, 0.0  ;;  %v3527_v29 = vmul.f32 0.0078125, %v1571_v56  ;;  %v1671_v57 = vmul.f32 %v3525_v3, %v3525_v3  ;;  %v1733_v44 = vadd.f32 1e-05, %v1701_v46 }
 0x4c7   : > { %v1637_v49 = vpop.xlane.xlu1 %1636  ;;  %2449 = vrsqrt.f32 %v1728_v18  ;;  %v3554_v18 = vld [vmem:[%s3701_s5 + $0x2] ss:$0 sm:$0xff] }
 0x4c8   : > { %v1655_v25 = vmul.f32 0.0078125, %v1637_v49  ;;  %v1670_v13 = vmul.f32 %v3527_v29, %v3527_v29  ;;  %v1732_v21 = vadd.f32 1e-05, %v1700_v61  ;;  %2451 = vrsqrt.f32 %v1733_v44 }
 0x4c9   : > { %v1635_v4 = vpop.xlane.xlu0 %1634  ;;  %v1710_v61 = vsub.f32 %v3399_v11, %v3485_v6  ;;  %v1759_v49 = vmul.f32 %v2434_v30, %v1711_v28  ;;  %v1714_v11 = vsub.f32 %v3428_v39, %v3497_v23  ;;  %v3565_v39 = vld [vmem:[%s3702_s6 + $0x2] ss:$0 sm:$0xff]  ;;  %v1718_v28 = vsub.f32 %v3456_v31, %v3527_v29 }
 0x4ca   : > { %v1687_v36 = vsub.f32 %v1655_v25, %v1671_v57  ;;  %v1654_v63 = vmul.f32 0.0078125, %v1635_v4  ;;  %2453 = vrsqrt.f32 %v1732_v21  ;;  %v1706_v25 = vsub.f32 %v3371_v27, %v3483_v2 }
 0x4cb   : > { %v1577_v37 = vpop.xlane.xlu1 %1576  ;;  %v1758_v4 = vmul.f32 %v2436_v51, %v1710_v61  ;;  %v1779_v52 = vmul.f32 %v3554_v18, %v1759_v49  ;;  %v1775_v27 = vmul.f32 %v3554_v18, %v1755_v50 }
 0x4cc   : > { %v1703_v60 = vmax.f32 %v1687_v36, 0.0  ;;  %v1686_v43 = vsub.f32 %v1654_v63, %v1670_v13  ;;  %v3533_v32 = vmul.f32 0.0078125, %v1577_v37 }
 0x4cd   : > { %v1575_v34 = vpop.xlane.xlu0 %1574  ;;  %v2438_v19 = vpop.eup %2437  ;;  %v1778_v23 = vmul.f32 %v3554_v18, %v1758_v4  ;;  %v1795_v17 = vadd.f32 %v3565_v39, %v1775_v27 }
 0x4ce   : > { %v1735_v62 = vadd.f32 1e-05, %v1703_v60  ;;  %v1702_v8 = vmax.f32 %v1686_v43, 0.0  ;;  %v3535_v20 = vmul.f32 0.0078125, %v1575_v34  ;;  %v1673_v33 = vmul.f32 %v3533_v32, %v3533_v32  ;;  %v2440_v7 = vpop.eup %2439 }
 0x4cf   : > { %v1641_v12 = vpop.xlane.xlu1 %1640  ;;  %v2442_v15 = vpop.eup %2441  ;;  %v1763_v59 = vmul.f32 %v2438_v19, %v1715_v48  ;;  %v1754_v36 = vmul.f32 %v2440_v7, %v1706_v25  ;;  %v1713_v60 = vsub.f32 %v3411_v47, %v3501_v24  ;;  %v1709_v34 = vsub.f32 %v3382_v35, %v3493_v26 }
 0x4d0   : > { %2455 = vrsqrt.f32 %v1735_v62  ;;  %v1734_v58 = vadd.f32 1e-05, %v1702_v8  ;;  %v1657_v42 = vmul.f32 0.0078125, %v1641_v12  ;;  %v1672_v45 = vmul.f32 %v3535_v20, %v3535_v20  ;;  %v2444_v44 = vpop.eup %2443 }
 0x4d1   : > { %v1639_v9 = vpop.xlane.xlu0 %1638  ;;  %v2446_v63 = vpop.eup %2445  ;;  %v1762_v2 = vmul.f32 %v2442_v15, %v1714_v11  ;;  %v1783_v62 = vmul.f32 %v3554_v18, %v1763_v59  ;;  %v1712_v47 = vsub.f32 %v3415_v0, %v3509_v10  ;;  %v1799_v24 = vadd.f32 %v3565_v39, %v1779_v52 }
 0x4d2   : > { %2457 = vrsqrt.f32 %v1734_v58  ;;  %v1689_v56 = vsub.f32 %v1657_v42, %v1673_v33  ;;  %v1656_v46 = vmul.f32 0.0078125, %v1639_v9  ;;  %v2448_v37 = vpop.eup %2447  ;;  %v1774_v12 = vmul.f32 %v3554_v18, %v1754_v36 }
 0x4d3   : > { %v1761_v30 = vmul.f32 %v2446_v63, %v1713_v60  ;;  %v1717_v33 = vsub.f32 %v3438_v41, %v3511_v54  ;;  %v1719_v35 = vsub.f32 %v3452_v55, %v3525_v3  ;;  %v1782_v26 = vmul.f32 %v3554_v18, %v1762_v2 }
 0x4d4   : > { %v1705_v53 = vmax.f32 %v1689_v56, 0.0  ;;  %v1688_v57 = vsub.f32 %v1656_v46, %v1672_v45  ;;  %v2450_v43 = vpop.eup %2449  ;;  %v1716_v0 = vsub.f32 %v3442_v14, %v3519_v40  ;;  %v1798_v10 = vadd.f32 %v3565_v39, %v1778_v23 }
 0x4d5   : > { %v2452_v8 = vpop.eup %2451  ;;  %v1757_v42 = vmul.f32 %v2444_v44, %v1709_v34  ;;  %v1760_v5 = vmul.f32 %v2450_v43, %v1712_v47  ;;  %v1803_v41 = vadd.f32 %v3565_v39, %v1783_v62  ;;  %v1811_v3 = vadd.f32 %v1799_v24, %v1795_v17 }
 0x4d6   : > { %v1737_v6 = vadd.f32 1e-05, %v1705_v53  ;;  %v1704_v13 = vmax.f32 %v1688_v57, 0.0  ;;  %v1765_v54 = vmul.f32 %v2452_v8, %v1717_v33  ;;  %v1794_v51 = vadd.f32 %v3565_v39, %v1774_v12 }
 0x4d7   : > { %v2454_v58 = vpop.eup %2453  ;;  %v1781_v45 = vmul.f32 %v3554_v18, %v1761_v30  ;;  %v1756_v56 = vmul.f32 %v2448_v37, %v1708_v1  ;;  %v1802_v46 = vadd.f32 %v3565_v39, %v1782_v26  ;;  %v1777_v31 = vmul.f32 %v3554_v18, %v1757_v42 }
 0x4d8   : > { %2459 = vrsqrt.f32 %v1737_v6  ;;  %v1736_v21 = vadd.f32 1e-05, %v1704_v13  ;;  %v1764_v19 = vmul.f32 %v2454_v58, %v1716_v0  ;;  %v1810_v61 = vadd.f32 %v1798_v10, %v1794_v51 }
 0x4d9   : > { %v1780_v29 = vmul.f32 %v3554_v18, %v1760_v5  ;;  %v1815_v7 = vadd.f32 %v1811_v3, %v1803_v41  ;;  %v1785_v53 = vmul.f32 %v3554_v18, %v1765_v54  ;;  %v1721_v57 = vsub.f32 %v3466_v38, %v3533_v32 }
 0x4da   : > { %2461 = vrsqrt.f32 %v1736_v21  ;;  %v1801_v50 = vadd.f32 %v3565_v39, %v1781_v45  ;;  %v1776_v15 = vmul.f32 %v3554_v18, %v1756_v56  ;;  %v1814_v44 = vadd.f32 %v1810_v61, %v1802_v46 }
 0x4db   : > { %v1784_v11 = vmul.f32 %v3554_v18, %v1764_v19  ;;  %v1720_v13 = vsub.f32 %v3469_v22, %v3535_v20  ;;  %v1797_v59 = vadd.f32 %v3565_v39, %v1777_v31  ;;  %v1800_v52 = vadd.f32 %v3565_v39, %v1780_v29 }
 0x4dc   : > { %v1805_v63 = vadd.f32 %v3565_v39, %v1785_v53  ;;  %v1796_v2 = vadd.f32 %v3565_v39, %v1776_v15 }
 0x4dd   : > { %v2456_v16 = vpop.eup %2455  ;;  %v1813_v27 = vadd.f32 %v1801_v50, %v1797_v59  ;;  %v1804_v60 = vadd.f32 %v3565_v39, %v1784_v11  ;;  %v2020_v11 = vld [vmem:[%s3701_s5 + $0x3] ss:$0 sm:$0xff] }
 0x4de   : > { %v1767_v9 = vmul.f32 %v2456_v16, %v1719_v35  ;;  %v1812_v23 = vadd.f32 %v1800_v52, %v1796_v2  ;;  %v2021_v52 = vld [vmem:[%s3702_s6 + $0x3] ss:$0 sm:$0xff] }
 0x4df   : > { %v2458_v55 = vpop.eup %2457  ;;  %v1817_v1 = vadd.f32 %v1813_v27, %v1805_v63 }
 0x4e0   : > { %v1787_v14 = vmul.f32 %v3554_v18, %v1767_v9  ;;  %v1766_v40 = vmul.f32 %v2458_v55, %v1718_v28  ;;  %v1816_v12 = vadd.f32 %v1812_v23, %v1804_v60 }
 0x4e2   : > { %v1807_v49 = vadd.f32 %v3565_v39, %v1787_v14  ;;  %v1786_v48 = vmul.f32 %v3554_v18, %v1766_v40 }
 0x4e4   : > { %v1819_v25 = vadd.f32 %v1815_v7, %v1807_v49  ;;  %v1806_v4 = vadd.f32 %v3565_v39, %v1786_v48 }
 0x4e5   : > { %v2460_v6 = vpop.eup %2459 }
 0x4e6   : > { %v3608_v36 = vmul.f32 0.25, %v1819_v25  ;;  %v1818_v38 = vadd.f32 %v1814_v44, %v1806_v4  ;;  %v1769_v32 = vmul.f32 %v2460_v6, %v1721_v57 }
 0x4e7   : > { %v2462_v21 = vpop.eup %2461 }
 0x4e8   : > { %1830 = vadd.xlane.f32.xlu1 %v3608_v36  ;;  %v3613_v37 = vmul.f32 0.25, %v1818_v38  ;;  %v1789_v22 = vmul.f32 %v3554_v18, %v1769_v32  ;;  %v1768_v20 = vmul.f32 %v2462_v21, %v1720_v13  ;;  %v1841_v43 = vmul.f32 %v3608_v36, %v3608_v36 }
 0x4ea   : > { %1828 = vadd.xlane.f32.xlu0 %v3613_v37  ;;  %v1809_v34 = vadd.f32 %v3565_v39, %v1789_v22  ;;  %v1788_v62 = vmul.f32 %v3554_v18, %v1768_v20  ;;  %v1840_v8 = vmul.f32 %v3613_v37, %v3613_v37 }
 0x4ec   : > { %1846 = vadd.xlane.f32.xlu1 %v1841_v43  ;;  %v1821_v47 = vadd.f32 %v1817_v1, %v1809_v34  ;;  %v1808_v24 = vadd.f32 %v3565_v39, %v1788_v62 }
 0x4ee   : > { %1844 = vadd.xlane.f32.xlu0 %v1840_v8  ;;  %v3625_v30 = vmul.f32 0.25, %v1821_v47  ;;  %v1820_v58 = vadd.f32 %v1816_v12, %v1808_v24 }
 0x4f0   : > { %1834 = vadd.xlane.f32.xlu1 %v3625_v30  ;;  %v3628_v33 = vmul.f32 0.25, %v1820_v58  ;;  %v1843_v18 = vmul.f32 %v3625_v30, %v3625_v30 }
 0x4f2   : > { %1832 = vadd.xlane.f32.xlu0 %v3628_v33  ;;  %v1842_v35 = vmul.f32 %v3628_v33, %v3628_v33 }
 0x4f4   : > { %1850 = vadd.xlane.f32.xlu1 %v1843_v18 }
 0x4f6   : > { %1848 = vadd.xlane.f32.xlu0 %v1842_v35 }
 0x571   : > { %v1831_v39 = vpop.xlane.xlu1 %1830 }
 0x572   : > { %v1837_v17 = vmul.f32 0.0078125, %v1831_v39 }
 0x573   : > { %v1829_v26 = vpop.xlane.xlu0 %1828 }
 0x574   : > { %v1836_v16 = vmul.f32 0.0078125, %v1829_v26  ;;  %v1857_v10 = vmul.f32 %v1837_v17, %v1837_v17  ;;  %v1869_v4 = vsub.f32 %v3608_v36, %v1837_v17 }
 0x575   : > { %v1847_v0 = vpop.xlane.xlu1 %1846 }
 0x576   : > { %v1853_v42 = vmul.f32 0.0078125, %v1847_v0  ;;  %v1856_v28 = vmul.f32 %v1836_v16, %v1836_v16  ;;  %v1868_v6 = vsub.f32 %v3613_v37, %v1836_v16 }
 0x577   : > { %v1845_v5 = vpop.xlane.xlu0 %1844 }
 0x578   : > { %v1861_v9 = vsub.f32 %v1853_v42, %v1857_v10  ;;  %v1852_v41 = vmul.f32 0.0078125, %v1845_v5 }
 0x579   : > { %v1835_v54 = vpop.xlane.xlu1 %1834 }
 0x57a   : > { %v1865_v55 = vmax.f32 %v1861_v9, 0.0  ;;  %v1860_v3 = vsub.f32 %v1852_v41, %v1856_v28  ;;  %v1839_v51 = vmul.f32 0.0078125, %v1835_v54 }
 0x57b   : > { %v1833_v45 = vpop.xlane.xlu0 %1832 }
 0x57c   : > { %v1873_v56 = vadd.f32 1e-05, %v1865_v55  ;;  %v1864_v14 = vmax.f32 %v1860_v3, 0.0  ;;  %v1838_v40 = vmul.f32 0.0078125, %v1833_v45  ;;  %v1859_v61 = vmul.f32 %v1839_v51, %v1839_v51 }
 0x57d   : > { %v1851_v46 = vpop.xlane.xlu1 %1850  ;;  %v1871_v36 = vsub.f32 %v3625_v30, %v1839_v51 }
 0x57e   : > { %2463 = vrsqrt.f32 %v1873_v56  ;;  %v1872_v19 = vadd.f32 1e-05, %v1864_v14  ;;  %v1855_v31 = vmul.f32 0.0078125, %v1851_v46  ;;  %v1858_v49 = vmul.f32 %v1838_v40, %v1838_v40 }
 0x57f   : > { %v1849_v29 = vpop.xlane.xlu0 %1848  ;;  %v1870_v37 = vsub.f32 %v3628_v33, %v1838_v40 }
 0x580   : > { %2465 = vrsqrt.f32 %v1872_v19  ;;  %v1863_v7 = vsub.f32 %v1855_v31, %v1859_v61  ;;  %v1854_v48 = vmul.f32 0.0078125, %v1849_v29 }
 0x582   : > { %v1867_v53 = vmax.f32 %v1863_v7, 0.0  ;;  %v1862_v57 = vsub.f32 %v1854_v48, %v1858_v49 }
 0x584   : > { %v1875_v50 = vadd.f32 1e-05, %v1867_v53  ;;  %v1866_v15 = vmax.f32 %v1862_v57, 0.0 }
 0x586   : > { %2467 = vrsqrt.f32 %v1875_v50  ;;  %v1874_v25 = vadd.f32 1e-05, %v1866_v15 }
 0x588   : > { %2469 = vrsqrt.f32 %v1874_v25 }
 0x58b   : > { %v2464_v44 = vpop.eup %2463 }
 0x58c   : > { %v1881_v13 = vmul.f32 %v2464_v44, %v1869_v4 }
 0x58d   : > { %v2466_v59 = vpop.eup %2465 }
 0x58e   : > { %v1889_v38 = vmul.f32 %v2020_v11, %v1881_v13  ;;  %v1880_v32 = vmul.f32 %v2466_v59, %v1868_v6 }
 0x590   : > { %v1888_v63 = vmul.f32 %v2020_v11, %v1880_v32  ;;  %v1897_v21 = vadd.f32 %v2021_v52, %v1889_v38 }
 0x592   : > { %v1896_v27 = vadd.f32 %v2021_v52, %v1888_v63  ;;  %1901 = vst [vmem:[%s372_s9 + $0x8] sm:$0xff] %v1897_v21 }
 0x593   : > { %v2468_v2 = vpop.eup %2467 }
 0x594   : > { %v1883_v22 = vmul.f32 %v2468_v2, %v1871_v36  ;;  %1900 = vst [vmem:[%s372_s9] sm:$0xff] %v1896_v27 }
 0x595   : > { %v2470_v20 = vpop.eup %2469 }
 0x596   : > { %v1891_v60 = vmul.f32 %v2020_v11, %v1883_v22  ;;  %v1882_v23 = vmul.f32 %v2470_v20, %v1870_v37 }
 0x598   : > { %v1899_v43 = vadd.f32 %v2021_v52, %v1891_v60  ;;  %v1890_v34 = vmul.f32 %v2020_v11, %v1882_v23 }
 0x59a   : > { %v1898_v1 = vadd.f32 %v2021_v52, %v1890_v34  ;;  %1903 = vst [vmem:[%s372_s9 + $0x18] sm:$0xff] %v1899_v43 }
 0x59c   : > { %1902 = vst [vmem:[%s372_s9 + $0x10] sm:$0xff] %v1898_v1 }
 0x59d   : > { %2484 = shalt.err (!%p2481_p5)
}
 0x59e   : > { %s2485_s22 = scalar_lea.hbm %s3651_s18, 512  ;;  %s2489_s9 = scalar_lea.hbm %s3703_s7, 1024 }
 0x59f   : > { %p2486_p7 = scmp.ne.s32.totalorder %s3651_s18, %s2485_s22  ;;  %p2490_p12 = scmp.lt.s32.totalorder %s3651_s18, %s3703_s7 }
 0x5a0   : > { %p2491_p13 = scmp.lt.s32.totalorder %s2489_s9, %s2485_s22 }
 0x5a1   : > { %p2487_p10 = pnand %p2486_p7, %p2615_p6 }
 0x5a2   : > { %p2492_p0 = por %p2491_p13, %p2490_p12 }
 0x5a3   : > { %p2488_p11 = pneg %p2487_p10 }
 0x5a5   : > { %p2493_p1 = pnand %p2492_p0, %p2488_p11 }
 0x5a7   : > { %2496 = shalt.err (!%p2493_p1)
}
 0x5a8   : > { %s2535_s17 = smov 128   ;;  %s2536_s19 = smov 8  }
 0x5a9   : > { %2325 = dma.vmem_to_hbm [thread:$0]  (%p2615_p6), %s3653_s14, 512, %s3651_s18, %s1905_s16, %s2535_s17, %s2535_s17, %s2536_s19  }
 0x5aa PF: > { %s1933_s28 = sand.u32 1, %s2519_s24   ;;  %p2328_p2 = pnand %p1988_p9, %p2619_p8 }
 0x5ab   : > { %s1934_s20 = scalar_lea.sflag [#allocation4], %s1933_s28 }
 0x5ac   : > { %p2329_p3 = pneg %p2328_p2 }
 0x5ae   : > { %2514 = dma.done.wait (%p2329_p3), %s1934_s20, 512  }
 0x5af   : > { %2516 = vsyncadd (%p2329_p3), %s1934_s20, 4294966784  ;;  %p17_p4 = scmp.ge.s32.totalorder %s2600_s30, 4   ;;  %s3706_s24 = smov %s2523_s25 }
 0x5b0   : > { %s3707_s25 = smov %s2527_s26  ;;  %s3708_s26 = smov %s2613_s10 }
 0x5b1   : > { %s3709_s27 = smov %s2600_s30  ;;  %19 = sbr.rel (!%p17_p4) target bundleno = 3 (0x3), region = 127 }
 0x5b6   :  { %1939 = vsyncpa [#allocation4], 1 }
 0x5b7   :  { %1941 = vsyncpa [#allocation4 + $0x1], 1 }

// kernel: _n2n_forward_jit.2
= control target key start
LH: loop header
LB: loop body
LE: loop exit
PB: predicated region body
PF: predicated region fallthrough
CT: control target
= control target key end

     0   :  { %7 = vsyncpa [#allocation4], 0  ;;  %s953_s0 = inlined_call_operand.hbm [shape: f32[64,64], index: 0, kind: input, shape index: {}]   ;;  %s954_s1 = inlined_call_operand.hbm [shape: f32[64,128], index: 1, kind: input, shape index: {}]   ;;  %s955_s2 = inlined_call_operand.vmem [shape: f32[4,64,128], index: 2, kind: output, shape index: {}]  }
   0x1   :  { %9 = vsyncpa [#allocation4 + $0x1], 0 }
   0x2   :  { %10 = vsyncpa [#allocation6], 0  ;;  %s777_s9 = smov 0   ;;  %s779_s10 = smov 0  }
   0x3   :  { %s781_s11 = smov 0   ;;  %s783_s12 = smov 0  }
   0x4   :  { %s785_s13 = smov 0   ;;  %s787_s14 = smov 0  }
   0x5   :  { %s789_s15 = smov 0   ;;  %s791_s16 = smov 0  }
   0x6 LB: > { %s473_s17 = sadd.s32 4294967295, %s756_s16   ;;  %p48_p0 = scmp.ne.s32.totalorder %s732_s10, %s728_s9  ;;  %s756_s16 = sphi %s791_s16, %s16_s16   ;;  %s752_s15 = sphi %s789_s15, %s966_s15   ;;  %s748_s14 = sphi %s787_s14, %s965_s14   ;;  %s744_s13 = sphi %s785_s13, %s964_s13   ;;  %s740_s12 = sphi %s783_s12, %s963_s12   ;;  %s736_s11 = sphi %s781_s11, %s962_s11   ;;  %s732_s10 = sphi %s779_s10, %s961_s10   ;;  %s728_s9 = sphi %s777_s9, %s960_s9  }
   0x7   : > { %p817_p1 = scmp.eq.s32.totalorder %s473_s17, 0  ;;  %p475_p2 = scmp.ge.s32.totalorder %s756_s16, 1 }
   0x8   : > { %p108_p3 = scmp.lt.s32.totalorder %s756_s16, 9  ;;  %s758_s21 = smov [#allocation5]  }
   0x9   : > { %p825_p4 = por %p817_p1, %p48_p0  ;;  %s120_s22 = sshll.u32 %s758_s21, 4  ;;  %s121_s22 = int_to_ptr.vmem [resolvable:$true] %s120_s22 }
   0xa   : > { %p829_p5 = pnand %p475_p2, %p108_p3  ;;  %s643_s23 = scalar_lea.vmem %s121_s22, 1024 }
   0xb   : > { %p644_p9 = scmp.ne.s32.totalorder %s121_s22, %s643_s23  ;;  %p651_p12 = scmp.lt.s32.totalorder %s121_s22, %s121_s22 }
   0xc   : > { %p554_p6 = pneg %p829_p5  ;;  %p652_p13 = scmp.lt.s32.totalorder %s643_s23, %s643_s23 }
   0xe   : > { %p555_p7 = pnand %p554_p6, %p817_p1  ;;  %p653_p0 = por %p652_p13, %p651_p12 }
  0x10   : > { %p634_p8 = pneg %p555_p7 }
  0x12   : > { %p646_p10 = pnand %p644_p9, %p634_p8 }
  0x14   : > { %p647_p11 = pneg %p646_p10 }
  0x16   : > { %p654_p2 = pnand %p653_p0, %p647_p11 }
  0x18   : > { %657 = shalt.err (!%p654_p2)
}
  0x19   : > { %s759_s24 = smov 128   ;;  %s760_s25 = smov 8  }
  0x1a   : > { %557 = dma.hbm_to_vmem [thread:$0]  (!%p555_p7), %s954_s1, 1024, %s121_s22, [#allocation6], %s759_s24, %s759_s24, %s760_s25  }
  0x1b   : > { %s25_s28 = sadd.s32 1, %s748_s14  ;;  %s28_s29 = sadd.s32 1, %s752_s15 }
  0x1c   : > { %p26_p3 = scmp.ge.s32.totalorder %s25_s28, 2  ;;  %s35_s30 = sadd.s32 1, %s736_s11 }
  0x1d   : > { %p42_p6 = scmp.ne.s32.totalorder %s736_s11, %s732_s10  ;;  %p43_p8 = scmp.eq.s32.totalorder %s756_s16, 0 }
  0x1e   : > { %s968_s28 = smov (%p26_p3, %s25_s28), 0  ;;  %s970_s29 = smov (!%p26_p3, %s28_s29), %s752_s15 }
  0x1f   : > { %s32_s3 = ssub.s32 %s748_s14, %s968_s28  ;;  %p30_p9 = scmp.ge.s32.totalorder %s970_s29, 4 }
  0x20   : > { %p33_p10 = scmp.eq.s32.totalorder %s32_s3, 0  ;;  %p44_p11 = por %p43_p8, %p42_p6 }
  0x21   : > { %p563_p12 = scmp.lt.s32.totalorder %s756_s16, 8  ;;  %s972_s29 = smov (%p30_p9, %s970_s29), 0 }
  0x22   : > { %s858_s4 = scalar_select %p33_p10, %s736_s11, %s35_s30  }
  0x23   : > { %s134_s5 = sand.u32 1, %s736_s11   ;;  %s497_s6 = sshll.u32 %s748_s14, 9 }
  0x24   : > { %s478_s7 = sshll.u32 %s134_s5, 5  ;;  %s144_s17 = scalar_lea.hbm %s953_s0, %s497_s6 }
  0x25   : > { %s138_s21 = scalar_lea.vmem [#allocation3], %s478_s7  ;;  %p865_p7 = pnand %p563_p12, %p44_p11 }
  0x26   : > { %s145_s22 = sshll.u32 %s138_s21, 4  ;;  %s135_s26 = scalar_lea.sflag [#allocation4], %s134_s5  ;;  %s146_s22 = int_to_ptr.vmem [resolvable:$true] %s145_s22 }
  0x27   : > { %p660_p13 = pneg %p865_p7  ;;  %s671_s27 = scalar_lea.vmem %s146_s22, 512 }
  0x28   : > { %p672_p0 = scmp.ne.s32.totalorder %s146_s22, %s671_s27  ;;  %s761_s30 = smov [#allocation3]  }
  0x29   : > { %s676_s3 = sshll.u32 %s761_s30, 4  ;;  %s677_s3 = int_to_ptr.vmem [resolvable:$false] %s676_s3 }
  0x2a   : > { %p674_p2 = pnand %p672_p0, %p660_p13  ;;  %s678_s8 = scalar_lea.vmem %s677_s3, 1024 }
  0x2b   : > { %p679_p6 = scmp.lt.s32.totalorder %s146_s22, %s677_s3  ;;  %p680_p8 = scmp.lt.s32.totalorder %s678_s8, %s671_s27 }
  0x2c   : > { %p675_p3 = pneg %p674_p2 }
  0x2d   : > { %p681_p9 = por %p680_p8, %p679_p6 }
  0x2f   : > { %p682_p10 = pnand %p681_p9, %p675_p3 }
  0x31   : > { %685 = shalt.err (!%p682_p10)
}
  0x32   : > { %561 = dma.hbm_to_vmem [thread:$0]  (!%p865_p7), %s144_s17, 512, %s146_s22, %s135_s26, %s759_s24, %s759_s24, %s760_s25  }
  0x33   : > { %157 = sbr.rel (%p829_p5) target bundleno = 301 (0x12d), region = 28  ;;  %s159_s5 = sand.u32 (!%p829_p5), 1, %s732_s10  }
  0x34   : > { %s482_s6 = sshll.u32 (!%p829_p5), %s159_s5, 5  ;;  %s160_s7 = scalar_lea.sflag (!%p829_p5), [#allocation4], %s159_s5 }
  0x35   : > { %s879_s9 = scalar_lea.vmem (!%p829_p5), [#allocation3], %s482_s6 }
  0x38   : > { %719 = dma.done.wait (%p825_p4), %s160_s7, 512  }
  0x39   : > { %721 = vsyncadd (%p825_p4), %s160_s7, 4294966784 }
  0x3a   : > { %723 = dma.done.wait (%p817_p1), [#allocation6], 1024  }
  0x3b   : > { %725 = vsyncadd (%p817_p1), [#allocation6], 4294966272  ;;  %s484_s20 = sshll.u32 %s740_s12, 2  ;;  %p194_p5 = scmp.lt.s32.totalorder %s744_s13, 3 }
  0x3c   : > { %p196_p11 = scmp.lt.s32.totalorder %s484_s20, 7  ;;  %s487_s24 = sshll.u32 %s740_s12, 5 }
  0x3d   : > { %s195_s25 = scalar_select %p194_p5, %s744_s13, 3 }
  0x3e   : > { %s974_s20 = smov (!%p196_p11, %s484_s20), 7  ;;  %s204_s17 = sand.u32 1, %s744_s13 }
  0x3f   : > { %s485_s19 = sshll.u32 %s195_s25, 3  ;;  %p205_p4 = scmp.eq.s32.totalorder %s744_s13, 0 }
  0x40   : > { %s199_s21 = sadd.s32 %s485_s19, %s974_s20  ;;  %p206_p12 = scmp.eq.s32.totalorder %s740_s12, 0 }
  0x41   : > { %s486_s22 = sshll.u32 %s199_s21, 3 }
  0x42   : > { %s899_s26 = scalar_lea.vmem %s955_s2, %s486_s22  ;;  %p207_p1 = pnand %p206_p12, %p205_p4 }
  0x44   : > { %210 = sbr.rel (%p207_p1) target bundleno = 78 (0x4e), region = 40 }
  0x49   : > { %v211_v0 = vld [vmem:[#allocation5] sm:$0xff]  ;;  %v212_v1 = vld [vmem:[#allocation5 + $0x8] sm:$0xff]  ;;  %v213_v2 = vld [vmem:[#allocation5 + $0x10] sm:$0xff] }
  0x4a   : > { %219 = vst [vmem:[#allocation2] sm:$0xff] %v211_v0  ;;  %220 = vst [vmem:[#allocation2 + $0x8] sm:$0xff] %v212_v1  ;;  %v214_v3 = vld [vmem:[#allocation5 + $0x18] sm:$0xff]  ;;  %v215_v4 = vld [vmem:[#allocation5 + $0x20] sm:$0xff] }
  0x4b   : > { %221 = vst [vmem:[#allocation2 + $0x10] sm:$0xff] %v213_v2  ;;  %v216_v5 = vld [vmem:[#allocation5 + $0x28] sm:$0xff]  ;;  %222 = vst [vmem:[#allocation2 + $0x18] sm:$0xff] %v214_v3  ;;  %v217_v6 = vld [vmem:[#allocation5 + $0x30] sm:$0xff] }
  0x4c   : > { %223 = vst [vmem:[#allocation2 + $0x20] sm:$0xff] %v215_v4  ;;  %224 = vst [vmem:[#allocation2 + $0x28] sm:$0xff] %v216_v5  ;;  %v218_v7 = vld [vmem:[#allocation5 + $0x38] sm:$0xff] }
  0x4d   : > { %225 = vst [vmem:[#allocation2 + $0x30] sm:$0xff] %v217_v6  ;;  %226 = vst [vmem:[#allocation2 + $0x38] sm:$0xff] %v218_v7 }
  0x4e PF: > { %s488_s27 = sshll.u32 %s204_s17, 6  ;;  %p489_p7 = scmp.ge.s32.totalorder %s744_s13, 3 }
  0x4f   : > { %s903_s30 = scalar_lea.vmem [#allocation2], %s488_s27  ;;  %s352_s8 = ssub.s32 (!%p489_p7), 1, %s204_s17 }
  0x50   : > { %s229_s3 = scalar_lea.vmem %s903_s30, %s487_s24 [#allocation2]  ;;  %s494_s5 = sshll.u32 (!%p489_p7), %s352_s8, 6 }
  0x51   : > { %s354_s6 = scalar_lea.vmem (!%p489_p7), [#allocation2], %s494_s5 }
  0x52   : > { %241 = sbr.rel (%p489_p7) target bundleno = 301 (0x12d), region = 44  ;;  %s355_s7 = scalar_lea.vmem (!%p489_p7), %s354_s6, %s487_s24 [#allocation2] }
  0x54   : > { %v230_v8 = vld [vmem:[%s229_s3] sm:$0xff]  ;;  %v231_v9 = vld [vmem:[%s229_s3 + $0x8] sm:$0xff]  ;;  %v232_v10 = vld [vmem:[%s229_s3 + $0x10] sm:$0xff] }
  0x55   : > { %234 = vst [vmem:[%s899_s26] sm:$0xff] %v230_v8  ;;  %235 = vst [vmem:[%s899_s26 + $0x8] sm:$0xff] %v231_v9  ;;  %v233_v11 = vld [vmem:[%s229_s3 + $0x18] sm:$0xff] }
  0x56   : > { %236 = vst [vmem:[%s899_s26 + $0x10] sm:$0xff] %v232_v10  ;;  %237 = vst [vmem:[%s899_s26 + $0x18] sm:$0xff] %v233_v11 }
  0x57   : > { %v253_v12 = vld [vmem:[%s903_s30 + $0x38] sm:$0xff]  ;;  %v252_v13 = vld [vmem:[%s903_s30 + $0x30] sm:$0xff]  ;;  %v251_v14 = vld [vmem:[%s903_s30 + $0x28] sm:$0xff]  ;;  %vm254_vm0 = vcmask 523264  }
  0x58   : > { %510 = vmatprep.subr.mxu0 %v253_v12  ;;  %532 = vmatprep.subr.mxu1 %v253_v12  ;;  %v250_v15 = vld [vmem:[%s903_s30 + $0x20] sm:$0xff]  ;;  %v249_v16 = vld [vmem:[%s903_s30 + $0x18] sm:$0xff]  ;;  %v248_v17 = vld [vmem:[%s903_s30 + $0x10] sm:$0xff] }
  0x59   : > { %511 = vmatpush3.msra.mxu0 %v253_v12  ;;  %540 = vmatpush3.msra.mxu1 %v253_v12  ;;  %v247_v18 = vld [vmem:[%s903_s30 + $0x8] sm:$0xff]  ;;  %v246_v19 = vld [vmem:[%s903_s30] sm:$0xff]  ;;  %v244_v21 = vld [vmem:[%s879_s9 + $0x10] sm:$0xff] }
  0x5a   : > { %512 = vmatprep.subr.mxu0 %v252_v13  ;;  %533 = vmatprep.subr.mxu1 %v252_v13  ;;  %v242_v20 = vld [vmem:[%s879_s9] sm:$0xff]  ;;  %v243_v22 = vld [vmem:[%s879_s9 + $0x8] sm:$0xff]  ;;  %v245_v23 = vld [vmem:[%s879_s9 + $0x18] sm:$0xff] }
  0x5b   : > { %513 = vmatpush3.msra.mxu0 %v252_v13  ;;  %541 = vmatpush3.msra.mxu1 %v252_v13 }
  0x5c   : > { %514 = vmatprep.subr.mxu0 %v251_v14  ;;  %534 = vmatprep.subr.mxu1 %v251_v14 }
  0x5d   : > { %515 = vmatpush3.msra.mxu0 %v251_v14  ;;  %542 = vmatpush3.msra.mxu1 %v251_v14 }
  0x5e   : > { %516 = vmatprep.subr.mxu0 %v250_v15  ;;  %535 = vmatprep.subr.mxu1 %v250_v15 }
  0x5f   : > { %517 = vmatpush3.msra.mxu0 %v250_v15  ;;  %543 = vmatpush3.msra.mxu1 %v250_v15 }
  0x60   : > { %518 = vmatprep.subr.mxu0 %v249_v16  ;;  %536 = vmatprep.subr.mxu1 %v249_v16 }
  0x61   : > { %519 = vmatpush3.msra.mxu0 %v249_v16  ;;  %544 = vmatpush3.msra.mxu1 %v249_v16 }
  0x62   : > { %520 = vmatprep.subr.mxu0 %v248_v17  ;;  %537 = vmatprep.subr.mxu1 %v248_v17 }
  0x63   : > { %521 = vmatpush3.msra.mxu0 %v248_v17  ;;  %545 = vmatpush3.msra.mxu1 %v248_v17 }
  0x64   : > { %522 = vmatprep.subr.mxu0 %v247_v18  ;;  %538 = vmatprep.subr.mxu1 %v247_v18 }
  0x65   : > { %523 = vmatpush3.msra.mxu0 %v247_v18  ;;  %546 = vmatpush3.msra.mxu1 %v247_v18 }
  0x66   : > { %524 = vmatprep.subr.mxu0 %v246_v19  ;;  %539 = vmatprep.subr.mxu1 %v246_v19 }
  0x67   : > { %525 = vmatpush3.msra.mxu0 %v246_v19  ;;  %547 = vmatpush3.msra.mxu1 %v246_v19 }
  0x68   : > { %526 = vmatprep.mubr.msk.f32.mxu0 %vm254_vm0, %v242_v20  ;;  %529 = vmatprep.mubr.msk.f32.mxu1 %vm254_vm0, %v244_v21 }
  0x69   : > { %527 = vmatmul.mubr.msk.f32.vlgmr.msra.gmra.mxu0 %vm254_vm0, %v243_v22  ;;  %530 = vmatmul.mubr.msk.f32.vlgmr.msra.gmra.mxu1 %vm254_vm0, %v245_v23 }
 0x129   : > { %v528_v24 = vpop.f32.mrf.mxu0  ;;  %v531_v25 = vpop.f32.mrf.mxu1 }
 0x12a   : > { %357 = vst [vmem:[%s355_s7 + $0x8] sm:$0xff] %v528_v24  ;;  %359 = vst [vmem:[%s355_s7 + $0x18] sm:$0xff] %v531_v25 }
 0x12b   : > { %v333_v26 = vpop.f32.mrf.mxu0  ;;  %v343_v27 = vpop.f32.mrf.mxu1 }
 0x12c   : > { %356 = vst [vmem:[%s355_s7] sm:$0xff] %v333_v26  ;;  %358 = vst [vmem:[%s355_s7 + $0x10] sm:$0xff] %v343_v27 }
 0x12d PF: > { %s16_s16 = sadd.s32 1, %s756_s16   ;;  %s960_s9 = smov %s732_s10 }
 0x12e   : > { %p13_p13 = scmp.ge.s32.totalorder %s16_s16, 10   ;;  %s961_s10 = smov %s736_s11 }
 0x12f   : > { %s962_s11 = smov %s858_s4  ;;  %s963_s12 = smov %s748_s14 }
 0x130   : > { %s964_s13 = smov %s752_s15  ;;  %s965_s14 = smov %s968_s28 }
 0x131   : > { %s966_s15 = smov %s972_s29  ;;  %15 = sbr.rel (!%p13_p13) target bundleno = 6 (0x6), region = 84 }
 0x136   :  { %390 = vsyncpa [#allocation4], 1 }
 0x137   :  { %392 = vsyncpa [#allocation4 + $0x1], 1 }
 0x138   :  { %393 = vsyncpa [#allocation6], 1 }

// kernel: _n2n_forward_jit.3
= control target key start
LH: loop header
LB: loop body
LE: loop exit
PB: predicated region body
PF: predicated region fallthrough
CT: control target
= control target key end

     0   :  { %12 = vsyncpa [#allocation4], 0  ;;  %s3696_s0 = inlined_call_operand.vmem [shape: f32[4,64,128], index: 0, kind: input, shape index: {}]   ;;  %s3697_s1 = inlined_call_operand.vmem [shape: f32[128,128], index: 1, kind: input, shape index: {}]   ;;  %s3698_s2 = inlined_call_operand.vmem [shape: f32[4,128], index: 2, kind: input, shape index: {}]   ;;  %s3699_s3 = inlined_call_operand.vmem [shape: f32[2,128,128], index: 3, kind: input, shape index: {}]   ;;  %s3700_s4 = inlined_call_operand.vmem [shape: f32[2,128], index: 4, kind: input, shape index: {}]   ;;  %s3701_s5 = inlined_call_operand.vmem [shape: f32[4,128], index: 5, kind: input, shape index: {}]   ;;  %s3702_s6 = inlined_call_operand.vmem [shape: f32[4,128], index: 6, kind: input, shape index: {}]   ;;  %s3703_s7 = inlined_call_operand.hbm [shape: f32[64,128], index: 7, kind: output, shape index: {}]  }
   0x1   :  { %14 = vsyncpa [#allocation4 + $0x1], 0  ;;  %s2577_s24 = smov 0   ;;  %s2579_s25 = smov 0  }
   0x2   :  { %s2581_s26 = smov 0   ;;  %s2583_s27 = smov 0  }
   0x3 LB: > { %s1985_s28 = sadd.s32 4294967295, %s2531_s27   ;;  %s1986_s29 = sadd.s32 4294967294, %s2531_s27   ;;  %s2531_s27 = sphi %s2583_s27, %s3709_s27   ;;  %s2527_s26 = sphi %s2581_s26, %s3708_s26   ;;  %s2523_s25 = sphi %s2579_s25, %s3707_s25   ;;  %s2519_s24 = sphi %s2577_s24, %s3706_s24  }
   0x4   : > { %s2600_s30 = sadd.s32 1, %s2531_s27   ;;  %s27_s8 = sadd.s32 1, %s2527_s26 }
   0x5   : > { %s24_s9 = ssub.s32 %s2531_s27, %s2600_s30  ;;  %p34_p0 = scmp.ne.s32.totalorder %s2527_s26, %s2523_s25 }
   0x6   : > { %p25_p1 = scmp.eq.s32.totalorder %s24_s9, 0  ;;  %p35_p2 = scmp.eq.s32.totalorder %s2531_s27, 0 }
   0x7   : > { %p190_p3 = scmp.eq.s32.totalorder %s1985_s28, 1  ;;  %p195_p4 = scmp.ne.s32.totalorder %s2523_s25, %s2519_s24 }
   0x8   : > { %s2613_s10 = scalar_select %p25_p1, %s2527_s26, %s27_s8  }
   0x9   : > { %p36_p5 = por %p35_p2, %p34_p0  ;;  %p2615_p6 = por %p190_p3, %p34_p0 }
   0xa   : > { %p196_p7 = scmp.eq.s32.totalorder %s1986_s29, 1  ;;  %p1988_p9 = scmp.ge.s32.totalorder %s2531_s27, 2 }
   0xc   : > { %p2619_p8 = por %p196_p7, %p195_p4  ;;  %230 = sbr.rel (%p1988_p9) target bundleno = 29 (0x1d), region = 40 }
  0x11   : > { %233 = sbr.rel (!%p36_p5) target bundleno = 29 (0x1d), region = 44  ;;  %s235_s13 = sand.u32 (%p36_p5), 1, %s2527_s26  }
  0x12   : > { %s2027_s14 = sshll.u32 (%p36_p5), %s2531_s27, 5  ;;  %s1989_s15 = sshll.u32 (%p36_p5), %s235_s13, 7 }
  0x13   : > { %s2631_s18 = scalar_lea.vmem (%p36_p5), %s3696_s0, %s2027_s14  ;;  %s237_s19 = scalar_lea.vmem (%p36_p5), [#allocation2], %s1989_s15 }
  0x14   : > { %v299_v0 = vld [vmem:[%s2631_s18] sm:$0xff] (%p36_p5)  ;;  %v301_v1 = vld [vmem:[%s2631_s18 + $0x8] sm:$0xff] (%p36_p5)  ;;  %v303_v2 = vld [vmem:[%s2631_s18 + $0x10] sm:$0xff] (%p36_p5) }
  0x15   : > { %300 = vst [vmem:[%s237_s19] sm:$0xff] (%p36_p5), %v299_v0  ;;  %302 = vst [vmem:[%s237_s19 + $0x8] sm:$0xff] (%p36_p5), %v301_v1  ;;  %v305_v3 = vld [vmem:[%s2631_s18 + $0x18] sm:$0xff] (%p36_p5)  ;;  %v307_v4 = vld [vmem:[%s2631_s18 + $0x40] sm:$0xff] (%p36_p5) }
  0x16   : > { %304 = vst [vmem:[%s237_s19 + $0x10] sm:$0xff] %v303_v2  ;;  %v309_v5 = vld [vmem:[%s2631_s18 + $0x48] sm:$0xff]  ;;  %306 = vst [vmem:[%s237_s19 + $0x18] sm:$0xff] %v305_v3  ;;  %v311_v6 = vld [vmem:[%s2631_s18 + $0x50] sm:$0xff] }
  0x17   : > { %308 = vst [vmem:[%s237_s19 + $0x20] sm:$0xff] %v307_v4  ;;  %310 = vst [vmem:[%s237_s19 + $0x28] sm:$0xff] %v309_v5  ;;  %v313_v7 = vld [vmem:[%s2631_s18 + $0x58] sm:$0xff]  ;;  %v315_v8 = vld [vmem:[%s2631_s18 + $0x80] sm:$0xff] }
  0x18   : > { %312 = vst [vmem:[%s237_s19 + $0x30] sm:$0xff] %v311_v6  ;;  %314 = vst [vmem:[%s237_s19 + $0x38] sm:$0xff] %v313_v7  ;;  %v317_v9 = vld [vmem:[%s2631_s18 + $0x88] sm:$0xff]  ;;  %v319_v10 = vld [vmem:[%s2631_s18 + $0x90] sm:$0xff] }
  0x19   : > { %316 = vst [vmem:[%s237_s19 + $0x40] sm:$0xff] %v315_v8  ;;  %v321_v11 = vld [vmem:[%s2631_s18 + $0x98] sm:$0xff]  ;;  %318 = vst [vmem:[%s237_s19 + $0x48] sm:$0xff] %v317_v9  ;;  %v323_v12 = vld [vmem:[%s2631_s18 + $0xc0] sm:$0xff] }
  0x1a   : > { %320 = vst [vmem:[%s237_s19 + $0x50] sm:$0xff] %v319_v10  ;;  %322 = vst [vmem:[%s237_s19 + $0x58] sm:$0xff] %v321_v11  ;;  %v325_v13 = vld [vmem:[%s2631_s18 + $0xc8] sm:$0xff]  ;;  %v327_v14 = vld [vmem:[%s2631_s18 + $0xd0] sm:$0xff] }
  0x1b   : > { %324 = vst [vmem:[%s237_s19 + $0x60] sm:$0xff] %v323_v12  ;;  %326 = vst [vmem:[%s237_s19 + $0x68] sm:$0xff] %v325_v13  ;;  %v329_v15 = vld [vmem:[%s2631_s18 + $0xd8] sm:$0xff] }
  0x1c   : > { %328 = vst [vmem:[%s237_s19 + $0x70] sm:$0xff] %v327_v14  ;;  %330 = vst [vmem:[%s237_s19 + $0x78] sm:$0xff] %v329_v15 }
  0x1d PF: > { %p1992_p10 = scmp.ge.s32.totalorder %s2531_s27, 1  ;;  %p335_p11 = scmp.lt.s32.totalorder %s2531_s27, 3 }
  0x1f   : > { %p336_p12 = pnand %p1992_p10, %p335_p11 }
  0x20   : > { %s2658_s29 = sand.u32 (!%p336_p12), 1, %s2523_s25   ;;  %s2028_s13 = sshll.u32 (!%p336_p12), %s1985_s28, 9 }
  0x21   : > { %339 = sbr.rel (%p336_p12) target bundleno = 1450 (0x5aa), region = 82  ;;  %s1993_s8 = sshll.u32 (!%p336_p12), %s2658_s29, 7 }
  0x22   : > { %s2667_s16 = scalar_lea.vmem (!%p336_p12), [#allocation2], %s1993_s8  ;;  %s1994_s22 = sshll.u32 (!%p336_p12), %s2658_s29, 5 }
  0x23   : > { %s372_s9 = scalar_lea.vmem (!%p336_p12), [#allocation3], %s1994_s22  ;;  %s3651_s18 = scalar_lea.hbm (!%p336_p12), %s3703_s7, %s2028_s13 }
  0x24   : > { %s1918_s14 = sshll.u32 (!%p336_p12), %s372_s9, 4  ;;  %s2534_s28 = smov (!%p336_p12), [#allocation3]   ;;  %s3653_s14 = int_to_ptr.vmem [resolvable:$true] %s1918_s14 }
  0x25   : > { %s2471_s19 = scalar_lea.vmem (!%p336_p12), %s3653_s14, 512  ;;  %s2475_s20 = sshll.u32 (!%p336_p12), %s2534_s28, 4  ;;  %s2476_s20 = int_to_ptr.vmem [resolvable:$false] %s2475_s20 }
  0x26   : > { %v406_v16 = vld [vmem:[%s3697_s1 + $0x78] sm:$0xff]  ;;  %v405_v17 = vld [vmem:[%s3697_s1 + $0x70] sm:$0xff]  ;;  %v404_v18 = vld [vmem:[%s3697_s1 + $0x68] sm:$0xff]  ;;  %v2533_v48 = vmov 1966171168   ;;  %v565_v50 = vlaneseq  ;;  %p2472_p13 = scmp.ne.s32.totalorder %s3653_s14, %s2471_s19  ;;  %s2477_s21 = scalar_lea.vmem %s2476_s20, 1024 }
  0x27   : > { %2125 = vmatprep.subr.mxu0 %v406_v16  ;;  %v403_v19 = vld [vmem:[%s3697_s1 + $0x60] sm:$0xff]  ;;  %v402_v21 = vld [vmem:[%s3697_s1 + $0x58] sm:$0xff]  ;;  %v401_v22 = vld [vmem:[%s3697_s1 + $0x50] sm:$0xff]  ;;  %v563_v49 = vunpack.c.l.s4 %v2533_v48  ;;  %p2478_p2 = scmp.lt.s32.totalorder %s3653_s14, %s2476_s20  ;;  %p2479_p3 = scmp.lt.s32.totalorder %s2477_s21, %s2471_s19 }
  0x28   : > { %2126 = vmatpush3.msra.mxu0 %v406_v16  ;;  %v375_v20 = vld [vmem:[%s2667_s16] sm:$0xff]  ;;  %v400_v23 = vld [vmem:[%s3697_s1 + $0x48] sm:$0xff]  ;;  %v398_v25 = vld [vmem:[%s3697_s1 + $0x38] sm:$0xff]  ;;  %v566_v52 = vshrl.u32 %v565_v50, 7  ;;  %p2473_p0 = pnand %p2472_p13, %p2615_p6 }
  0x29   : > { %2127 = vmatprep.subr.mxu0 %v405_v17  ;;  %2157 = vmatprep.mubr.f32.mxu0 %v375_v20  ;;  %v399_v24 = vld [vmem:[%s3697_s1 + $0x40] sm:$0xff]  ;;  %v397_v26 = vld [vmem:[%s3697_s1 + $0x30] sm:$0xff]  ;;  %v396_v27 = vld [vmem:[%s3697_s1 + $0x28] sm:$0xff]  ;;  %v564_v51 = vunpack.c.0.s8 %v563_v49  ;;  %p2480_p4 = por %p2479_p3, %p2478_p2 }
  0x2a   : > { %2128 = vmatpush3.msra.mxu0 %v405_v17  ;;  %v395_v28 = vld [vmem:[%s3697_s1 + $0x20] sm:$0xff]  ;;  %v394_v29 = vld [vmem:[%s3697_s1 + $0x18] sm:$0xff]  ;;  %v393_v30 = vld [vmem:[%s3697_s1 + $0x10] sm:$0xff]  ;;  %v2724_v56 = vsub.s32 0, %v566_v52  ;;  %p2474_p1 = pneg %p2473_p0 }
  0x2b   : > { %2129 = vmatprep.subr.mxu0 %v404_v18  ;;  %v392_v31 = vld [vmem:[%s3697_s1 + $0x8] sm:$0xff]  ;;  %v391_v32 = vld [vmem:[%s3697_s1] sm:$0xff]  ;;  %v377_v34 = vld [vmem:[%s2667_s16 + $0x10] sm:$0xff]  ;;  %v567_v53 = vsub.s32 %v564_v51, %v566_v52 }
  0x2c   : > { %2130 = vmatpush3.msra.mxu0 %v404_v18  ;;  %v376_v33 = vld [vmem:[%s2667_s16 + $0x8] sm:$0xff]  ;;  %v378_v35 = vld [vmem:[%s2667_s16 + $0x18] sm:$0xff]  ;;  %v379_v36 = vld [vmem:[%s2667_s16 + $0x20] sm:$0xff]  ;;  %p2481_p5 = pnand %p2480_p4, %p2474_p1 }
  0x2d   : > { %2131 = vmatprep.subr.mxu0 %v403_v19  ;;  %v380_v37 = vld [vmem:[%s2667_s16 + $0x28] sm:$0xff]  ;;  %v381_v38 = vld [vmem:[%s2667_s16 + $0x30] sm:$0xff]  ;;  %v382_v39 = vld [vmem:[%s2667_s16 + $0x38] sm:$0xff] }
  0x2e   : > { %2132 = vmatpush3.msra.mxu0 %v403_v19  ;;  %v383_v40 = vld [vmem:[%s2667_s16 + $0x40] sm:$0xff]  ;;  %v384_v41 = vld [vmem:[%s2667_s16 + $0x48] sm:$0xff]  ;;  %v385_v42 = vld [vmem:[%s2667_s16 + $0x50] sm:$0xff] }
  0x2f   : > { %2133 = vmatprep.subr.mxu0 %v402_v21  ;;  %v386_v43 = vld [vmem:[%s2667_s16 + $0x58] sm:$0xff]  ;;  %v387_v44 = vld [vmem:[%s2667_s16 + $0x60] sm:$0xff]  ;;  %v388_v45 = vld [vmem:[%s2667_s16 + $0x68] sm:$0xff] }
  0x30   : > { %2134 = vmatpush3.msra.mxu0 %v402_v21  ;;  %v389_v46 = vld [vmem:[%s2667_s16 + $0x70] sm:$0xff]  ;;  %v390_v47 = vld [vmem:[%s2667_s16 + $0x78] sm:$0xff]  ;;  %v1995_v54 = vld.sshfl [vmem:[%s3698_s2] sm:$0x33 pattern:$0x75316420] }
  0x31   : > { %2135 = vmatprep.subr.mxu0 %v401_v22  ;;  %v568_v55 = vrot.slane %v1995_v54, %v567_v53  ;;  %v561_v63 = vcombine.high %v1995_v54, %v1995_v54  ;;  %v896_v12 = vld [vmem:[%s3699_s3 + $0x78] sm:$0xff]  ;;  %v895_v15 = vld [vmem:[%s3699_s3 + $0x70] sm:$0xff]  ;;  %v894_v17 = vld [vmem:[%s3699_s3 + $0x68] sm:$0xff]  ;;  %s1905_s16 = scalar_lea.sflag [#allocation4], %s2658_s29 }
  0x32   : > { %2136 = vmatpush3.msra.mxu0 %v401_v22  ;;  %2181 = vmatprep.subr.mxu1 %v896_v12  ;;  %v893_v19 = vld [vmem:[%s3699_s3 + $0x60] sm:$0xff]  ;;  %v883_v48 = vld [vmem:[%s3699_s3 + $0x10] sm:$0xff]  ;;  %v882_v52 = vld [vmem:[%s3699_s3 + $0x8] sm:$0xff] }
  0x33   : > { %2137 = vmatprep.subr.mxu0 %v400_v23  ;;  %v581_v57 = vrot.slane %v568_v55, %v2724_v56  ;;  %v2739_v4 = vrot.slane %v561_v63, %v567_v53  ;;  %2182 = vmatpush3.msra.mxu1 %v896_v12  ;;  %v576_v22 = vcombine.high %v568_v55, %v568_v55  ;;  %v881_v54 = vld [vmem:[%s3699_s3] sm:$0xff] }
  0x34   : > { %2138 = vmatpush3.msra.mxu0 %v400_v23  ;;  %2183 = vmatprep.subr.mxu1 %v895_v15 }
  0x35   : > { %2139 = vmatprep.subr.mxu0 %v399_v24  ;;  %v585_v7 = vrot.slane %v2739_v4, %v2724_v56  ;;  %2184 = vmatpush3.msra.mxu1 %v895_v15 }
  0x36   : > { %2140 = vmatpush3.msra.mxu0 %v399_v24  ;;  %2185 = vmatprep.subr.mxu1 %v894_v17  ;;  %v892_v24 = vld [vmem:[%s3699_s3 + $0x58] sm:$0xff] }
  0x37   : > { %2141 = vmatprep.subr.mxu0 %v398_v25  ;;  %2186 = vmatpush3.msra.mxu1 %v894_v17 }
  0x38   : > { %2142 = vmatpush3.msra.mxu0 %v398_v25  ;;  %2187 = vmatprep.subr.mxu1 %v893_v19 }
  0x39   : > { %2143 = vmatprep.subr.mxu0 %v397_v26  ;;  %2188 = vmatpush3.msra.mxu1 %v893_v19 }
  0x3a   : > { %2144 = vmatpush3.msra.mxu0 %v397_v26  ;;  %2189 = vmatprep.subr.mxu1 %v892_v24  ;;  %v891_v26 = vld [vmem:[%s3699_s3 + $0x50] sm:$0xff] }
  0x3b   : > { %2145 = vmatprep.subr.mxu0 %v396_v27  ;;  %2190 = vmatpush3.msra.mxu1 %v892_v24 }
  0x3c   : > { %2146 = vmatpush3.msra.mxu0 %v396_v27  ;;  %v589_v27 = vrot.slane %v576_v22, %v2724_v56  ;;  %2191 = vmatprep.subr.mxu1 %v891_v26 }
  0x3d   : > { %2147 = vmatprep.subr.mxu0 %v395_v28  ;;  %2192 = vmatpush3.msra.mxu1 %v891_v26 }
  0x3e   : > { %2148 = vmatpush3.msra.mxu0 %v395_v28 }
  0x3f   : > { %2149 = vmatprep.subr.mxu0 %v394_v29 }
  0x40   : > { %2150 = vmatpush3.msra.mxu0 %v394_v29 }
  0x41   : > { %2151 = vmatprep.subr.mxu0 %v393_v30 }
  0x42   : > { %2152 = vmatpush3.msra.mxu0 %v393_v30  ;;  %v890_v30 = vld [vmem:[%s3699_s3 + $0x48] sm:$0xff] }
  0x43   : > { %2153 = vmatprep.subr.mxu0 %v392_v31  ;;  %2193 = vmatprep.subr.mxu1 %v890_v30 }
  0x44   : > { %2154 = vmatpush3.msra.mxu0 %v392_v31  ;;  %2194 = vmatpush3.msra.mxu1 %v890_v30  ;;  %v889_v31 = vld [vmem:[%s3699_s3 + $0x40] sm:$0xff] }
  0x45   : > { %2155 = vmatprep.subr.mxu0 %v391_v32  ;;  %2195 = vmatprep.subr.mxu1 %v889_v31 }
  0x46   : > { %2156 = vmatpush3.msra.mxu0 %v391_v32  ;;  %2196 = vmatpush3.msra.mxu1 %v889_v31 }
  0x47   : > { %2158 = vmatmul.mubr.f32.vlgmr.msra.gmra.mxu0 %v376_v33 }
  0x48   : > { %2160 = vmatprep.mubr.f32.mxu0 %v377_v34 }
  0x4b   : > { %2161 = vmatmul.mubr.f32.gmra.mxu0 %v378_v35  ;;  %v888_v35 = vld [vmem:[%s3699_s3 + $0x38] sm:$0xff] }
  0x4c   : > { %2163 = vmatprep.mubr.f32.mxu0 %v379_v36  ;;  %2197 = vmatprep.subr.mxu1 %v888_v35 }
  0x4d   : > { %2198 = vmatpush3.msra.mxu1 %v888_v35 }
  0x4f   : > { %2164 = vmatmul.mubr.f32.gmra.mxu0 %v380_v37  ;;  %v887_v37 = vld [vmem:[%s3699_s3 + $0x30] sm:$0xff] }
  0x50   : > { %2166 = vmatprep.mubr.f32.mxu0 %v381_v38  ;;  %2199 = vmatprep.subr.mxu1 %v887_v37 }
  0x51   : > { %2200 = vmatpush3.msra.mxu1 %v887_v37 }
  0x53   : > { %2167 = vmatmul.mubr.f32.gmra.mxu0 %v382_v39 }
  0x54   : > { %2169 = vmatprep.mubr.f32.mxu0 %v383_v40  ;;  %v886_v40 = vld [vmem:[%s3699_s3 + $0x28] sm:$0xff] }
  0x55   : > { %2201 = vmatprep.subr.mxu1 %v886_v40 }
  0x56   : > { %2202 = vmatpush3.msra.mxu1 %v886_v40 }
  0x57   : > { %2170 = vmatmul.mubr.f32.gmra.mxu0 %v384_v41  ;;  %v885_v41 = vld [vmem:[%s3699_s3 + $0x20] sm:$0xff] }
  0x58   : > { %2172 = vmatprep.mubr.f32.mxu0 %v385_v42  ;;  %2203 = vmatprep.subr.mxu1 %v885_v41 }
  0x59   : > { %2204 = vmatpush3.msra.mxu1 %v885_v41 }
  0x5b   : > { %2173 = vmatmul.mubr.f32.gmra.mxu0 %v386_v43 }
  0x5c   : > { %2175 = vmatprep.mubr.f32.mxu0 %v387_v44  ;;  %v577_v44 = vcombine.high %v2739_v4, %v2739_v4 }
  0x5e   : > { %v593_v49 = vrot.slane %v577_v44, %v2724_v56 }
  0x5f   : > { %2176 = vmatmul.mubr.f32.gmra.mxu0 %v388_v45 }
  0x60   : > { %2178 = vmatprep.mubr.f32.mxu0 %v389_v46  ;;  %v884_v46 = vld [vmem:[%s3699_s3 + $0x18] sm:$0xff] }
  0x61   : > { %2205 = vmatprep.subr.mxu1 %v884_v46 }
  0x62   : > { %2206 = vmatpush3.msra.mxu1 %v884_v46 }
  0x63   : > { %2179 = vmatmul.mubr.f32.gmra.mxu0 %v390_v47  ;;  %2207 = vmatprep.subr.mxu1 %v883_v48 }
  0x64   : > { %2208 = vmatpush3.msra.mxu1 %v883_v48 }
  0x65   : > { %2209 = vmatprep.subr.mxu1 %v882_v52 }
  0x66   : > { %2210 = vmatpush3.msra.mxu1 %v882_v52 }
  0x67   : > { %2211 = vmatprep.subr.mxu1 %v881_v54 }
  0x68   : > { %2212 = vmatpush3.msra.mxu1 %v881_v54 }
 0x107   : > { %v2159_v58 = vpop.f32.mrf.mxu0 }
 0x108   : > { %v2727_v59 = vadd.f32 %v2159_v58, %v581_v57 }
 0x109   : > { %v473_v60 = vpop.f32.mrf.mxu0 }
 0x10a   : > { %v2729_v61 = vadd.f32 %v581_v57, %v473_v60  ;;  %618 = vadd.xlane.f32.xlu0 %v2727_v59  ;;  %v666_v62 = vmul.f32 %v2727_v59, %v2727_v59 }
 0x10b   : > { %v2162_v0 = vpop.f32.mrf.mxu0 }
 0x10c   : > { %683 = vadd.xlane.f32.xlu1 %v666_v62  ;;  %v665_v3 = vmul.f32 %v2729_v61, %v2729_v61  ;;  %v2741_v6 = vadd.f32 %v2162_v0, %v581_v57 }
 0x10d   : > { %v483_v1 = vpop.f32.mrf.mxu0 }
 0x10e   : > { %616 = vadd.xlane.f32.xlu0 %v2729_v61  ;;  %v2735_v2 = vadd.f32 %v581_v57, %v483_v1  ;;  %v668_v11 = vmul.f32 %v2741_v6, %v2741_v6 }
 0x10f   : > { %v2165_v5 = vpop.f32.mrf.mxu0 }
 0x110   : > { %681 = vadd.xlane.f32.xlu1 %v665_v3  ;;  %v667_v8 = vmul.f32 %v2735_v2, %v2735_v2  ;;  %v2756_v14 = vadd.f32 %v2165_v5, %v585_v7 }
 0x111   : > { %v493_v9 = vpop.f32.mrf.mxu0 }
 0x112   : > { %620 = vadd.xlane.f32.xlu0 %v2735_v2  ;;  %v2749_v10 = vadd.f32 %v585_v7, %v493_v9  ;;  %v670_v21 = vmul.f32 %v2756_v14, %v2756_v14 }
 0x113   : > { %v2168_v13 = vpop.f32.mrf.mxu0 }
 0x114   : > { %622 = vadd.xlane.f32.xlu1 %v2741_v6  ;;  %v669_v16 = vmul.f32 %v2749_v10, %v2749_v10  ;;  %v2778_v25 = vadd.f32 %v2168_v13, %v585_v7 }
 0x115   : > { %v503_v18 = vpop.f32.mrf.mxu0 }
 0x116   : > { %685 = vadd.xlane.f32.xlu0 %v667_v8  ;;  %v2771_v20 = vadd.f32 %v585_v7, %v503_v18  ;;  %v672_v33 = vmul.f32 %v2778_v25, %v2778_v25 }
 0x117   : > { %v2171_v23 = vpop.f32.mrf.mxu0 }
 0x118   : > { %687 = vadd.xlane.f32.xlu1 %v668_v11  ;;  %v671_v28 = vmul.f32 %v2771_v20, %v2771_v20  ;;  %v2801_v36 = vadd.f32 %v2171_v23, %v589_v27 }
 0x119   : > { %v513_v29 = vpop.f32.mrf.mxu0 }
 0x11a   : > { %624 = vadd.xlane.f32.xlu0 %v2749_v10  ;;  %v2794_v32 = vadd.f32 %v589_v27, %v513_v29  ;;  %v674_v43 = vmul.f32 %v2801_v36, %v2801_v36 }
 0x11b   : > { %v2174_v34 = vpop.f32.mrf.mxu0 }
 0x11c   : > { %626 = vadd.xlane.f32.xlu1 %v2756_v14  ;;  %v673_v38 = vmul.f32 %v2794_v32, %v2794_v32  ;;  %v2825_v47 = vadd.f32 %v2174_v34, %v589_v27 }
 0x11d   : > { %v523_v39 = vpop.f32.mrf.mxu0 }
 0x11e   : > { %689 = vadd.xlane.f32.xlu0 %v669_v16  ;;  %v2816_v42 = vadd.f32 %v589_v27, %v523_v39  ;;  %v676_v53 = vmul.f32 %v2825_v47, %v2825_v47 }
 0x11f   : > { %v2177_v45 = vpop.f32.mrf.mxu0 }
 0x120   : > { %691 = vadd.xlane.f32.xlu1 %v670_v21  ;;  %v675_v50 = vmul.f32 %v2816_v42, %v2816_v42  ;;  %v2845_v57 = vadd.f32 %v2177_v45, %v593_v49 }
 0x121   : > { %v533_v51 = vpop.f32.mrf.mxu0 }
 0x122   : > { %628 = vadd.xlane.f32.xlu0 %v2771_v20  ;;  %v2843_v55 = vadd.f32 %v593_v49, %v533_v51  ;;  %v678_v62 = vmul.f32 %v2845_v57, %v2845_v57 }
 0x123   : > { %v2180_v56 = vpop.f32.mrf.mxu0 }
 0x124   : > { %630 = vadd.xlane.f32.xlu1 %v2778_v25  ;;  %v677_v58 = vmul.f32 %v2843_v55, %v2843_v55  ;;  %v2855_v0 = vadd.f32 %v2180_v56, %v593_v49 }
 0x125   : > { %v543_v60 = vpop.f32.mrf.mxu0 }
 0x126   : > { %693 = vadd.xlane.f32.xlu0 %v671_v28  ;;  %v2853_v63 = vadd.f32 %v593_v49, %v543_v60  ;;  %v680_v3 = vmul.f32 %v2855_v0, %v2855_v0 }
 0x128   : > { %695 = vadd.xlane.f32.xlu1 %v672_v33  ;;  %v679_v1 = vmul.f32 %v2853_v63, %v2853_v63 }
 0x12a   : > { %632 = vadd.xlane.f32.xlu0 %v2794_v32 }
 0x12c   : > { %634 = vadd.xlane.f32.xlu1 %v2801_v36 }
 0x12e   : > { %697 = vadd.xlane.f32.xlu0 %v673_v38 }
 0x130   : > { %699 = vadd.xlane.f32.xlu1 %v674_v43 }
 0x132   : > { %636 = vadd.xlane.f32.xlu0 %v2816_v42 }
 0x134   : > { %638 = vadd.xlane.f32.xlu1 %v2825_v47 }
 0x136   : > { %701 = vadd.xlane.f32.xlu0 %v675_v50 }
 0x138   : > { %703 = vadd.xlane.f32.xlu1 %v676_v53 }
 0x13a   : > { %640 = vadd.xlane.f32.xlu0 %v2843_v55 }
 0x13c   : > { %642 = vadd.xlane.f32.xlu1 %v2845_v57 }
 0x13e   : > { %705 = vadd.xlane.f32.xlu0 %v677_v58 }
 0x140   : > { %707 = vadd.xlane.f32.xlu1 %v678_v62 }
 0x142   : > { %644 = vadd.xlane.f32.xlu0 %v2853_v63 }
 0x144   : > { %646 = vadd.xlane.f32.xlu1 %v2855_v0 }
 0x146   : > { %709 = vadd.xlane.f32.xlu0 %v679_v1 }
 0x148   : > { %711 = vadd.xlane.f32.xlu1 %v680_v3 }
 0x193   : > { %v619_v4 = vpop.xlane.xlu0 %618 }
 0x194   : > { %v650_v5 = vmul.f32 0.0078125, %v619_v4 }
 0x195   : > { %v684_v7 = vpop.xlane.xlu1 %683 }
 0x196   : > { %v730_v8 = vmul.f32 %v650_v5, %v650_v5  ;;  %v714_v9 = vmul.f32 0.0078125, %v684_v7  ;;  %v778_v60 = vsub.f32 %v2727_v59, %v650_v5 }
 0x197   : > { %v617_v11 = vpop.xlane.xlu0 %616 }
 0x198   : > { %v746_v12 = vsub.f32 %v714_v9, %v730_v8  ;;  %v649_v13 = vmul.f32 0.0078125, %v617_v11 }
 0x199   : > { %v682_v15 = vpop.xlane.xlu1 %681 }
 0x19a   : > { %v762_v16 = vmax.f32 %v746_v12, 0.0  ;;  %v729_v17 = vmul.f32 %v649_v13, %v649_v13  ;;  %v713_v18 = vmul.f32 0.0078125, %v682_v15  ;;  %v777_v9 = vsub.f32 %v2729_v61, %v649_v13 }
 0x19b   : > { %v621_v19 = vpop.xlane.xlu0 %620 }
 0x19c   : > { %v794_v21 = vadd.f32 1e-05, %v762_v16  ;;  %v745_v22 = vsub.f32 %v713_v18, %v729_v17  ;;  %v2863_v23 = vmul.f32 0.0078125, %v621_v19  ;;  %v2888_v16 = vld [vmem:[%s3701_s5] ss:$0 sm:$0xff] }
 0x19d   : > { %v623_v24 = vpop.xlane.xlu1 %622 }
 0x19e   : > { %2367 = vrsqrt.f32 %v794_v21  ;;  %v761_v26 = vmax.f32 %v745_v22, 0.0  ;;  %v731_v27 = vmul.f32 %v2863_v23, %v2863_v23  ;;  %v2867_v28 = vmul.f32 0.0078125, %v623_v24 }
 0x19f   : > { %v686_v29 = vpop.xlane.xlu0 %685 }
 0x1a0   : > { %v793_v30 = vadd.f32 1e-05, %v761_v26  ;;  %v715_v31 = vmul.f32 0.0078125, %v686_v29  ;;  %v732_v34 = vmul.f32 %v2867_v28, %v2867_v28 }
 0x1a1   : > { %v688_v33 = vpop.xlane.xlu1 %687 }
 0x1a2   : > { %2369 = vrsqrt.f32 %v793_v30  ;;  %v747_v35 = vsub.f32 %v715_v31, %v731_v27  ;;  %v716_v37 = vmul.f32 0.0078125, %v688_v33  ;;  %v2898_v27 = vld [vmem:[%s3702_s6] ss:$0 sm:$0xff] }
 0x1a3   : > { %v625_v38 = vpop.xlane.xlu0 %624 }
 0x1a4   : > { %v763_v39 = vmax.f32 %v747_v35, 0.0  ;;  %v748_v40 = vsub.f32 %v716_v37, %v732_v34  ;;  %v2871_v41 = vmul.f32 0.0078125, %v625_v38  ;;  %v779_v38 = vsub.f32 %v2735_v2, %v2863_v23 }
 0x1a5   : > { %v627_v43 = vpop.xlane.xlu1 %626 }
 0x1a6   : > { %v795_v44 = vadd.f32 1e-05, %v763_v39  ;;  %v764_v45 = vmax.f32 %v748_v40, 0.0  ;;  %v733_v46 = vmul.f32 %v2871_v41, %v2871_v41  ;;  %v2875_v48 = vmul.f32 0.0078125, %v627_v43 }
 0x1a7   : > { %v690_v49 = vpop.xlane.xlu0 %689  ;;  %v780_v43 = vsub.f32 %v2741_v6, %v2867_v28 }
 0x1a8   : > { %2371 = vrsqrt.f32 %v795_v44  ;;  %v796_v50 = vadd.f32 1e-05, %v764_v45  ;;  %v717_v51 = vmul.f32 0.0078125, %v690_v49  ;;  %v734_v53 = vmul.f32 %v2875_v48, %v2875_v48 }
 0x1a9   : > { %v692_v52 = vpop.xlane.xlu1 %691 }
 0x1aa   : > { %2373 = vrsqrt.f32 %v796_v50  ;;  %v749_v54 = vsub.f32 %v717_v51, %v733_v46  ;;  %v718_v56 = vmul.f32 0.0078125, %v692_v52 }
 0x1ab   : > { %v2368_v58 = vpop.eup %2367  ;;  %v629_v62 = vpop.xlane.xlu0 %628 }
 0x1ac   : > { %v765_v1 = vmax.f32 %v749_v54, 0.0  ;;  %v750_v3 = vsub.f32 %v718_v56, %v734_v53  ;;  %v2880_v4 = vmul.f32 0.0078125, %v629_v62  ;;  %v826_v8 = vmul.f32 %v2368_v58, %v778_v60 }
 0x1ad   : > { %v631_v7 = vpop.xlane.xlu1 %630 }
 0x1ae   : > { %v797_v11 = vadd.f32 1e-05, %v765_v1  ;;  %v766_v12 = vmax.f32 %v750_v3, 0.0  ;;  %v735_v15 = vmul.f32 %v2880_v4, %v2880_v4  ;;  %v2890_v5 = vmul.f32 0.0078125, %v631_v7 }
 0x1af   : > { %v2370_v59 = vpop.eup %2369  ;;  %v694_v17 = vpop.xlane.xlu0 %693  ;;  %v846_v22 = vmul.f32 %v2888_v16, %v826_v8 }
 0x1b0   : > { %2375 = vrsqrt.f32 %v797_v11  ;;  %v798_v18 = vadd.f32 1e-05, %v766_v12  ;;  %v719_v19 = vmul.f32 0.0078125, %v694_v17  ;;  %v825_v21 = vmul.f32 %v2370_v59, %v777_v9 }
 0x1b1   : > { %v736_v61 = vmul.f32 %v2890_v5, %v2890_v5  ;;  %v696_v13 = vpop.xlane.xlu1 %695  ;;  %v2909_v40 = vadd.f32 %v2898_v27, %v846_v22  ;;  %v781_v12 = vsub.f32 %v2749_v10, %v2871_v41  ;;  %v782_v59 = vsub.f32 %v2756_v14, %v2875_v48 }
 0x1b2   : > { %2377 = vrsqrt.f32 %v798_v18  ;;  %v751_v24 = vsub.f32 %v719_v19, %v735_v15  ;;  %v720_v26 = vmul.f32 0.0078125, %v696_v13  ;;  %v845_v29 = vmul.f32 %v2888_v16, %v825_v21 }
 0x1b3   : > { %v633_v30 = vpop.xlane.xlu0 %632 }
 0x1b4   : > { %v767_v31 = vmax.f32 %v751_v24, 0.0  ;;  %v752_v33 = vsub.f32 %v720_v26, %v736_v61  ;;  %v2901_v34 = vmul.f32 0.0078125, %v633_v30  ;;  %v2904_v35 = vadd.f32 %v2898_v27, %v845_v29 }
 0x1b5   : > { %v2372_v37 = vpop.eup %2371  ;;  %v635_v39 = vpop.xlane.xlu1 %634 }
 0x1b6   : > { %v799_v44 = vadd.f32 1e-05, %v767_v31  ;;  %v768_v45 = vmax.f32 %v752_v33, 0.0  ;;  %v737_v46 = vmul.f32 %v2901_v34, %v2901_v34  ;;  %2213 = vmatprep.mubr.f32.mxu1 %v2904_v35  ;;  %v2916_v50 = vmul.f32 0.0078125, %v635_v39 }
 0x1b7   : > { %v2374_v49 = vpop.eup %2373  ;;  %2214 = vmatmul.mubr.f32.vlgmr.msra.gmra.mxu1 %v2909_v40  ;;  %v698_v2 = vpop.xlane.xlu0 %697  ;;  %v827_v23 = vmul.f32 %v2372_v37, %v779_v38 }
 0x1b8   : > { %2379 = vrsqrt.f32 %v799_v44  ;;  %v800_v51 = vadd.f32 1e-05, %v768_v45  ;;  %v721_v52 = vmul.f32 0.0078125, %v698_v2  ;;  %v828_v53 = vmul.f32 %v2374_v49, %v780_v43 }
 0x1b9   : > { %v738_v6 = vmul.f32 %v2916_v50, %v2916_v50  ;;  %v700_v28 = vpop.xlane.xlu1 %699  ;;  %v847_v54 = vmul.f32 %v2888_v16, %v827_v23  ;;  %v784_v2 = vsub.f32 %v2778_v25, %v2890_v5 }
 0x1ba   : > { %2381 = vrsqrt.f32 %v800_v51  ;;  %v753_v56 = vsub.f32 %v721_v52, %v737_v46  ;;  %v722_v58 = vmul.f32 0.0078125, %v700_v28  ;;  %v848_v60 = vmul.f32 %v2888_v16, %v828_v53 }
 0x1bb   : > { %v637_v62 = vpop.xlane.xlu0 %636  ;;  %v2924_v1 = vadd.f32 %v2898_v27, %v847_v54  ;;  %v783_v46 = vsub.f32 %v2771_v20, %v2880_v4 }
 0x1bc   : > { %v769_v3 = vmax.f32 %v753_v56, 0.0  ;;  %v754_v7 = vsub.f32 %v722_v58, %v738_v6  ;;  %v2926_v8 = vmul.f32 0.0078125, %v637_v62  ;;  %v2929_v9 = vadd.f32 %v2898_v27, %v848_v60 }
 0x1bd   : > { %v2376_v11 = vpop.eup %2375  ;;  %2216 = vmatprep.mubr.f32.mxu1 %v2924_v1  ;;  %v639_v15 = vpop.xlane.xlu1 %638 }
 0x1be   : > { %v801_v17 = vadd.f32 1e-05, %v769_v3  ;;  %v770_v18 = vmax.f32 %v754_v7, 0.0  ;;  %v739_v19 = vmul.f32 %v2926_v8, %v2926_v8  ;;  %2217 = vmatmul.mubr.f32.gmra.mxu1 %v2929_v9  ;;  %v2939_v61 = vmul.f32 0.0078125, %v639_v15 }
 0x1bf   : > { %v2378_v21 = vpop.eup %2377  ;;  %v702_v13 = vpop.xlane.xlu0 %701  ;;  %v829_v22 = vmul.f32 %v2376_v11, %v781_v12 }
 0x1c0   : > { %2383 = vrsqrt.f32 %v801_v17  ;;  %v802_v10 = vadd.f32 1e-05, %v770_v18  ;;  %v723_v41 = vmul.f32 0.0078125, %v702_v13  ;;  %v830_v24 = vmul.f32 %v2378_v21, %v782_v59 }
 0x1c1   : > { %v740_v26 = vmul.f32 %v2939_v61, %v2939_v61  ;;  %v704_v14 = vpop.xlane.xlu1 %703  ;;  %v849_v48 = vmul.f32 %v2888_v16, %v829_v22  ;;  %v786_v13 = vsub.f32 %v2801_v36, %v2916_v50 }
 0x1c2   : > { %2385 = vrsqrt.f32 %v802_v10  ;;  %v755_v29 = vsub.f32 %v723_v41, %v739_v19  ;;  %v724_v30 = vmul.f32 0.0078125, %v704_v14  ;;  %v850_v31 = vmul.f32 %v2888_v16, %v830_v24 }
 0x1c3   : > { %v641_v33 = vpop.xlane.xlu0 %640  ;;  %v2946_v37 = vadd.f32 %v2898_v27, %v849_v48  ;;  %v785_v19 = vsub.f32 %v2794_v32, %v2901_v34 }
 0x1c4   : > { %v771_v38 = vmax.f32 %v755_v29, 0.0  ;;  %v756_v39 = vsub.f32 %v724_v30, %v740_v26  ;;  %v2948_v43 = vmul.f32 0.0078125, %v641_v33  ;;  %v2951_v44 = vadd.f32 %v2898_v27, %v850_v31 }
 0x1c5   : > { %v2380_v45 = vpop.eup %2379  ;;  %2219 = vmatprep.mubr.f32.mxu1 %v2946_v37  ;;  %v643_v49 = vpop.xlane.xlu1 %642 }
 0x1c6   : > { %v803_v23 = vadd.f32 1e-05, %v771_v38  ;;  %v772_v51 = vmax.f32 %v756_v39, 0.0  ;;  %v741_v52 = vmul.f32 %v2948_v43, %v2948_v43  ;;  %2220 = vmatmul.mubr.f32.gmra.mxu1 %v2951_v44  ;;  %v2961_v6 = vmul.f32 0.0078125, %v643_v49 }
 0x1c7   : > { %v2382_v53 = vpop.eup %2381  ;;  %v706_v28 = vpop.xlane.xlu0 %705  ;;  %v831_v54 = vmul.f32 %v2380_v45, %v783_v46  ;;  %v787_v45 = vsub.f32 %v2816_v42, %v2926_v8 }
 0x1c8   : > { %2387 = vrsqrt.f32 %v803_v23  ;;  %v804_v20 = vadd.f32 1e-05, %v772_v51  ;;  %v725_v4 = vmul.f32 0.0078125, %v706_v28  ;;  %v832_v56 = vmul.f32 %v2382_v53, %v784_v2 }
 0x1c9   : > { %v742_v58 = vmul.f32 %v2961_v6, %v2961_v6  ;;  %v708_v25 = vpop.xlane.xlu1 %707  ;;  %v851_v5 = vmul.f32 %v2888_v16, %v831_v54  ;;  %v788_v51 = vsub.f32 %v2825_v47, %v2939_v61  ;;  %v789_v47 = vsub.f32 %v2843_v55, %v2948_v43 }
 0x1ca   : > { %2389 = vrsqrt.f32 %v804_v20  ;;  %v757_v60 = vsub.f32 %v725_v4, %v741_v52  ;;  %v726_v62 = vmul.f32 0.0078125, %v708_v25  ;;  %v852_v3 = vmul.f32 %v2888_v16, %v832_v56 }
 0x1cb   : > { %v645_v7 = vpop.xlane.xlu0 %644  ;;  %v2968_v11 = vadd.f32 %v2898_v27, %v851_v5  ;;  %v790_v25 = vsub.f32 %v2845_v57, %v2961_v6 }
 0x1cc   : > { %v773_v12 = vmax.f32 %v757_v60, 0.0  ;;  %v758_v15 = vsub.f32 %v726_v62, %v742_v58  ;;  %v2970_v59 = vmul.f32 0.0078125, %v645_v7  ;;  %v2973_v17 = vadd.f32 %v2898_v27, %v852_v3 }
 0x1cd   : > { %v2384_v18 = vpop.eup %2383  ;;  %2222 = vmatprep.mubr.f32.mxu1 %v2968_v11  ;;  %v647_v21 = vpop.xlane.xlu1 %646 }
 0x1ce   : > { %v805_v22 = vadd.f32 1e-05, %v773_v12  ;;  %v774_v10 = vmax.f32 %v758_v15, 0.0  ;;  %v743_v41 = vmul.f32 %v2970_v59, %v2970_v59  ;;  %2223 = vmatmul.mubr.f32.gmra.mxu1 %v2973_v17  ;;  %v664_v26 = vmul.f32 0.0078125, %v647_v21 }
 0x1cf   : > { %v2386_v24 = vpop.eup %2385  ;;  %v710_v14 = vpop.xlane.xlu0 %709  ;;  %v833_v48 = vmul.f32 %v2384_v18, %v785_v19  ;;  %v791_v43 = vsub.f32 %v2853_v63, %v2970_v59 }
 0x1d0   : > { %2391 = vrsqrt.f32 %v805_v22  ;;  %v806_v29 = vadd.f32 1e-05, %v774_v10  ;;  %v727_v32 = vmul.f32 0.0078125, %v710_v14  ;;  %v834_v34 = vmul.f32 %v2386_v24, %v786_v13 }
 0x1d1   : > { %v744_v30 = vmul.f32 %v664_v26, %v664_v26  ;;  %v712_v31 = vpop.xlane.xlu1 %711  ;;  %v853_v33 = vmul.f32 %v2888_v16, %v833_v48  ;;  %v792_v6 = vsub.f32 %v2855_v0, %v664_v26  ;;  %v3037_v0 = vld [vmem:[%s3700_s4] ss:$0 sm:$0xff] }
 0x1d2   : > { %2393 = vrsqrt.f32 %v806_v29  ;;  %v759_v36 = vsub.f32 %v727_v32, %v743_v41  ;;  %v728_v50 = vmul.f32 0.0078125, %v712_v31  ;;  %v854_v38 = vmul.f32 %v2888_v16, %v834_v34 }
 0x1d3   : > { %v2986_v39 = vadd.f32 %v2898_v27, %v853_v33 }
 0x1d4   : > { %v775_v46 = vmax.f32 %v759_v36, 0.0  ;;  %v760_v49 = vsub.f32 %v728_v50, %v744_v30  ;;  %v2991_v2 = vadd.f32 %v2898_v27, %v854_v38  ;;  %v2016_v38 = vld [vmem:[%s3699_s3 + $0xf8] sm:$0xff] }
 0x1d5   : > { %v2388_v23 = vpop.eup %2387  ;;  %2225 = vmatprep.mubr.f32.mxu1 %v2986_v39  ;;  %2237 = vmatprep.subr.mxu0 %v2016_v38 }
 0x1d6   : > { %v807_v52 = vadd.f32 1e-05, %v775_v46  ;;  %v776_v53 = vmax.f32 %v760_v49, 0.0  ;;  %2226 = vmatmul.mubr.f32.gmra.mxu1 %v2991_v2  ;;  %v835_v28 = vmul.f32 %v2388_v23, %v787_v45  ;;  %2238 = vmatpush3.msra.mxu0 %v2016_v38  ;;  %v2014_v49 = vld [vmem:[%s3699_s3 + $0xe8] sm:$0xff] }
 0x1d7   : > { %v2390_v54 = vpop.eup %2389  ;;  %2293 = vmatprep.subr.mxu1 %v2016_v38 }
 0x1d8   : > { %2395 = vrsqrt.f32 %v807_v52  ;;  %v808_v20 = vadd.f32 1e-05, %v776_v53  ;;  %v855_v42 = vmul.f32 %v2888_v16, %v835_v28  ;;  %v836_v8 = vmul.f32 %v2390_v54, %v788_v51  ;;  %2309 = vmatpush3.msra.mxu1 %v2016_v38  ;;  %v2013_v51 = vld [vmem:[%s3699_s3 + $0xe0] sm:$0xff]  ;;  %v2012_v54 = vld [vmem:[%s3699_s3 + $0xd8] sm:$0xff] }
 0x1da   : > { %2397 = vrsqrt.f32 %v808_v20  ;;  %v2999_v4 = vadd.f32 %v2898_v27, %v855_v42  ;;  %v856_v56 = vmul.f32 %v2888_v16, %v836_v8  ;;  %v2011_v42 = vld [vmem:[%s3699_s3 + $0xd0] sm:$0xff] }
 0x1dc   : > { %2228 = vmatprep.mubr.f32.mxu1 %v2999_v4  ;;  %v3006_v61 = vadd.f32 %v2898_v27, %v856_v56 }
 0x1dd   : > { %v2392_v58 = vpop.eup %2391 }
 0x1de   : > { %2229 = vmatmul.mubr.f32.gmra.mxu1 %v3006_v61  ;;  %v837_v5 = vmul.f32 %v2392_v58, %v789_v47 }
 0x1df   : > { %v2394_v60 = vpop.eup %2393 }
 0x1e0   : > { %v857_v62 = vmul.f32 %v2888_v16, %v837_v5  ;;  %v838_v3 = vmul.f32 %v2394_v60, %v790_v25  ;;  %v2010_v25 = vld [vmem:[%s3699_s3 + $0xc8] sm:$0xff] }
 0x1e2   : > { %v3013_v7 = vadd.f32 %v2898_v27, %v857_v62  ;;  %v858_v55 = vmul.f32 %v2888_v16, %v838_v3 }
 0x1e4   : > { %2231 = vmatprep.mubr.f32.mxu1 %v3013_v7  ;;  %v3020_v12 = vadd.f32 %v2898_v27, %v858_v55 }
 0x1e5   : > { %v2396_v57 = vpop.eup %2395 }
 0x1e6   : > { %2232 = vmatmul.mubr.f32.gmra.mxu1 %v3020_v12  ;;  %v839_v15 = vmul.f32 %v2396_v57, %v791_v43  ;;  %v2008_v57 = vld [vmem:[%s3699_s3 + $0xb8] sm:$0xff] }
 0x1e7   : > { %v2398_v18 = vpop.eup %2397 }
 0x1e8   : > { %v859_v19 = vmul.f32 %v2888_v16, %v839_v15  ;;  %v840_v21 = vmul.f32 %v2398_v18, %v792_v6  ;;  %v2006_v18 = vld [vmem:[%s3699_s3 + $0xa8] sm:$0xff] }
 0x1ea   : > { %v3026_v13 = vadd.f32 %v2898_v27, %v859_v19  ;;  %v860_v63 = vmul.f32 %v2888_v16, %v840_v21  ;;  %v2005_v21 = vld [vmem:[%s3699_s3 + $0xa0] sm:$0xff] }
 0x1ec   : > { %2234 = vmatprep.mubr.f32.mxu1 %v3026_v13  ;;  %v3031_v59 = vadd.f32 %v2898_v27, %v860_v63 }
 0x1ee   : > { %2235 = vmatmul.mubr.f32.gmra.mxu1 %v3031_v59 }
 0x277   : > { %v2215_v22 = vpop.f32.mrf.mxu1 }
 0x278   : > { %v974_v10 = vadd.f32 %v2215_v22, %v3037_v0 }
 0x279   : > { %v968_v41 = vpop.f32.mrf.mxu1 }
 0x27a   : > { %v1048_v24 = vmax.f32 %v974_v10, 0.0  ;;  %v969_v26 = vadd.f32 %v3037_v0, %v968_v41 }
 0x27c   : > { %v3042_v16 = vadd.f32 %v1048_v24, %v2909_v40  ;;  %v1047_v14 = vmax.f32 %v969_v26, 0.0  ;;  %v2004_v24 = vld [vmem:[%s3699_s3 + $0x98] sm:$0xff] }
 0x27e   : > { %v3045_v27 = vadd.f32 %v1047_v14, %v2904_v35  ;;  %v2218_v48 = vpop.f32.mrf.mxu1  ;;  %1083 = vadd.xlane.f32.xlu1 %v3042_v16  ;;  %v1130_v34 = vmul.f32 %v3042_v16, %v3042_v16  ;;  %v2003_v14 = vld [vmem:[%s3699_s3 + $0x90] sm:$0xff] }
 0x27f   : > { %v984_v29 = vadd.f32 %v2218_v48, %v3037_v0 }
 0x280   : > { %v978_v32 = vpop.f32.mrf.mxu1  ;;  %1081 = vadd.xlane.f32.xlu0 %v3045_v27  ;;  %v1129_v40 = vmul.f32 %v3045_v27, %v3045_v27 }
 0x281   : > { %v1050_v30 = vmax.f32 %v984_v29, 0.0  ;;  %v979_v31 = vadd.f32 %v3037_v0, %v978_v32 }
 0x282   : > { %1147 = vadd.xlane.f32.xlu1 %v1130_v34 }
 0x283   : > { %v3056_v35 = vadd.f32 %v1050_v30, %v2929_v9  ;;  %v1049_v33 = vmax.f32 %v979_v31, 0.0  ;;  %v2015_v9 = vld [vmem:[%s3699_s3 + $0xf0] sm:$0xff]  ;;  %v2002_v31 = vld [vmem:[%s3699_s3 + $0x88] sm:$0xff] }
 0x284   : > { %1145 = vadd.xlane.f32.xlu0 %v1129_v40  ;;  %2239 = vmatprep.subr.mxu0 %v2015_v9 }
 0x285   : > { %v3060_v36 = vadd.f32 %v1049_v33, %v2924_v1  ;;  %v1132_v1 = vmul.f32 %v3056_v35, %v3056_v35  ;;  %2240 = vmatpush3.msra.mxu0 %v2015_v9  ;;  %2294 = vmatprep.subr.mxu1 %v2015_v9 }
 0x286   : > { %v2221_v50 = vpop.f32.mrf.mxu1  ;;  %2241 = vmatprep.subr.mxu0 %v2014_v49  ;;  %2310 = vmatpush3.msra.mxu1 %v2015_v9 }
 0x287   : > { %v994_v45 = vadd.f32 %v2221_v50, %v3037_v0  ;;  %2242 = vmatpush3.msra.mxu0 %v2014_v49  ;;  %v1131_v28 = vmul.f32 %v3060_v36, %v3060_v36  ;;  %2295 = vmatprep.subr.mxu1 %v2014_v49 }
 0x288   : > { %1087 = vadd.xlane.f32.xlu0 %v3056_v35  ;;  %v988_v46 = vpop.f32.mrf.mxu1  ;;  %2243 = vmatprep.subr.mxu0 %v2013_v51 }
 0x289   : > { %v1052_v52 = vmax.f32 %v994_v45, 0.0  ;;  %v989_v53 = vadd.f32 %v3037_v0, %v988_v46  ;;  %2244 = vmatpush3.msra.mxu0 %v2013_v51  ;;  %2311 = vmatpush3.msra.mxu1 %v2014_v49 }
 0x28a   : > { %2245 = vmatprep.subr.mxu0 %v2012_v54  ;;  %2296 = vmatprep.subr.mxu1 %v2013_v51 }
 0x28b   : > { %2246 = vmatpush3.msra.mxu0 %v2012_v54  ;;  %v3088_v8 = vadd.f32 %v1052_v52, %v2951_v44  ;;  %v1051_v56 = vmax.f32 %v989_v53, 0.0  ;;  %2312 = vmatpush3.msra.mxu1 %v2013_v51  ;;  %v2009_v44 = vld [vmem:[%s3699_s3 + $0xc0] sm:$0xff] }
 0x28c   : > { %1085 = vadd.xlane.f32.xlu0 %v3060_v36  ;;  %2247 = vmatprep.subr.mxu0 %v2011_v42 }
 0x28d   : > { %2248 = vmatpush3.msra.mxu0 %v2011_v42  ;;  %2297 = vmatprep.subr.mxu1 %v2012_v54  ;;  %v3100_v3 = vadd.f32 %v1051_v56, %v2946_v37  ;;  %v2007_v37 = vld [vmem:[%s3699_s3 + $0xb0] sm:$0xff]  ;;  %v1134_v6 = vmul.f32 %v3088_v8, %v3088_v8 }
 0x28e   : > { %v2224_v23 = vpop.f32.mrf.mxu1  ;;  %2249 = vmatprep.subr.mxu0 %v2010_v25  ;;  %2313 = vmatpush3.msra.mxu1 %v2012_v54 }
 0x28f   : > { %2250 = vmatpush3.msra.mxu0 %v2010_v25  ;;  %2298 = vmatprep.subr.mxu1 %v2011_v42  ;;  %v1133_v22 = vmul.f32 %v3100_v3, %v3100_v3 }
 0x290   : > { %1151 = vadd.xlane.f32.xlu0 %v1132_v1  ;;  %v998_v20 = vpop.f32.mrf.mxu1  ;;  %2251 = vmatprep.subr.mxu0 %v2009_v44 }
 0x291   : > { %2252 = vmatpush3.msra.mxu0 %v2009_v44  ;;  %2314 = vmatpush3.msra.mxu1 %v2011_v42 }
 0x292   : > { %2253 = vmatprep.subr.mxu0 %v2008_v57  ;;  %2299 = vmatprep.subr.mxu1 %v2010_v25 }
 0x293   : > { %2254 = vmatpush3.msra.mxu0 %v2008_v57  ;;  %2315 = vmatpush3.msra.mxu1 %v2010_v25 }
 0x294   : > { %1149 = vadd.xlane.f32.xlu0 %v1131_v28  ;;  %2255 = vmatprep.subr.mxu0 %v2007_v37 }
 0x295   : > { %2256 = vmatpush3.msra.mxu0 %v2007_v37  ;;  %2300 = vmatprep.subr.mxu1 %v2009_v44 }
 0x296   : > { %v2227_v47 = vpop.f32.mrf.mxu1  ;;  %2257 = vmatprep.subr.mxu0 %v2006_v18  ;;  %2316 = vmatpush3.msra.mxu1 %v2009_v44 }
 0x297   : > { %v1014_v58 = vadd.f32 %v2227_v47, %v3037_v0  ;;  %2258 = vmatpush3.msra.mxu0 %v2006_v18  ;;  %2301 = vmatprep.subr.mxu1 %v2008_v57 }
 0x298   : > { %v1008_v5 = vpop.f32.mrf.mxu1  ;;  %1091 = vadd.xlane.f32.xlu0 %v3088_v8  ;;  %2259 = vmatprep.subr.mxu0 %v2005_v21 }
 0x299   : > { %v1056_v60 = vmax.f32 %v1014_v58, 0.0  ;;  %v1009_v62 = vadd.f32 %v3037_v0, %v1008_v5  ;;  %2260 = vmatpush3.msra.mxu0 %v2005_v21  ;;  %2317 = vmatpush3.msra.mxu1 %v2008_v57 }
 0x29a   : > { %2261 = vmatprep.subr.mxu0 %v2004_v24  ;;  %2302 = vmatprep.subr.mxu1 %v2007_v37 }
 0x29b   : > { %v3103_v55 = vadd.f32 %v1056_v60, %v2991_v2  ;;  %v1055_v43 = vmax.f32 %v1009_v62, 0.0  ;;  %v1004_v2 = vadd.f32 %v2224_v23, %v3037_v0  ;;  %2262 = vmatpush3.msra.mxu0 %v2004_v24  ;;  %2318 = vmatpush3.msra.mxu1 %v2007_v37 }
 0x29c   : > { %1089 = vadd.xlane.f32.xlu0 %v3100_v3  ;;  %2263 = vmatprep.subr.mxu0 %v2003_v14 }
 0x29d   : > { %1099 = vadd.xlane.f32.xlu1 %v3103_v55  ;;  %v3117_v15 = vadd.f32 %v1055_v43, %v2986_v39  ;;  %v1054_v63 = vmax.f32 %v1004_v2, 0.0  ;;  %v999_v39 = vadd.f32 %v3037_v0, %v998_v20  ;;  %v1138_v41 = vmul.f32 %v3103_v55, %v3103_v55  ;;  %2264 = vmatpush3.msra.mxu0 %v2003_v14 }
 0x29e   : > { %v2230_v19 = vpop.f32.mrf.mxu1  ;;  %2265 = vmatprep.subr.mxu0 %v2002_v31  ;;  %2303 = vmatprep.subr.mxu1 %v2006_v18 }
 0x29f   : > { %v1024_v10 = vadd.f32 %v2230_v19, %v3037_v0  ;;  %v3139_v48 = vadd.f32 %v1054_v63, %v2973_v17  ;;  %v1053_v29 = vmax.f32 %v999_v39, 0.0  ;;  %v1137_v30 = vmul.f32 %v3117_v15, %v3117_v15  ;;  %2266 = vmatpush3.msra.mxu0 %v2002_v31  ;;  %v2001_v17 = vld [vmem:[%s3699_s3 + $0x80] sm:$0xff]  ;;  %2319 = vmatpush3.msra.mxu1 %v2006_v18 }
 0x2a0   : > { %1155 = vadd.xlane.f32.xlu0 %v1134_v6  ;;  %v1018_v26 = vpop.f32.mrf.mxu1  ;;  %2267 = vmatprep.subr.mxu0 %v2001_v17 }
 0x2a1   : > { %1097 = vadd.xlane.f32.xlu1 %v3117_v15  ;;  %v1058_v32 = vmax.f32 %v1024_v10, 0.0  ;;  %v1019_v34 = vadd.f32 %v3037_v0, %v1018_v26  ;;  %v3152_v33 = vadd.f32 %v1053_v29, %v2968_v11  ;;  %2268 = vmatpush3.msra.mxu0 %v2001_v17  ;;  %v1136_v11 = vmul.f32 %v3139_v48, %v3139_v48 }
 0x2a2   : > { %2304 = vmatprep.subr.mxu1 %v2005_v21 }
 0x2a3   : > { %v3155_v50 = vadd.f32 %v1058_v32, %v3006_v61  ;;  %v1057_v38 = vmax.f32 %v1019_v34, 0.0  ;;  %2320 = vmatpush3.msra.mxu1 %v2005_v21  ;;  %v1135_v49 = vmul.f32 %v3152_v33, %v3152_v33 }
 0x2a4   : > { %1153 = vadd.xlane.f32.xlu0 %v1133_v22  ;;  %2305 = vmatprep.subr.mxu1 %v2004_v24 }
 0x2a5   : > { %1163 = vadd.xlane.f32.xlu1 %v1138_v41  ;;  %v3162_v46 = vadd.f32 %v1057_v38, %v2999_v4  ;;  %2321 = vmatpush3.msra.mxu1 %v2004_v24  ;;  %v1140_v4 = vmul.f32 %v3155_v50, %v3155_v50 }
 0x2a6   : > { %v2233_v40 = vpop.f32.mrf.mxu1  ;;  %2306 = vmatprep.subr.mxu1 %v2003_v14 }
 0x2a7   : > { %v1034_v23 = vadd.f32 %v2233_v40, %v3037_v0  ;;  %2322 = vmatpush3.msra.mxu1 %v2003_v14  ;;  %v1139_v54 = vmul.f32 %v3162_v46, %v3162_v46 }
 0x2a8   : > { %1095 = vadd.xlane.f32.xlu0 %v3139_v48  ;;  %v1028_v9 = vpop.f32.mrf.mxu1  ;;  %2307 = vmatprep.subr.mxu1 %v2002_v31 }
 0x2a9   : > { %1161 = vadd.xlane.f32.xlu1 %v1137_v30  ;;  %2323 = vmatpush3.msra.mxu1 %v2002_v31  ;;  %v1060_v53 = vmax.f32 %v1034_v23, 0.0  ;;  %v1029_v28 = vadd.f32 %v3037_v0, %v1028_v9  ;;  %v3208_v23 = vld [vmem:[%s3701_s5 + $0x1] ss:$0 sm:$0xff] }
 0x2aa   : > { %2308 = vmatprep.subr.mxu1 %v2001_v17 }
 0x2ab   : > { %2324 = vmatpush3.msra.mxu1 %v2001_v17  ;;  %v3181_v42 = vadd.f32 %v1060_v53, %v3020_v12 }
 0x2ac   : > { %1093 = vadd.xlane.f32.xlu0 %v3152_v33 }
 0x2ad   : > { %1103 = vadd.xlane.f32.xlu1 %v3155_v50  ;;  %v1142_v58 = vmul.f32 %v3181_v42, %v3181_v42 }
 0x2ae   : > { %v2236_v45 = vpop.f32.mrf.mxu1 }
 0x2af   : > { %v1044_v47 = vadd.f32 %v2236_v45, %v3037_v0 }
 0x2b0   : > { %1159 = vadd.xlane.f32.xlu0 %v1136_v11  ;;  %v1038_v61 = vpop.f32.mrf.mxu1 }
 0x2b1   : > { %v1039_v1 = vadd.f32 %v3037_v0, %v1038_v61  ;;  %1101 = vadd.xlane.f32.xlu1 %v3162_v46  ;;  %v1062_v25 = vmax.f32 %v1044_v47, 0.0 }
 0x2b3   : > { %v1061_v51 = vmax.f32 %v1039_v1, 0.0  ;;  %v3194_v5 = vadd.f32 %v1062_v25, %v3031_v59 }
 0x2b4   : > { %1157 = vadd.xlane.f32.xlu0 %v1135_v49 }
 0x2b5   : > { %v3172_v52 = vadd.f32 %v1061_v51, %v3026_v13  ;;  %1167 = vadd.xlane.f32.xlu1 %v1140_v4  ;;  %v1059_v13 = vmax.f32 %v1029_v28, 0.0 }
 0x2b7   : > { %v1143_v20 = vmul.f32 %v3172_v52, %v3172_v52  ;;  %v3185_v56 = vadd.f32 %v1059_v13, %v3013_v7  ;;  %v1144_v7 = vmul.f32 %v3194_v5, %v3194_v5 }
 0x2b8   : > { %1109 = vadd.xlane.f32.xlu0 %v3172_v52 }
 0x2b9   : > { %1165 = vadd.xlane.f32.xlu1 %v1139_v54  ;;  %v1141_v12 = vmul.f32 %v3185_v56, %v3185_v56 }
 0x2bc   : > { %1173 = vadd.xlane.f32.xlu0 %v1143_v20 }
 0x2bd   : > { %1107 = vadd.xlane.f32.xlu1 %v3181_v42 }
 0x2c1   : > { %1105 = vadd.xlane.f32.xlu1 %v3185_v56 }
 0x2c5   : > { %1171 = vadd.xlane.f32.xlu1 %v1142_v58 }
 0x2c9   : > { %1169 = vadd.xlane.f32.xlu1 %v1141_v12 }
 0x2cd   : > { %1111 = vadd.xlane.f32.xlu1 %v3194_v5 }
 0x2d1   : > { %1175 = vadd.xlane.f32.xlu1 %v1144_v7 }
 0x307   : > { %v1084_v44 = vpop.xlane.xlu1 %1083 }
 0x308   : > { %v1114_v0 = vmul.f32 0.0078125, %v1084_v44 }
 0x309   : > { %v1082_v60 = vpop.xlane.xlu0 %1081 }
 0x30a   : > { %v1113_v62 = vmul.f32 0.0078125, %v1082_v60  ;;  %v1194_v57 = vmul.f32 %v1114_v0, %v1114_v0  ;;  %v1242_v38 = vsub.f32 %v3042_v16, %v1114_v0 }
 0x30b   : > { %v1148_v43 = vpop.xlane.xlu1 %1147 }
 0x30c   : > { %v1178_v37 = vmul.f32 0.0078125, %v1148_v43  ;;  %v1193_v6 = vmul.f32 %v1113_v62, %v1113_v62  ;;  %v1241_v1 = vsub.f32 %v3045_v27, %v1113_v62  ;;  %v3216_v27 = vld [vmem:[%s3702_s6 + $0x1] ss:$0 sm:$0xff] }
 0x30d   : > { %v1146_v2 = vpop.xlane.xlu0 %1145 }
 0x30e   : > { %v1210_v18 = vsub.f32 %v1178_v37, %v1194_v57  ;;  %v1177_v19 = vmul.f32 0.0078125, %v1146_v2 }
 0x310   : > { %v1226_v21 = vmax.f32 %v1210_v18, 0.0  ;;  %v1209_v59 = vsub.f32 %v1177_v19, %v1193_v6 }
 0x311   : > { %v1088_v63 = vpop.xlane.xlu0 %1087 }
 0x312   : > { %v1258_v39 = vadd.f32 1e-05, %v1226_v21  ;;  %v1225_v22 = vmax.f32 %v1209_v59, 0.0  ;;  %v1116_v24 = vmul.f32 0.0078125, %v1088_v63 }
 0x314   : > { %2399 = vrsqrt.f32 %v1258_v39  ;;  %v1257_v10 = vadd.f32 1e-05, %v1225_v22  ;;  %v1196_v14 = vmul.f32 %v1116_v24, %v1116_v24  ;;  %v1244_v21 = vsub.f32 %v3056_v35, %v1116_v24 }
 0x315   : > { %v1086_v41 = vpop.xlane.xlu0 %1085 }
 0x316   : > { %2401 = vrsqrt.f32 %v1257_v10  ;;  %v3199_v29 = vmul.f32 0.0078125, %v1086_v41 }
 0x318   : > { %v1195_v31 = vmul.f32 %v3199_v29, %v3199_v29 }
 0x319   : > { %v1152_v26 = vpop.xlane.xlu0 %1151 }
 0x31a   : > { %v1180_v32 = vmul.f32 0.0078125, %v1152_v26 }
 0x31c   : > { %v1212_v34 = vsub.f32 %v1180_v32, %v1196_v14  ;;  %v1243_v32 = vsub.f32 %v3060_v36, %v3199_v29 }
 0x31d   : > { %v1150_v30 = vpop.xlane.xlu0 %1149 }
 0x31e   : > { %v1228_v40 = vmax.f32 %v1212_v34, 0.0  ;;  %v1179_v17 = vmul.f32 0.0078125, %v1150_v30 }
 0x320   : > { %v1260_v9 = vadd.f32 1e-05, %v1228_v40  ;;  %v1211_v45 = vsub.f32 %v1179_v17, %v1195_v31 }
 0x321   : > { %v2400_v11 = vpop.eup %2399  ;;  %v1092_v61 = vpop.xlane.xlu0 %1091 }
 0x322   : > { %2403 = vrsqrt.f32 %v1260_v9  ;;  %v1227_v49 = vmax.f32 %v1211_v45, 0.0  ;;  %v1290_v51 = vmul.f32 %v2400_v11, %v1242_v38  ;;  %v3211_v20 = vmul.f32 0.0078125, %v1092_v61 }
 0x323   : > { %v2402_v4 = vpop.eup %2401 }
 0x324   : > { %v1259_v53 = vadd.f32 1e-05, %v1227_v49  ;;  %v1289_v28 = vmul.f32 %v2402_v4, %v1241_v1  ;;  %v1310_v16 = vmul.f32 %v3208_v23, %v1290_v51  ;;  %v1198_v7 = vmul.f32 %v3211_v20, %v3211_v20 }
 0x325   : > { %v1090_v54 = vpop.xlane.xlu0 %1089 }
 0x326   : > { %2405 = vrsqrt.f32 %v1259_v53  ;;  %v1100_v13 = vpop.xlane.xlu1 %1099  ;;  %v1309_v47 = vmul.f32 %v3208_v23, %v1289_v28  ;;  %v3223_v12 = vadd.f32 %v3216_v27, %v1310_v16  ;;  %v3227_v44 = vmul.f32 0.0078125, %v1090_v54 }
 0x327   : > { %v3230_v62 = vmul.f32 0.0078125, %v1100_v13 }
 0x328   : > { %v3220_v58 = vadd.f32 %v3216_v27, %v1309_v47  ;;  %v1197_v37 = vmul.f32 %v3227_v44, %v3227_v44 }
 0x329   : > { %v1156_v25 = vpop.xlane.xlu0 %1155  ;;  %v1202_v59 = vmul.f32 %v3230_v62, %v3230_v62 }
 0x32a   : > { %v1182_v0 = vmul.f32 0.0078125, %v1156_v25  ;;  %v1098_v60 = vpop.xlane.xlu1 %1097  ;;  %2269 = vmatprep.mubr.f32.mxu0 %v3220_v58 }
 0x32b   : > { %2270 = vmatmul.mubr.f32.vlgmr.msra.gmra.mxu0 %v3223_v12  ;;  %v3238_v63 = vmul.f32 0.0078125, %v1098_v60 }
 0x32c   : > { %v1214_v43 = vsub.f32 %v1182_v0, %v1198_v7 }
 0x32d   : > { %v1154_v57 = vpop.xlane.xlu0 %1153  ;;  %v1201_v35 = vmul.f32 %v3238_v63, %v3238_v63 }
 0x32e   : > { %v1230_v2 = vmax.f32 %v1214_v43, 0.0  ;;  %v1181_v6 = vmul.f32 0.0078125, %v1154_v57  ;;  %v1164_v18 = vpop.xlane.xlu1 %1163 }
 0x32f   : > { %v2404_v19 = vpop.eup %2403  ;;  %v1186_v39 = vmul.f32 0.0078125, %v1164_v18 }
 0x330   : > { %v1262_v22 = vadd.f32 1e-05, %v1230_v2  ;;  %v1213_v10 = vsub.f32 %v1181_v6, %v1197_v37  ;;  %v1292_v14 = vmul.f32 %v2404_v19, %v1244_v21  ;;  %v1246_v6 = vsub.f32 %v3088_v8, %v3211_v20 }
 0x331   : > { %v1218_v41 = vsub.f32 %v1186_v39, %v1202_v59  ;;  %v1096_v26 = vpop.xlane.xlu0 %1095 }
 0x332   : > { %2407 = vrsqrt.f32 %v1262_v22  ;;  %v1229_v34 = vmax.f32 %v1213_v10, 0.0  ;;  %v1162_v30 = vpop.xlane.xlu1 %1161  ;;  %v1312_v61 = vmul.f32 %v3208_v23, %v1292_v14  ;;  %v3245_v1 = vmul.f32 0.0078125, %v1096_v26 }
 0x333   : > { %v2406_v31 = vpop.eup %2405  ;;  %v1234_v24 = vmax.f32 %v1218_v41, 0.0  ;;  %v1185_v40 = vmul.f32 0.0078125, %v1162_v30  ;;  %v1245_v26 = vsub.f32 %v3100_v3, %v3227_v44 }
 0x334   : > { %v1261_v17 = vadd.f32 1e-05, %v1229_v34  ;;  %v1291_v38 = vmul.f32 %v2406_v31, %v1243_v32  ;;  %v3252_v28 = vadd.f32 %v3216_v27, %v1312_v61  ;;  %v1200_v54 = vmul.f32 %v3245_v1, %v3245_v1 }
 0x335   : > { %v1266_v9 = vadd.f32 1e-05, %v1234_v24  ;;  %v1217_v45 = vsub.f32 %v1185_v40, %v1201_v35  ;;  %v1094_v11 = vpop.xlane.xlu0 %1093  ;;  %v1250_v35 = vsub.f32 %v3103_v55, %v3230_v62 }
 0x336   : > { %2409 = vrsqrt.f32 %v1261_v17  ;;  %v1104_v36 = vpop.xlane.xlu1 %1103  ;;  %v1311_v29 = vmul.f32 %v3208_v23, %v1291_v38  ;;  %v3256_v16 = vmul.f32 0.0078125, %v1094_v11 }
 0x337   : > { %2411 = vrsqrt.f32 %v1266_v9  ;;  %v1233_v49 = vmax.f32 %v1217_v45, 0.0  ;;  %v3259_v25 = vmul.f32 0.0078125, %v1104_v36 }
 0x338   : > { %v3249_v51 = vadd.f32 %v3216_v27, %v1311_v29  ;;  %v1199_v60 = vmul.f32 %v3256_v16, %v3256_v16  ;;  %v1249_v29 = vsub.f32 %v3117_v15, %v3238_v63 }
 0x339   : > { %v1265_v4 = vadd.f32 1e-05, %v1233_v49  ;;  %v1160_v53 = vpop.xlane.xlu0 %1159  ;;  %v1204_v18 = vmul.f32 %v3259_v25, %v3259_v25 }
 0x33a   : > { %v1184_v13 = vmul.f32 0.0078125, %v1160_v53  ;;  %v1102_v47 = vpop.xlane.xlu1 %1101  ;;  %2272 = vmatprep.mubr.f32.mxu0 %v3249_v51 }
 0x33b   : > { %2413 = vrsqrt.f32 %v1265_v4  ;;  %2273 = vmatmul.mubr.f32.gmra.mxu0 %v3252_v28  ;;  %v3268_v19 = vmul.f32 0.0078125, %v1102_v47 }
 0x33c   : > { %v1216_v7 = vsub.f32 %v1184_v13, %v1200_v54 }
 0x33d   : > { %v1158_v0 = vpop.xlane.xlu0 %1157  ;;  %v1203_v8 = vmul.f32 %v3268_v19, %v3268_v19 }
 0x33e   : > { %v1232_v43 = vmax.f32 %v1216_v7, 0.0  ;;  %v1183_v57 = vmul.f32 0.0078125, %v1158_v0  ;;  %v1168_v37 = vpop.xlane.xlu1 %1167 }
 0x33f   : > { %v2408_v2 = vpop.eup %2407  ;;  %v1188_v21 = vmul.f32 0.0078125, %v1168_v37 }
 0x340   : > { %v1264_v59 = vadd.f32 1e-05, %v1232_v43  ;;  %v1215_v39 = vsub.f32 %v1183_v57, %v1199_v60  ;;  %v1294_v41 = vmul.f32 %v2408_v2, %v1246_v6  ;;  %v1248_v6 = vsub.f32 %v3139_v48, %v3245_v1 }
 0x341   : > { %v1220_v22 = vsub.f32 %v1188_v21, %v1204_v18  ;;  %v1110_v10 = vpop.xlane.xlu0 %1109 }
 0x342   : > { %2415 = vrsqrt.f32 %v1264_v59  ;;  %v1231_v14 = vmax.f32 %v1215_v39, 0.0  ;;  %v1166_v32 = vpop.xlane.xlu1 %1165  ;;  %v3276_v40 = vmul.f32 0.0078125, %v1110_v10  ;;  %v1314_v44 = vmul.f32 %v3208_v23, %v1294_v41 }
 0x343   : > { %v2410_v34 = vpop.eup %2409  ;;  %v1236_v20 = vmax.f32 %v1220_v22, 0.0  ;;  %v1187_v30 = vmul.f32 0.0078125, %v1166_v32  ;;  %v1247_v10 = vsub.f32 %v3152_v33, %v3256_v16  ;;  %v1251_v16 = vsub.f32 %v3162_v46, %v3268_v19 }
 0x344   : > { %v2412_v31 = vpop.eup %2411  ;;  %v1263_v24 = vadd.f32 1e-05, %v1231_v14  ;;  %v1293_v17 = vmul.f32 %v2410_v34, %v1245_v26  ;;  %v1207_v49 = vmul.f32 %v3276_v40, %v3276_v40  ;;  %v3288_v54 = vadd.f32 %v3216_v27, %v1314_v44 }
 0x345   : > { %v1268_v38 = vadd.f32 1e-05, %v1236_v20  ;;  %v1219_v9 = vsub.f32 %v1187_v30, %v1203_v8  ;;  %v1174_v3 = vpop.xlane.xlu0 %1173  ;;  %v1298_v36 = vmul.f32 %v2412_v31, %v1250_v35  ;;  %v1252_v8 = vsub.f32 %v3155_v50, %v3259_v25 }
 0x346   : > { %2417 = vrsqrt.f32 %v1263_v24  ;;  %v1191_v45 = vmul.f32 0.0078125, %v1174_v3  ;;  %v1108_v11 = vpop.xlane.xlu1 %1107  ;;  %v1313_v61 = vmul.f32 %v3208_v23, %v1293_v17 }
 0x347   : > { %2419 = vrsqrt.f32 %v1268_v38  ;;  %v1235_v55 = vmax.f32 %v1219_v9, 0.0  ;;  %v1318_v15 = vmul.f32 %v3208_v23, %v1298_v36  ;;  %v3292_v63 = vmul.f32 0.0078125, %v1108_v11 }
 0x348   : > { %v2414_v62 = vpop.eup %2413  ;;  %v3285_v4 = vadd.f32 %v3216_v27, %v1313_v61  ;;  %v1223_v47 = vsub.f32 %v1191_v45, %v1207_v49 }
 0x349   : > { %v1267_v53 = vadd.f32 1e-05, %v1235_v55  ;;  %v1297_v13 = vmul.f32 %v2414_v62, %v1249_v29  ;;  %v3300_v37 = vadd.f32 %v3216_v27, %v1318_v15  ;;  %v1206_v18 = vmul.f32 %v3292_v63, %v3292_v63 }
 0x34a   : > { %v1106_v7 = vpop.xlane.xlu1 %1105  ;;  %2275 = vmatprep.mubr.f32.mxu0 %v3285_v4  ;;  %v1239_v43 = vmax.f32 %v1223_v47, 0.0  ;;  %v1255_v15 = vsub.f32 %v3172_v52, %v3276_v40 }
 0x34b   : > { %2421 = vrsqrt.f32 %v1267_v53  ;;  %2276 = vmatmul.mubr.f32.gmra.mxu0 %v3288_v54  ;;  %v1317_v0 = vmul.f32 %v3208_v23, %v1297_v13  ;;  %v1125_v21 = vmul.f32 0.0078125, %v1106_v7  ;;  %v1254_v7 = vsub.f32 %v3181_v42, %v3292_v63 }
 0x34c   : > { %v1271_v41 = vadd.f32 1e-05, %v1239_v43 }
 0x34d   : > { %v3297_v60 = vadd.f32 %v3216_v27, %v1317_v0  ;;  %v1205_v32 = vmul.f32 %v1125_v21, %v1125_v21  ;;  %v1253_v43 = vsub.f32 %v3185_v56, %v1125_v21 }
 0x34e   : > { %v1172_v57 = vpop.xlane.xlu1 %1171  ;;  %2423 = vrsqrt.f32 %v1271_v41 }
 0x34f   : > { %v2416_v2 = vpop.eup %2415  ;;  %v1190_v59 = vmul.f32 0.0078125, %v1172_v57  ;;  %2281 = vmatprep.mubr.f32.mxu1 %v3297_v60 }
 0x350   : > { %2282 = vmatmul.mubr.f32.vlgmr.msra.gmra.mxu1 %v3300_v37  ;;  %v1296_v22 = vmul.f32 %v2416_v2, %v1248_v6 }
 0x351   : > { %v1222_v39 = vsub.f32 %v1190_v59, %v1206_v18 }
 0x352   : > { %v1170_v26 = vpop.xlane.xlu1 %1169  ;;  %v1316_v35 = vmul.f32 %v3208_v23, %v1296_v22 }
 0x353   : > { %v2418_v14 = vpop.eup %2417  ;;  %v1238_v34 = vmax.f32 %v1222_v39, 0.0  ;;  %v1189_v48 = vmul.f32 0.0078125, %v1170_v26 }
 0x354   : > { %v2420_v1 = vpop.eup %2419  ;;  %v1295_v20 = vmul.f32 %v2418_v14, %v1247_v10  ;;  %v3320_v25 = vadd.f32 %v3216_v27, %v1316_v35 }
 0x355   : > { %v1270_v30 = vadd.f32 1e-05, %v1238_v34  ;;  %v1221_v31 = vsub.f32 %v1189_v48, %v1205_v32  ;;  %v1300_v33 = vmul.f32 %v2420_v1, %v1252_v8 }
 0x356   : > { %v1112_v24 = vpop.xlane.xlu1 %1111  ;;  %v1315_v17 = vmul.f32 %v3208_v23, %v1295_v20 }
 0x357   : > { %2425 = vrsqrt.f32 %v1270_v30  ;;  %v1237_v38 = vmax.f32 %v1221_v31, 0.0  ;;  %v1128_v9 = vmul.f32 0.0078125, %v1112_v24  ;;  %v1320_v61 = vmul.f32 %v3208_v23, %v1300_v33 }
 0x358   : > { %v2422_v3 = vpop.eup %2421  ;;  %v3317_v44 = vadd.f32 %v3216_v27, %v1315_v17 }
 0x359   : > { %v1269_v50 = vadd.f32 1e-05, %v1237_v38  ;;  %v1299_v45 = vmul.f32 %v2422_v3, %v1251_v16  ;;  %v1208_v36 = vmul.f32 %v1128_v9, %v1128_v9  ;;  %v3330_v62 = vadd.f32 %v3216_v27, %v1320_v61 }
 0x35a   : > { %v1176_v11 = vpop.xlane.xlu1 %1175  ;;  %2278 = vmatprep.mubr.f32.mxu0 %v3317_v44  ;;  %v1256_v52 = vsub.f32 %v3194_v5, %v1128_v9  ;;  %v3363_v5 = vld [vmem:[%s3700_s4 + $0x1] ss:$0 sm:$0xff] }
 0x35b   : > { %2427 = vrsqrt.f32 %v1269_v50  ;;  %v1192_v46 = vmul.f32 0.0078125, %v1176_v11  ;;  %2279 = vmatmul.mubr.f32.gmra.mxu0 %v3320_v25  ;;  %v1319_v19 = vmul.f32 %v3208_v23, %v1299_v45  ;;  %v2424_v13 = vpop.eup %2423 }
 0x35c   : > { %v1303_v57 = vmul.f32 %v2424_v13, %v1255_v15 }
 0x35d   : > { %v1224_v29 = vsub.f32 %v1192_v46, %v1208_v36  ;;  %v3327_v55 = vadd.f32 %v3216_v27, %v1319_v19 }
 0x35e   : > { %v1323_v39 = vmul.f32 %v3208_v23, %v1303_v57 }
 0x35f   : > { %v1240_v49 = vmax.f32 %v1224_v29, 0.0  ;;  %2284 = vmatprep.mubr.f32.mxu1 %v3327_v55 }
 0x360   : > { %2285 = vmatmul.mubr.f32.gmra.mxu1 %v3330_v62  ;;  %v3351_v56 = vadd.f32 %v3216_v27, %v1323_v39 }
 0x361   : > { %v1272_v53 = vadd.f32 1e-05, %v1240_v49 }
 0x363   : > { %2429 = vrsqrt.f32 %v1272_v53 }
 0x364   : > { %v2426_v47 = vpop.eup %2425 }
 0x365   : > { %v1302_v0 = vmul.f32 %v2426_v47, %v1254_v7 }
 0x367   : > { %v1322_v18 = vmul.f32 %v3208_v23, %v1302_v0 }
 0x368   : > { %v2428_v2 = vpop.eup %2427 }
 0x369   : > { %v1301_v6 = vmul.f32 %v2428_v2, %v1253_v43  ;;  %v3346_v42 = vadd.f32 %v3216_v27, %v1322_v18 }
 0x36b   : > { %v1321_v59 = vmul.f32 %v3208_v23, %v1301_v6 }
 0x36d   : > { %v3343_v22 = vadd.f32 %v3216_v27, %v1321_v59 }
 0x36f   : > { %2287 = vmatprep.mubr.f32.mxu1 %v3343_v22 }
 0x370   : > { %v2430_v40 = vpop.eup %2429  ;;  %2288 = vmatmul.mubr.f32.gmra.mxu1 %v3346_v42 }
 0x371   : > { %2290 = vmatprep.mubr.f32.mxu1 %v3351_v56  ;;  %v1304_v63 = vmul.f32 %v2430_v40, %v1256_v52 }
 0x373   : > { %v1324_v21 = vmul.f32 %v3208_v23, %v1304_v63 }
 0x375   : > { %v3357_v10 = vadd.f32 %v3216_v27, %v1324_v21 }
 0x377   : > { %2291 = vmatmul.mubr.f32.gmra.mxu1 %v3357_v10 }
 0x3eb   : > { %v2271_v41 = vpop.f32.mrf.mxu0 }
 0x3ec   : > { %v1439_v26 = vadd.f32 %v2271_v41, %v3363_v5 }
 0x3ed   : > { %v1433_v14 = vpop.f32.mrf.mxu0 }
 0x3ee   : > { %v1513_v32 = vmax.f32 %v1439_v26, 0.0  ;;  %v1434_v34 = vadd.f32 %v3363_v5, %v1433_v14 }
 0x3f0   : > { %v3368_v48 = vadd.f32 %v1513_v32, %v3223_v12  ;;  %v1512_v23 = vmax.f32 %v1434_v34, 0.0 }
 0x3f2   : > { %v3371_v27 = vadd.f32 %v1512_v23, %v3220_v58  ;;  %1548 = vadd.xlane.f32.xlu1 %v3368_v48  ;;  %v1595_v1 = vmul.f32 %v3368_v48, %v3368_v48 }
 0x3f4   : > { %1546 = vadd.xlane.f32.xlu0 %v3371_v27  ;;  %v1594_v8 = vmul.f32 %v3371_v27, %v3371_v27 }
 0x3f6   : > { %1612 = vadd.xlane.f32.xlu1 %v1595_v1 }
 0x3f8   : > { %1610 = vadd.xlane.f32.xlu0 %v1594_v8 }
 0x3fb   : > { %v2274_v20 = vpop.f32.mrf.mxu0 }
 0x3fc   : > { %v1449_v12 = vadd.f32 %v2274_v20, %v3363_v5 }
 0x3fd   : > { %v1443_v30 = vpop.f32.mrf.mxu0 }
 0x3fe   : > { %v1515_v31 = vmax.f32 %v1449_v12, 0.0  ;;  %v1444_v58 = vadd.f32 %v3363_v5, %v1443_v30 }
 0x400   : > { %v3382_v35 = vadd.f32 %v1515_v31, %v3252_v28  ;;  %v1514_v24 = vmax.f32 %v1444_v58, 0.0 }
 0x402   : > { %v3385_v17 = vadd.f32 %v1514_v24, %v3249_v51  ;;  %1552 = vadd.xlane.f32.xlu1 %v3382_v35  ;;  %v1597_v33 = vmul.f32 %v3382_v35, %v3382_v35 }
 0x404   : > { %1550 = vadd.xlane.f32.xlu0 %v3385_v17  ;;  %v1596_v16 = vmul.f32 %v3385_v17, %v3385_v17 }
 0x406   : > { %1616 = vadd.xlane.f32.xlu1 %v1597_v33 }
 0x408   : > { %1614 = vadd.xlane.f32.xlu0 %v1596_v16 }
 0x40b   : > { %v2277_v38 = vpop.f32.mrf.mxu0 }
 0x40c   : > { %v1459_v28 = vadd.f32 %v2277_v38, %v3363_v5 }
 0x40d   : > { %v1453_v9 = vpop.f32.mrf.mxu0 }
 0x40e   : > { %v1517_v3 = vmax.f32 %v1459_v28, 0.0  ;;  %v1454_v51 = vadd.f32 %v3363_v5, %v1453_v9 }
 0x410   : > { %v3396_v50 = vadd.f32 %v1517_v3, %v3288_v54  ;;  %v1516_v45 = vmax.f32 %v1454_v51, 0.0  ;;  %v2283_v46 = vpop.f32.mrf.mxu1 }
 0x411   : > { %v1479_v13 = vadd.f32 %v2283_v46, %v3363_v5 }
 0x412   : > { %v3399_v11 = vadd.f32 %v1516_v45, %v3285_v4  ;;  %1556 = vadd.xlane.f32.xlu1 %v3396_v50  ;;  %v1599_v61 = vmul.f32 %v3396_v50, %v3396_v50  ;;  %v1473_v53 = vpop.f32.mrf.mxu1 }
 0x413   : > { %v1474_v15 = vadd.f32 %v3363_v5, %v1473_v53  ;;  %v1521_v57 = vmax.f32 %v1479_v13, 0.0 }
 0x414   : > { %1554 = vadd.xlane.f32.xlu0 %v3399_v11  ;;  %v1598_v36 = vmul.f32 %v3399_v11, %v3399_v11 }
 0x415   : > { %v1520_v6 = vmax.f32 %v1474_v15, 0.0  ;;  %v3424_v59 = vadd.f32 %v1521_v57, %v3300_v37 }
 0x416   : > { %1620 = vadd.xlane.f32.xlu1 %v1599_v61 }
 0x417   : > { %v3428_v39 = vadd.f32 %v1520_v6, %v3297_v60  ;;  %v1603_v63 = vmul.f32 %v3424_v59, %v3424_v59 }
 0x418   : > { %1618 = vadd.xlane.f32.xlu0 %v1598_v36 }
 0x419   : > { %v1602_v37 = vmul.f32 %v3428_v39, %v3428_v39 }
 0x41b   : > { %v2280_v19 = vpop.f32.mrf.mxu0 }
 0x41c   : > { %v1469_v54 = vadd.f32 %v2280_v19, %v3363_v5 }
 0x41d   : > { %v1463_v29 = vpop.f32.mrf.mxu0 }
 0x41e   : > { %v1519_v49 = vmax.f32 %v1469_v54, 0.0  ;;  %v1464_v4 = vadd.f32 %v3363_v5, %v1463_v29 }
 0x420   : > { %v3411_v47 = vadd.f32 %v1519_v49, %v3320_v25  ;;  %v1518_v7 = vmax.f32 %v1464_v4, 0.0  ;;  %v2286_v43 = vpop.f32.mrf.mxu1 }
 0x422   : > { %v3415_v0 = vadd.f32 %v1518_v7, %v3317_v44  ;;  %1560 = vadd.xlane.f32.xlu1 %v3411_v47  ;;  %v1601_v2 = vmul.f32 %v3411_v47, %v3411_v47  ;;  %v1483_v18 = vpop.f32.mrf.mxu1  ;;  %v1489_v44 = vadd.f32 %v2286_v43, %v3363_v5 }
 0x423   : > { %v1484_v52 = vadd.f32 %v3363_v5, %v1483_v18 }
 0x424   : > { %1558 = vadd.xlane.f32.xlu0 %v3415_v0  ;;  %v1600_v25 = vmul.f32 %v3415_v0, %v3415_v0  ;;  %v1523_v40 = vmax.f32 %v1489_v44, 0.0 }
 0x425   : > { %v1522_v21 = vmax.f32 %v1484_v52, 0.0 }
 0x426   : > { %1624 = vadd.xlane.f32.xlu1 %v1601_v2  ;;  %v3438_v41 = vadd.f32 %v1523_v40, %v3330_v62 }
 0x427   : > { %v3442_v14 = vadd.f32 %v1522_v21, %v3327_v55 }
 0x428   : > { %1622 = vadd.xlane.f32.xlu0 %v1600_v25  ;;  %v1605_v1 = vmul.f32 %v3438_v41, %v3438_v41 }
 0x429   : > { %v1604_v8 = vmul.f32 %v3442_v14, %v3442_v14 }
 0x42a   : > { %1564 = vadd.xlane.f32.xlu1 %v3424_v59 }
 0x42c   : > { %1562 = vadd.xlane.f32.xlu0 %v3428_v39 }
 0x42e   : > { %1628 = vadd.xlane.f32.xlu1 %v1603_v63 }
 0x430   : > { %v2289_v60 = vpop.f32.mrf.mxu1  ;;  %1626 = vadd.xlane.f32.xlu0 %v1602_v37 }
 0x431   : > { %v1499_v26 = vadd.f32 %v2289_v60, %v3363_v5 }
 0x432   : > { %v1493_v32 = vpop.f32.mrf.mxu1  ;;  %1568 = vadd.xlane.f32.xlu1 %v3438_v41 }
 0x433   : > { %v1494_v34 = vadd.f32 %v3363_v5, %v1493_v32  ;;  %v1525_v23 = vmax.f32 %v1499_v26, 0.0 }
 0x434   : > { %1566 = vadd.xlane.f32.xlu0 %v3442_v14 }
 0x435   : > { %v1524_v62 = vmax.f32 %v1494_v34, 0.0  ;;  %v3452_v55 = vadd.f32 %v1525_v23, %v3346_v42 }
 0x436   : > { %1632 = vadd.xlane.f32.xlu1 %v1605_v1 }
 0x437   : > { %v2292_v20 = vpop.f32.mrf.mxu1  ;;  %v3456_v31 = vadd.f32 %v1524_v62, %v3343_v22  ;;  %v1607_v33 = vmul.f32 %v3452_v55, %v3452_v55 }
 0x438   : > { %v1509_v12 = vadd.f32 %v2292_v20, %v3363_v5  ;;  %1630 = vadd.xlane.f32.xlu0 %v1604_v8 }
 0x439   : > { %v1503_v30 = vpop.f32.mrf.mxu1  ;;  %v1606_v42 = vmul.f32 %v3456_v31, %v3456_v31 }
 0x43a   : > { %v1504_v58 = vadd.f32 %v3363_v5, %v1503_v30  ;;  %1572 = vadd.xlane.f32.xlu1 %v3452_v55  ;;  %v1527_v24 = vmax.f32 %v1509_v12, 0.0 }
 0x43c   : > { %1570 = vadd.xlane.f32.xlu0 %v3456_v31  ;;  %v1526_v16 = vmax.f32 %v1504_v58, 0.0  ;;  %v3466_v38 = vadd.f32 %v1527_v24, %v3357_v10 }
 0x43e   : > { %1636 = vadd.xlane.f32.xlu1 %v1607_v33  ;;  %v3469_v22 = vadd.f32 %v1526_v16, %v3351_v56  ;;  %v1609_v5 = vmul.f32 %v3466_v38, %v3466_v38 }
 0x440   : > { %1634 = vadd.xlane.f32.xlu0 %v1606_v42  ;;  %v1608_v28 = vmul.f32 %v3469_v22, %v3469_v22 }
 0x442   : > { %1576 = vadd.xlane.f32.xlu1 %v3466_v38 }
 0x444   : > { %1574 = vadd.xlane.f32.xlu0 %v3469_v22 }
 0x446   : > { %1640 = vadd.xlane.f32.xlu1 %v1609_v5 }
 0x448   : > { %1638 = vadd.xlane.f32.xlu0 %v1608_v28 }
 0x47b   : > { %v1549_v9 = vpop.xlane.xlu1 %1548 }
 0x47c   : > { %v3477_v53 = vmul.f32 0.0078125, %v1549_v9 }
 0x47d   : > { %v1547_v3 = vpop.xlane.xlu0 %1546 }
 0x47e   : > { %v1659_v57 = vmul.f32 %v3477_v53, %v3477_v53  ;;  %v3483_v2 = vmul.f32 0.0078125, %v1547_v3 }
 0x47f   : > { %v1613_v10 = vpop.xlane.xlu1 %1612 }
 0x480   : > { %v1643_v7 = vmul.f32 0.0078125, %v1613_v10  ;;  %v1658_v60 = vmul.f32 %v3483_v2, %v3483_v2 }
 0x481   : > { %v1611_v51 = vpop.xlane.xlu0 %1610 }
 0x482   : > { %v1675_v44 = vsub.f32 %v1643_v7, %v1659_v57  ;;  %v1642_v40 = vmul.f32 0.0078125, %v1611_v51 }
 0x484   : > { %v1691_v62 = vmax.f32 %v1675_v44, 0.0  ;;  %v1674_v12 = vsub.f32 %v1642_v40, %v1658_v60 }
 0x48b   : > { %v1553_v45 = vpop.xlane.xlu1 %1552 }
 0x48c   : > { %v3493_v26 = vmul.f32 0.0078125, %v1553_v45 }
 0x48d   : > { %v1551_v61 = vpop.xlane.xlu0 %1550 }
 0x48e   : > { %v3503_v16 = vmul.f32 0.0078125, %v1551_v61  ;;  %v1661_v9 = vmul.f32 %v3493_v26, %v3493_v26 }
 0x48f   : > { %v1617_v56 = vpop.xlane.xlu1 %1616 }
 0x490   : > { %v1645_v30 = vmul.f32 0.0078125, %v1617_v56  ;;  %v1723_v56 = vadd.f32 1e-05, %v1691_v62 }
 0x491   : > { %v1615_v36 = vpop.xlane.xlu0 %1614 }
 0x492   : > { %v1677_v61 = vsub.f32 %v1645_v30, %v1661_v9  ;;  %2431 = vrsqrt.f32 %v1723_v56 }
 0x49b   : > { %v1557_v46 = vpop.xlane.xlu1 %1556 }
 0x49c   : > { %v3479_v15 = vmul.f32 0.0078125, %v1557_v46  ;;  %v1644_v46 = vmul.f32 0.0078125, %v1615_v36 }
 0x49d   : > { %v1555_v19 = vpop.xlane.xlu0 %1554 }
 0x49e   : > { %v3485_v6 = vmul.f32 0.0078125, %v1555_v19  ;;  %v1663_v63 = vmul.f32 %v3479_v15, %v3479_v15 }
 0x49f   : > { %v1621_v54 = vpop.xlane.xlu1 %1620 }
 0x4a0   : > { %v1647_v25 = vmul.f32 0.0078125, %v1621_v54  ;;  %v1662_v32 = vmul.f32 %v3485_v6, %v3485_v6 }
 0x4a1   : > { %v1619_v29 = vpop.xlane.xlu0 %1618 }
 0x4a2   : > { %v1646_v21 = vmul.f32 0.0078125, %v1619_v29  ;;  %v1679_v34 = vsub.f32 %v1647_v25, %v1663_v63  ;;  %v1690_v25 = vmax.f32 %v1674_v12, 0.0 }
 0x4a4   : > { %v1678_v58 = vsub.f32 %v1646_v21, %v1662_v32  ;;  %v1695_v3 = vmax.f32 %v1679_v34, 0.0  ;;  %v1693_v32 = vmax.f32 %v1677_v61, 0.0 }
 0x4a6   : > { %v1694_v29 = vmax.f32 %v1678_v58, 0.0  ;;  %v1727_v44 = vadd.f32 1e-05, %v1695_v3  ;;  %v1722_v58 = vadd.f32 1e-05, %v1690_v25 }
 0x4a8   : > { %v1726_v34 = vadd.f32 1e-05, %v1694_v29  ;;  %2433 = vrsqrt.f32 %v1727_v44 }
 0x4aa   : > { %2435 = vrsqrt.f32 %v1726_v34 }
 0x4ab   : > { %v1561_v49 = vpop.xlane.xlu1 %1560 }
 0x4ac   : > { %v3501_v24 = vmul.f32 0.0078125, %v1561_v49 }
 0x4ad   : > { %v1559_v4 = vpop.xlane.xlu0 %1558 }
 0x4ae   : > { %v3509_v10 = vmul.f32 0.0078125, %v1559_v4  ;;  %v1665_v49 = vmul.f32 %v3501_v24, %v3501_v24 }
 0x4af   : > { %v1625_v13 = vpop.xlane.xlu1 %1624 }
 0x4b0   : > { %v1649_v51 = vmul.f32 0.0078125, %v1625_v13  ;;  %v1664_v13 = vmul.f32 %v3509_v10, %v3509_v10 }
 0x4b1   : > { %v1623_v43 = vpop.xlane.xlu0 %1622 }
 0x4b2   : > { %v1648_v7 = vmul.f32 0.0078125, %v1623_v43  ;;  %v1681_v36 = vsub.f32 %v1649_v51, %v1665_v49  ;;  %v1725_v51 = vadd.f32 1e-05, %v1693_v32 }
 0x4b3   : > { %v1565_v18 = vpop.xlane.xlu1 %1564 }
 0x4b4   : > { %v3487_v52 = vmul.f32 0.0078125, %v1565_v18  ;;  %v1660_v18 = vmul.f32 %v3503_v16, %v3503_v16 }
 0x4b5   : > { %v1563_v37 = vpop.xlane.xlu0 %1562 }
 0x4b6   : > { %v3497_v23 = vmul.f32 0.0078125, %v1563_v37  ;;  %v1667_v8 = vmul.f32 %v3487_v52, %v3487_v52  ;;  %v1676_v21 = vsub.f32 %v1644_v46, %v1660_v18 }
 0x4b7   : > { %v1629_v1 = vpop.xlane.xlu1 %1628 }
 0x4b8   : > { %v1651_v20 = vmul.f32 0.0078125, %v1629_v1  ;;  %v1666_v42 = vmul.f32 %v3497_v23, %v3497_v23  ;;  %v1680_v1 = vsub.f32 %v1648_v7, %v1664_v13 }
 0x4b9   : > { %v1627_v33 = vpop.xlane.xlu0 %1626 }
 0x4ba   : > { %v1683_v5 = vsub.f32 %v1651_v20, %v1667_v8  ;;  %v1650_v28 = vmul.f32 0.0078125, %v1627_v33  ;;  %v1697_v33 = vmax.f32 %v1681_v36, 0.0 }
 0x4bb   : > { %v1569_v45 = vpop.xlane.xlu1 %1568 }
 0x4bc   : > { %v1682_v19 = vsub.f32 %v1650_v28, %v1666_v42  ;;  %v3511_v54 = vmul.f32 0.0078125, %v1569_v45  ;;  %v1699_v4 = vmax.f32 %v1683_v5, 0.0  ;;  %v1692_v5 = vmax.f32 %v1676_v21, 0.0 }
 0x4bd   : > { %v1567_v57 = vpop.xlane.xlu0 %1566  ;;  %v1696_v45 = vmax.f32 %v1680_v1, 0.0  ;;  %v2432_v1 = vpop.eup %2431 }
 0x4be   : > { %v3519_v40 = vmul.f32 0.0078125, %v1567_v57  ;;  %v1698_v37 = vmax.f32 %v1682_v19, 0.0  ;;  %v1669_v60 = vmul.f32 %v3511_v54, %v3511_v54  ;;  %v1731_v8 = vadd.f32 1e-05, %v1699_v4 }
 0x4bf   : > { %v1633_v63 = vpop.xlane.xlu1 %1632  ;;  %v1729_v19 = vadd.f32 1e-05, %v1697_v33  ;;  %v1724_v7 = vadd.f32 1e-05, %v1692_v5  ;;  %v1728_v18 = vadd.f32 1e-05, %v1696_v45  ;;  %v1707_v5 = vsub.f32 %v3368_v48, %v3477_v53 }
 0x4c0   : > { %v1653_v43 = vmul.f32 0.0078125, %v1633_v63  ;;  %v1668_v20 = vmul.f32 %v3519_v40, %v3519_v40  ;;  %v1730_v28 = vadd.f32 1e-05, %v1698_v37  ;;  %2437 = vrsqrt.f32 %v1731_v8 }
 0x4c1   : > { %v1631_v62 = vpop.xlane.xlu0 %1630  ;;  %2439 = vrsqrt.f32 %v1722_v58  ;;  %v1715_v48 = vsub.f32 %v3424_v59, %v3487_v52 }
 0x4c2   : > { %v1685_v12 = vsub.f32 %v1653_v43, %v1669_v60  ;;  %v1652_v30 = vmul.f32 0.0078125, %v1631_v62  ;;  %2441 = vrsqrt.f32 %v1730_v28  ;;  %v1711_v28 = vsub.f32 %v3396_v50, %v3479_v15 }
 0x4c3   : > { %v1573_v42 = vpop.xlane.xlu1 %1572  ;;  %2443 = vrsqrt.f32 %v1725_v51  ;;  %v1755_v50 = vmul.f32 %v2432_v1, %v1707_v5  ;;  %v1708_v1 = vsub.f32 %v3385_v17, %v3503_v16 }
 0x4c4   : > { %v1684_v9 = vsub.f32 %v1652_v30, %v1668_v20  ;;  %v3525_v3 = vmul.f32 0.0078125, %v1573_v42  ;;  %v1701_v46 = vmax.f32 %v1685_v12, 0.0  ;;  %2445 = vrsqrt.f32 %v1729_v19  ;;  %v2434_v30 = vpop.eup %2433 }
 0x4c5   : > { %v1571_v56 = vpop.xlane.xlu0 %1570  ;;  %2447 = vrsqrt.f32 %v1724_v7  ;;  %v2436_v51 = vpop.eup %2435 }
 0x4c6   : > { %v1700_v61 = vmax.f32 %v1684_v9, 0.0  ;;  %v3527_v29 = vmul.f32 0.0078125, %v1571_v56  ;;  %v1671_v57 = vmul.f32 %v3525_v3, %v3525_v3  ;;  %v1733_v44 = vadd.f32 1e-05, %v1701_v46 }
 0x4c7   : > { %v1637_v49 = vpop.xlane.xlu1 %1636  ;;  %2449 = vrsqrt.f32 %v1728_v18  ;;  %v3554_v18 = vld [vmem:[%s3701_s5 + $0x2] ss:$0 sm:$0xff] }
 0x4c8   : > { %v1655_v25 = vmul.f32 0.0078125, %v1637_v49  ;;  %v1670_v13 = vmul.f32 %v3527_v29, %v3527_v29  ;;  %v1732_v21 = vadd.f32 1e-05, %v1700_v61  ;;  %2451 = vrsqrt.f32 %v1733_v44 }
 0x4c9   : > { %v1635_v4 = vpop.xlane.xlu0 %1634  ;;  %v1710_v61 = vsub.f32 %v3399_v11, %v3485_v6  ;;  %v1759_v49 = vmul.f32 %v2434_v30, %v1711_v28  ;;  %v1714_v11 = vsub.f32 %v3428_v39, %v3497_v23  ;;  %v3565_v39 = vld [vmem:[%s3702_s6 + $0x2] ss:$0 sm:$0xff]  ;;  %v1718_v28 = vsub.f32 %v3456_v31, %v3527_v29 }
 0x4ca   : > { %v1687_v36 = vsub.f32 %v1655_v25, %v1671_v57  ;;  %v1654_v63 = vmul.f32 0.0078125, %v1635_v4  ;;  %2453 = vrsqrt.f32 %v1732_v21  ;;  %v1706_v25 = vsub.f32 %v3371_v27, %v3483_v2 }
 0x4cb   : > { %v1577_v37 = vpop.xlane.xlu1 %1576  ;;  %v1758_v4 = vmul.f32 %v2436_v51, %v1710_v61  ;;  %v1779_v52 = vmul.f32 %v3554_v18, %v1759_v49  ;;  %v1775_v27 = vmul.f32 %v3554_v18, %v1755_v50 }
 0x4cc   : > { %v1703_v60 = vmax.f32 %v1687_v36, 0.0  ;;  %v1686_v43 = vsub.f32 %v1654_v63, %v1670_v13  ;;  %v3533_v32 = vmul.f32 0.0078125, %v1577_v37 }
 0x4cd   : > { %v1575_v34 = vpop.xlane.xlu0 %1574  ;;  %v2438_v19 = vpop.eup %2437  ;;  %v1778_v23 = vmul.f32 %v3554_v18, %v1758_v4  ;;  %v1795_v17 = vadd.f32 %v3565_v39, %v1775_v27 }
 0x4ce   : > { %v1735_v62 = vadd.f32 1e-05, %v1703_v60  ;;  %v1702_v8 = vmax.f32 %v1686_v43, 0.0  ;;  %v3535_v20 = vmul.f32 0.0078125, %v1575_v34  ;;  %v1673_v33 = vmul.f32 %v3533_v32, %v3533_v32  ;;  %v2440_v7 = vpop.eup %2439 }
 0x4cf   : > { %v1641_v12 = vpop.xlane.xlu1 %1640  ;;  %v2442_v15 = vpop.eup %2441  ;;  %v1763_v59 = vmul.f32 %v2438_v19, %v1715_v48  ;;  %v1754_v36 = vmul.f32 %v2440_v7, %v1706_v25  ;;  %v1713_v60 = vsub.f32 %v3411_v47, %v3501_v24  ;;  %v1709_v34 = vsub.f32 %v3382_v35, %v3493_v26 }
 0x4d0   : > { %2455 = vrsqrt.f32 %v1735_v62  ;;  %v1734_v58 = vadd.f32 1e-05, %v1702_v8  ;;  %v1657_v42 = vmul.f32 0.0078125, %v1641_v12  ;;  %v1672_v45 = vmul.f32 %v3535_v20, %v3535_v20  ;;  %v2444_v44 = vpop.eup %2443 }
 0x4d1   : > { %v1639_v9 = vpop.xlane.xlu0 %1638  ;;  %v2446_v63 = vpop.eup %2445  ;;  %v1762_v2 = vmul.f32 %v2442_v15, %v1714_v11  ;;  %v1783_v62 = vmul.f32 %v3554_v18, %v1763_v59  ;;  %v1712_v47 = vsub.f32 %v3415_v0, %v3509_v10  ;;  %v1799_v24 = vadd.f32 %v3565_v39, %v1779_v52 }
 0x4d2   : > { %2457 = vrsqrt.f32 %v1734_v58  ;;  %v1689_v56 = vsub.f32 %v1657_v42, %v1673_v33  ;;  %v1656_v46 = vmul.f32 0.0078125, %v1639_v9  ;;  %v2448_v37 = vpop.eup %2447  ;;  %v1774_v12 = vmul.f32 %v3554_v18, %v1754_v36 }
 0x4d3   : > { %v1761_v30 = vmul.f32 %v2446_v63, %v1713_v60  ;;  %v1717_v33 = vsub.f32 %v3438_v41, %v3511_v54  ;;  %v1719_v35 = vsub.f32 %v3452_v55, %v3525_v3  ;;  %v1782_v26 = vmul.f32 %v3554_v18, %v1762_v2 }
 0x4d4   : > { %v1705_v53 = vmax.f32 %v1689_v56, 0.0  ;;  %v1688_v57 = vsub.f32 %v1656_v46, %v1672_v45  ;;  %v2450_v43 = vpop.eup %2449  ;;  %v1716_v0 = vsub.f32 %v3442_v14, %v3519_v40  ;;  %v1798_v10 = vadd.f32 %v3565_v39, %v1778_v23 }
 0x4d5   : > { %v2452_v8 = vpop.eup %2451  ;;  %v1757_v42 = vmul.f32 %v2444_v44, %v1709_v34  ;;  %v1760_v5 = vmul.f32 %v2450_v43, %v1712_v47  ;;  %v1803_v41 = vadd.f32 %v3565_v39, %v1783_v62  ;;  %v1811_v3 = vadd.f32 %v1799_v24, %v1795_v17 }
 0x4d6   : > { %v1737_v6 = vadd.f32 1e-05, %v1705_v53  ;;  %v1704_v13 = vmax.f32 %v1688_v57, 0.0  ;;  %v1765_v54 = vmul.f32 %v2452_v8, %v1717_v33  ;;  %v1794_v51 = vadd.f32 %v3565_v39, %v1774_v12 }
 0x4d7   : > { %v2454_v58 = vpop.eup %2453  ;;  %v1781_v45 = vmul.f32 %v3554_v18, %v1761_v30  ;;  %v1756_v56 = vmul.f32 %v2448_v37, %v1708_v1  ;;  %v1802_v46 = vadd.f32 %v3565_v39, %v1782_v26  ;;  %v1777_v31 = vmul.f32 %v3554_v18, %v1757_v42 }
 0x4d8   : > { %2459 = vrsqrt.f32 %v1737_v6  ;;  %v1736_v21 = vadd.f32 1e-05, %v1704_v13  ;;  %v1764_v19 = vmul.f32 %v2454_v58, %v1716_v0  ;;  %v1810_v61 = vadd.f32 %v1798_v10, %v1794_v51 }
 0x4d9   : > { %v1780_v29 = vmul.f32 %v3554_v18, %v1760_v5  ;;  %v1815_v7 = vadd.f32 %v1811_v3, %v1803_v41  ;;  %v1785_v53 = vmul.f32 %v3554_v18, %v1765_v54  ;;  %v1721_v57 = vsub.f32 %v3466_v38, %v3533_v32 }
 0x4da   : > { %2461 = vrsqrt.f32 %v1736_v21  ;;  %v1801_v50 = vadd.f32 %v3565_v39, %v1781_v45  ;;  %v1776_v15 = vmul.f32 %v3554_v18, %v1756_v56  ;;  %v1814_v44 = vadd.f32 %v1810_v61, %v1802_v46 }
 0x4db   : > { %v1784_v11 = vmul.f32 %v3554_v18, %v1764_v19  ;;  %v1720_v13 = vsub.f32 %v3469_v22, %v3535_v20  ;;  %v1797_v59 = vadd.f32 %v3565_v39, %v1777_v31  ;;  %v1800_v52 = vadd.f32 %v3565_v39, %v1780_v29 }
 0x4dc   : > { %v1805_v63 = vadd.f32 %v3565_v39, %v1785_v53  ;;  %v1796_v2 = vadd.f32 %v3565_v39, %v1776_v15 }
 0x4dd   : > { %v2456_v16 = vpop.eup %2455  ;;  %v1813_v27 = vadd.f32 %v1801_v50, %v1797_v59  ;;  %v1804_v60 = vadd.f32 %v3565_v39, %v1784_v11  ;;  %v2020_v11 = vld [vmem:[%s3701_s5 + $0x3] ss:$0 sm:$0xff] }
 0x4de   : > { %v1767_v9 = vmul.f32 %v2456_v16, %v1719_v35  ;;  %v1812_v23 = vadd.f32 %v1800_v52, %v1796_v2  ;;  %v2021_v52 = vld [vmem:[%s3702_s6 + $0x3] ss:$0 sm:$0xff] }
 0x4df   : > { %v2458_v55 = vpop.eup %2457  ;;  %v1817_v1 = vadd.f32 %v1813_v27, %v1805_v63 }
 0x4e0   : > { %v1787_v14 = vmul.f32 %v3554_v18, %v1767_v9  ;;  %v1766_v40 = vmul.f32 %v2458_v55, %v1718_v28  ;;  %v1816_v12 = vadd.f32 %v1812_v23, %v1804_v60 }
 0x4e2   : > { %v1807_v49 = vadd.f32 %v3565_v39, %v1787_v14  ;;  %v1786_v48 = vmul.f32 %v3554_v18, %v1766_v40 }
 0x4e4   : > { %v1819_v25 = vadd.f32 %v1815_v7, %v1807_v49  ;;  %v1806_v4 = vadd.f32 %v3565_v39, %v1786_v48 }
 0x4e5   : > { %v2460_v6 = vpop.eup %2459 }
 0x4e6   : > { %v3608_v36 = vmul.f32 0.25, %v1819_v25  ;;  %v1818_v38 = vadd.f32 %v1814_v44, %v1806_v4  ;;  %v1769_v32 = vmul.f32 %v2460_v6, %v1721_v57 }
 0x4e7   : > { %v2462_v21 = vpop.eup %2461 }
 0x4e8   : > { %1830 = vadd.xlane.f32.xlu1 %v3608_v36  ;;  %v3613_v37 = vmul.f32 0.25, %v1818_v38  ;;  %v1789_v22 = vmul.f32 %v3554_v18, %v1769_v32  ;;  %v1768_v20 = vmul.f32 %v2462_v21, %v1720_v13  ;;  %v1841_v43 = vmul.f32 %v3608_v36, %v3608_v36 }
 0x4ea   : > { %1828 = vadd.xlane.f32.xlu0 %v3613_v37  ;;  %v1809_v34 = vadd.f32 %v3565_v39, %v1789_v22  ;;  %v1788_v62 = vmul.f32 %v3554_v18, %v1768_v20  ;;  %v1840_v8 = vmul.f32 %v3613_v37, %v3613_v37 }
 0x4ec   : > { %1846 = vadd.xlane.f32.xlu1 %v1841_v43  ;;  %v1821_v47 = vadd.f32 %v1817_v1, %v1809_v34  ;;  %v1808_v24 = vadd.f32 %v3565_v39, %v1788_v62 }
 0x4ee   : > { %1844 = vadd.xlane.f32.xlu0 %v1840_v8  ;;  %v3625_v30 = vmul.f32 0.25, %v1821_v47  ;;  %v1820_v58 = vadd.f32 %v1816_v12, %v1808_v24 }
 0x4f0   : > { %1834 = vadd.xlane.f32.xlu1 %v3625_v30  ;;  %v3628_v33 = vmul.f32 0.25, %v1820_v58  ;;  %v1843_v18 = vmul.f32 %v3625_v30, %v3625_v30 }
 0x4f2   : > { %1832 = vadd.xlane.f32.xlu0 %v3628_v33  ;;  %v1842_v35 = vmul.f32 %v3628_v33, %v3628_v33 }
 0x4f4   : > { %1850 = vadd.xlane.f32.xlu1 %v1843_v18 }
 0x4f6   : > { %1848 = vadd.xlane.f32.xlu0 %v1842_v35 }
 0x571   : > { %v1831_v39 = vpop.xlane.xlu1 %1830 }
 0x572   : > { %v1837_v17 = vmul.f32 0.0078125, %v1831_v39 }
 0x573   : > { %v1829_v26 = vpop.xlane.xlu0 %1828 }
 0x574   : > { %v1836_v16 = vmul.f32 0.0078125, %v1829_v26  ;;  %v1857_v10 = vmul.f32 %v1837_v17, %v1837_v17  ;;  %v1869_v4 = vsub.f32 %v3608_v36, %v1837_v17 }
 0x575   : > { %v1847_v0 = vpop.xlane.xlu1 %1846 }
 0x576   : > { %v1853_v42 = vmul.f32 0.0078125, %v1847_v0  ;;  %v1856_v28 = vmul.f32 %v1836_v16, %v1836_v16  ;;  %v1868_v6 = vsub.f32 %v3613_v37, %v1836_v16 }
 0x577   : > { %v1845_v5 = vpop.xlane.xlu0 %1844 }
 0x578   : > { %v1861_v9 = vsub.f32 %v1853_v42, %v1857_v10  ;;  %v1852_v41 = vmul.f32 0.0078125, %v1845_v5 }
 0x579   : > { %v1835_v54 = vpop.xlane.xlu1 %1834 }
 0x57a   : > { %v1865_v55 = vmax.f32 %v1861_v9, 0.0  ;;  %v1860_v3 = vsub.f32 %v1852_v41, %v1856_v28  ;;  %v1839_v51 = vmul.f32 0.0078125, %v1835_v54 }
 0x57b   : > { %v1833_v45 = vpop.xlane.xlu0 %1832 }
 0x57c   : > { %v1873_v56 = vadd.f32 1e-05, %v1865_v55  ;;  %v1864_v14 = vmax.f32 %v1860_v3, 0.0  ;;  %v1838_v40 = vmul.f32 0.0078125, %v1833_v45  ;;  %v1859_v61 = vmul.f32 %v1839_v51, %v1839_v51 }
 0x57d   : > { %v1851_v46 = vpop.xlane.xlu1 %1850  ;;  %v1871_v36 = vsub.f32 %v3625_v30, %v1839_v51 }
 0x57e   : > { %2463 = vrsqrt.f32 %v1873_v56  ;;  %v1872_v19 = vadd.f32 1e-05, %v1864_v14  ;;  %v1855_v31 = vmul.f32 0.0078125, %v1851_v46  ;;  %v1858_v49 = vmul.f32 %v1838_v40, %v1838_v40 }
 0x57f   : > { %v1849_v29 = vpop.xlane.xlu0 %1848  ;;  %v1870_v37 = vsub.f32 %v3628_v33, %v1838_v40 }
 0x580   : > { %2465 = vrsqrt.f32 %v1872_v19  ;;  %v1863_v7 = vsub.f32 %v1855_v31, %v1859_v61  ;;  %v1854_v48 = vmul.f32 0.0078125, %v1849_v29 }
 0x582   : > { %v1867_v53 = vmax.f32 %v1863_v7, 0.0  ;;  %v1862_v57 = vsub.f32 %v1854_v48, %v1858_v49 }
 0x584   : > { %v1875_v50 = vadd.f32 1e-05, %v1867_v53  ;;  %v1866_v15 = vmax.f32 %v1862_v57, 0.0 }
 0x586   : > { %2467 = vrsqrt.f32 %v1875_v50  ;;  %v1874_v25 = vadd.f32 1e-05, %v1866_v15 }
 0x588   : > { %2469 = vrsqrt.f32 %v1874_v25 }
 0x58b   : > { %v2464_v44 = vpop.eup %2463 }
 0x58c   : > { %v1881_v13 = vmul.f32 %v2464_v44, %v1869_v4 }
 0x58d   : > { %v2466_v59 = vpop.eup %2465 }
 0x58e   : > { %v1889_v38 = vmul.f32 %v2020_v11, %v1881_v13  ;;  %v1880_v32 = vmul.f32 %v2466_v59, %v1868_v6 }
 0x590   : > { %v1888_v63 = vmul.f32 %v2020_v11, %v1880_v32  ;;  %v1897_v21 = vadd.f32 %v2021_v52, %v1889_v38 }
 0x592   : > { %v1896_v27 = vadd.f32 %v2021_v52, %v1888_v63  ;;  %1901 = vst [vmem:[%s372_s9 + $0x8] sm:$0xff] %v1897_v21 }
 0x593   : > { %v2468_v2 = vpop.eup %2467 }
 0x594   : > { %v1883_v22 = vmul.f32 %v2468_v2, %v1871_v36  ;;  %1900 = vst [vmem:[%s372_s9] sm:$0xff] %v1896_v27 }
 0x595   : > { %v2470_v20 = vpop.eup %2469 }
 0x596   : > { %v1891_v60 = vmul.f32 %v2020_v11, %v1883_v22  ;;  %v1882_v23 = vmul.f32 %v2470_v20, %v1870_v37 }
 0x598   : > { %v1899_v43 = vadd.f32 %v2021_v52, %v1891_v60  ;;  %v1890_v34 = vmul.f32 %v2020_v11, %v1882_v23 }
 0x59a   : > { %v1898_v1 = vadd.f32 %v2021_v52, %v1890_v34  ;;  %1903 = vst [vmem:[%s372_s9 + $0x18] sm:$0xff] %v1899_v43 }
 0x59c   : > { %1902 = vst [vmem:[%s372_s9 + $0x10] sm:$0xff] %v1898_v1 }
 0x59d   : > { %2484 = shalt.err (!%p2481_p5)
}
 0x59e   : > { %s2485_s22 = scalar_lea.hbm %s3651_s18, 512  ;;  %s2489_s9 = scalar_lea.hbm %s3703_s7, 1024 }
 0x59f   : > { %p2486_p7 = scmp.ne.s32.totalorder %s3651_s18, %s2485_s22  ;;  %p2490_p12 = scmp.lt.s32.totalorder %s3651_s18, %s3703_s7 }
 0x5a0   : > { %p2491_p13 = scmp.lt.s32.totalorder %s2489_s9, %s2485_s22 }
 0x5a1   : > { %p2487_p10 = pnand %p2486_p7, %p2615_p6 }
 0x5a2   : > { %p2492_p0 = por %p2491_p13, %p2490_p12 }
 0x5a3   : > { %p2488_p11 = pneg %p2487_p10 }
 0x5a5   : > { %p2493_p1 = pnand %p2492_p0, %p2488_p11 }
 0x5a7   : > { %2496 = shalt.err (!%p2493_p1)
}
 0x5a8   : > { %s2535_s17 = smov 128   ;;  %s2536_s19 = smov 8  }
 0x5a9   : > { %2325 = dma.vmem_to_hbm [thread:$0]  (%p2615_p6), %s3653_s14, 512, %s3651_s18, %s1905_s16, %s2535_s17, %s2535_s17, %s2536_s19  }
 0x5aa PF: > { %s1933_s28 = sand.u32 1, %s2519_s24   ;;  %p2328_p2 = pnand %p1988_p9, %p2619_p8 }
 0x5ab   : > { %s1934_s20 = scalar_lea.sflag [#allocation4], %s1933_s28 }
 0x5ac   : > { %p2329_p3 = pneg %p2328_p2 }
 0x5ae   : > { %2514 = dma.done.wait (%p2329_p3), %s1934_s20, 512  }
 0x5af   : > { %2516 = vsyncadd (%p2329_p3), %s1934_s20, 4294966784  ;;  %p17_p4 = scmp.ge.s32.totalorder %s2600_s30, 4   ;;  %s3706_s24 = smov %s2523_s25 }
 0x5b0   : > { %s3707_s25 = smov %s2527_s26  ;;  %s3708_s26 = smov %s2613_s10 }
 0x5b1   : > { %s3709_s27 = smov %s2600_s30  ;;  %19 = sbr.rel (!%p17_p4) target bundleno = 3 (0x3), region = 127 }
 0x5b6   :  { %1939 = vsyncpa [#allocation4], 1 }
 0x5b7   :  { %1941 = vsyncpa [#allocation4 + $0x1], 1 }

</bundles_post_ra>
